<compile_context>
chip_gen: v5e
topology: v5e:2x2
jax: 0.10.0
libtpu: 0.0.40
codegen_flags: <defaults>
</compile_context>

<pallas_src>
import jax
import jax.numpy as jnp
from jax.experimental import pallas as pl
from jax.experimental.pallas import tpu as pltpu


def _round_up(x, m):
    return (x + m - 1) // m * m


def _fused_mlp_kernel(x_ref, w1_ref, b1_ref, w2_ref, b2_ref, w3_ref, b3_ref,
                      o_ref, h1_ref, h2_ref):
    """Push one (tm, K1p) row-block of the batch through all three layers.

    Operands are bf16, accumulation is f32 on the MXU; biases are f32 and are
    added in the f32 domain before the ReLU / final store. h1/h2 are parked in
    VMEM scratch (bf16) between layers instead of spilling vregs.
    """
    # fc1 + ReLU
    h1 = jnp.dot(x_ref[...], w1_ref[...], preferred_element_type=jnp.float32)
    h1_ref[...] = jnp.maximum(h1 + b1_ref[...], 0.0).astype(h1_ref.dtype)
    # fc2 + ReLU
    h2 = jnp.dot(h1_ref[...], w2_ref[...], preferred_element_type=jnp.float32)
    h2_ref[...] = jnp.maximum(h2 + b2_ref[...], 0.0).astype(h2_ref.dtype)
    # fc3 (logits, no activation)
    out = jnp.dot(h2_ref[...], w3_ref[...], preferred_element_type=jnp.float32)
    o_ref[...] = (out + b3_ref[...]).astype(o_ref.dtype)


def _build_fused_call(*, Mp, K1p, H1, H2, NCp, tm, compute_dtype,
                      weight_buffers, vmem_limit_bytes, cost_estimate):
    """Construct the pallas_call for given static shapes / buffering choice."""
    if weight_buffers is None:
        resident = {}                                   # default (double) buffering
    else:
        resident = dict(pipeline_mode=pl.Buffered(weight_buffers))

    in_specs = [
        pl.BlockSpec((tm, K1p), lambda i: (i, 0)),                 # x row-block
        pl.BlockSpec((K1p, H1), lambda i: (0, 0), **resident),     # w1 (resident)
        pl.BlockSpec((1, H1), lambda i: (0, 0), **resident),       # b1
        pl.BlockSpec((H1, H2), lambda i: (0, 0), **resident),      # w2
        pl.BlockSpec((1, H2), lambda i: (0, 0), **resident),       # b2
        pl.BlockSpec((H2, NCp), lambda i: (0, 0), **resident),     # w3 (128-lane padded)
        pl.BlockSpec((1, NCp), lambda i: (0, 0), **resident),      # b3
    ]
    return pl.pallas_call(
        _fused_mlp_kernel,
        out_shape=jax.ShapeDtypeStruct((Mp, NCp), jnp.float32),
        grid_spec=pltpu.PrefetchScalarGridSpec(
            num_scalar_prefetch=0,
            grid=(Mp // tm,),
            in_specs=in_specs,
            out_specs=pl.BlockSpec((tm, NCp), lambda i: (i, 0)),
            scratch_shapes=[
                pltpu.VMEM((tm, H1), compute_dtype),   # h1
                pltpu.VMEM((tm, H2), compute_dtype),   # h2
            ],
        ),
        compiler_params=pltpu.CompilerParams(
            dimension_semantics=("parallel",),          # shard row-blocks across TCs
            vmem_limit_bytes=vmem_limit_bytes,
        ),
        cost_estimate=cost_estimate,
    )


def prepare_params(params, *, compute_dtype=jnp.bfloat16):
    """One-time pad/cast of the three Linear layers (hoisted out of the forward).

    params: [(w1, b1), (w2, b2), (w3, b3)] with weights stored as (in, out).
    """
    (w1, b1), (w2, b2), (w3, b3) = params
    K1, H1 = w1.shape
    H2 = w2.shape[1]
    NC = w3.shape[1]
    assert w2.shape[0] == H1 and w3.shape[0] == H2
    assert H1 % 128 == 0 and H2 % 128 == 0, "hidden dims must be lane-aligned"

    K1p = _round_up(K1, 128)   # lane dim of x / sublane dim of w1 (zero-padded)
    NCp = _round_up(NC, 128)   # lane-dense final store; sliced back in the wrapper

    w1p = jnp.zeros((K1p, H1), compute_dtype).at[:K1, :].set(w1.astype(compute_dtype))
    w2c = w2.astype(compute_dtype)
    w3p = jnp.zeros((H2, NCp), compute_dtype).at[:, :NC].set(w3.astype(compute_dtype))
    b1r = b1.reshape(1, H1).astype(jnp.float32)
    b2r = b2.reshape(1, H2).astype(jnp.float32)
    b3r = jnp.zeros((1, NCp), jnp.float32).at[:, :NC].set(
        b3.reshape(1, NC).astype(jnp.float32))

    meta = dict(K1=K1, K1p=K1p, H1=H1, H2=H2, NC=NC, NCp=NCp,
                compute_dtype=compute_dtype)
    return (w1p, b1r, w2c, b2r, w3p, b3r), meta


def ann_forward(x_nchw, prepared, meta, *, tm_max=256):
    """Forward pass of ANNModel as a single fused Pallas call.

    x_nchw: (B, C, H, W) image batch. Returns (B, num_classes) float32 logits.
    """
    w1p, b1r, w2c, b2r, w3p, b3r = prepared
    K1, K1p = meta["K1"], meta["K1p"]
    H1, H2 = meta["H1"], meta["H2"]
    NC, NCp = meta["NC"], meta["NCp"]
    compute_dtype = meta["compute_dtype"]

    B = x_nchw.shape[0]
    x = x_nchw.reshape(B, -1)                      # x.view(x.size(0), -1)
    assert x.shape[1] == K1

    # --- batch tiling: bf16 packs 16 sublanes/vreg; keep >=2 grid steps for the
    #     2-TensorCore v7x whenever the (padded) batch allows it. ---
    if B <= tm_max:
        Mp = _round_up(B, 16)
        if Mp >= 32:
            tm = _round_up((Mp + 1) // 2, 16)
            Mp = _round_up(Mp, tm)
        else:
            tm = Mp
    else:
        tm = tm_max
        Mp = _round_up(B, tm)

    # Cast to bf16 BEFORE padding; skip the pad buffer entirely when aligned.
    xc = x.astype(compute_dtype)
    if Mp == B and K1p == K1:
        xp = xc
    else:
        xp = jnp.zeros((Mp, K1p), compute_dtype).at[:B, :K1].set(xc)

    # --- VMEM budget (weights are single-buffered; x/out blocks double-buffered) ---
    itemsize = jnp.dtype(compute_dtype).itemsize
    weight_buffers = 1
    weight_bytes = (K1p * H1 + H1 * H2 + H2 * NCp) * itemsize
    bias_bytes = (H1 + H2 + NCp) * 4
    x_block_bytes = tm * K1p * itemsize
    out_block_bytes = tm * NCp * 4
    scratch_bytes = tm * (H1 + H2) * itemsize
    needed_bytes = ((weight_bytes + bias_bytes) * weight_buffers
                    + 2 * (x_block_bytes + out_block_bytes) + scratch_bytes)
    # Single-buffered weights up to ~24 MiB still fit v7x's 64 MiB alongside the
    # double-buffered activation blocks; v5e/v6e have 2x the headroom.
    assert weight_bytes <= 24 * 1024 * 1024, (
        "weights too large to keep VMEM-resident; K-tile fc1")
    # TODO(synk): for the real input_size = 224*224*3, w1 (~147 MiB bf16) cannot be
    # VMEM-resident on any generation; that case needs a K-tiled reduction grid
    # (grid=(Mp/tm, K1p/tk), ("parallel","arbitrary"), f32 (tm,512) accumulator,
    # fc2/fc3 under pl.when(k == last)) for the first layer only.
    vmem_limit_bytes = int(min(64 * 1024 * 1024, needed_bytes + 16 * 1024 * 1024))

    cost = pl.CostEstimate(
        flops=2 * B * (K1 * H1 + H1 * H2 + H2 * NC),
        transcendentals=0,
        bytes_accessed=int(weight_bytes + bias_bytes
                           + Mp * K1p * itemsize + Mp * NCp * 4),
    )

    build_kwargs = dict(Mp=Mp, K1p=K1p, H1=H1, H2=H2, NCp=NCp, tm=tm,
                        compute_dtype=compute_dtype,
                        vmem_limit_bytes=vmem_limit_bytes, cost_estimate=cost)
    operands = (xp, w1p, b1r, w2c, b2r, w3p, b3r)

    try:
        out_padded = _build_fused_call(weight_buffers=weight_buffers,
                                       **build_kwargs)(*operands)
    except Exception:
        # TODO(synk): drop this fallback once pl.Buffered(1) (single-buffered
        # resident operands) is guaranteed by the deployed JAX; the math is
        # identical, only the weights' VMEM footprint doubles.
        out_padded = _build_fused_call(weight_buffers=None,
                                       **build_kwargs)(*operands)

    return out_padded[:B, :NC]


def init_ann_params(key, input_size, num_classes):
    """Deterministic init of the 3 Linear layers (weights stored as (in, out))."""
    dims = [(input_size, 512), (512, 256), (256, num_classes)]
    params = []
    for i, (fan_in, fan_out) in enumerate(dims):
        kw, kb = jax.random.split(jax.random.fold_in(key, i))
        bound = 1.0 / jnp.sqrt(fan_in)  # matches nn.Linear default uniform bound
        w = jax.random.uniform(kw, (fan_in, fan_out), jnp.float32, -bound, bound)
        b = jax.random.uniform(kb, (fan_out,), jnp.float32, -bound, bound)
        params.append((w, b))
    return params


if __name__ == "__main__":
    # Small shapes consistent with the module's forward:
    # images (B, C, H, W) = (8, 3, 16, 16) -> input_size = 768, num_classes = 8.
    B, C, H, W = 8, 3, 16, 16
    input_size = C * H * W
    num_classes = 8

    key = jax.random.PRNGKey(0)
    kx, kp = jax.random.split(key)
    x = jax.random.normal(kx, (B, C, H, W), jnp.float32)
    params = init_ann_params(kp, input_size, num_classes)

    prepared, meta = prepare_params(params)               # one-time pad/cast
    out = jax.block_until_ready(ann_forward(x, prepared, meta))
    assert out.shape == (B, num_classes)

    # Pure-JAX reference with the same bf16-operand / f32-accumulate math.
    xf = x.reshape(B, -1)
    (w1, b1), (w2, b2), (w3, b3) = params
    bf = jnp.bfloat16
    ref = jnp.maximum(jnp.dot(xf.astype(bf), w1.astype(bf),
                              preferred_element_type=jnp.float32) + b1, 0.0)
    ref = jnp.maximum(jnp.dot(ref.astype(bf), w2.astype(bf),
                              preferred_element_type=jnp.float32) + b2, 0.0)
    ref = jnp.dot(ref.astype(bf), w3.astype(bf),
                  preferred_element_type=jnp.float32) + b3

    max_err = float(jnp.max(jnp.abs(out - ref)))
    assert jnp.allclose(out, ref, atol=2e-2, rtol=2e-2), max_err

    print("KERNEL_OK")
</pallas_src>

<mosaic_0001>
module attributes {stable_mosaic.version = 11 : i64} {
  func.func @_fused_mlp_kernel(%arg0: i32, %arg1: memref<16x768xbf16, #tpu.memory_space<vmem>>, %arg2: memref<768x512xbf16, #tpu.memory_space<vmem>>, %arg3: memref<1x512xf32, #tpu.memory_space<vmem>>, %arg4: memref<512x256xbf16, #tpu.memory_space<vmem>>, %arg5: memref<1x256xf32, #tpu.memory_space<vmem>>, %arg6: memref<256x128xbf16, #tpu.memory_space<vmem>>, %arg7: memref<1x128xf32, #tpu.memory_space<vmem>>, %arg8: memref<16x128xf32, #tpu.memory_space<vmem>>, %arg9: memref<16x512xbf16, #tpu.memory_space<vmem>>, %arg10: memref<16x256xbf16, #tpu.memory_space<vmem>>) attributes {dimension_semantics = [#tpu.dimension_semantics<parallel>], iteration_bounds = array<i64: 1>, scalar_prefetch = 0 : i64, scratch_operands = 2 : i64, tpu.core_type = #tpu.core_type<tc>, window_params = [{transform_indices = @transform_0, window_bounds = array<i64: 16, 768>}, {pipeline_mode = #tpu.pipeline_mode<synchronous>, transform_indices = @transform_1, window_bounds = array<i64: 768, 512>}, {pipeline_mode = #tpu.pipeline_mode<synchronous>, transform_indices = @transform_2, window_bounds = array<i64: 1, 512>}, {pipeline_mode = #tpu.pipeline_mode<synchronous>, transform_indices = @transform_3, window_bounds = array<i64: 512, 256>}, {pipeline_mode = #tpu.pipeline_mode<synchronous>, transform_indices = @transform_4, window_bounds = array<i64: 1, 256>}, {pipeline_mode = #tpu.pipeline_mode<synchronous>, transform_indices = @transform_5, window_bounds = array<i64: 256, 128>}, {pipeline_mode = #tpu.pipeline_mode<synchronous>, transform_indices = @transform_6, window_bounds = array<i64: 1, 128>}, {transform_indices = @transform_7, window_bounds = array<i64: 16, 128>}]} {
    %c0 = arith.constant 0 : index
    %c0_0 = arith.constant 0 : index
    %0 = vector.load %arg1[%c0, %c0_0] : memref<16x768xbf16, #tpu.memory_space<vmem>>, vector<16x768xbf16>
    %c0_1 = arith.constant 0 : index
    %c0_2 = arith.constant 0 : index
    %1 = vector.load %arg2[%c0_1, %c0_2] : memref<768x512xbf16, #tpu.memory_space<vmem>>, vector<768x512xbf16>
    %cst = arith.constant dense<0.000000e+00> : vector<16x512xf32>
    %2 = tpu.matmul %0, %1, %cst {dimension_numbers = #tpu.dot_dimension_numbers<[1], [0], [0], [1], [0, 0, 1, 1], [], []>} : vector<16x768xbf16>, vector<768x512xbf16>, vector<16x512xf32> -> vector<16x512xf32>
    %c0_3 = arith.constant 0 : index
    %c0_4 = arith.constant 0 : index
    %3 = vector.load %arg3[%c0_3, %c0_4] : memref<1x512xf32, #tpu.memory_space<vmem>>, vector<1x512xf32>
    %4 = vector.broadcast %3 : vector<1x512xf32> to vector<16x512xf32>
    %5 = arith.addf %2, %4 : vector<16x512xf32>
    %cst_5 = arith.constant 0.000000e+00 : f32
    %6 = vector.broadcast %cst_5 : f32 to vector<16x512xf32>
    %7 = arith.maximumf %5, %6 : vector<16x512xf32>
    %8 = arith.truncf %7 : vector<16x512xf32> to vector<16x512xbf16>
    %c0_6 = arith.constant 0 : index
    %c0_7 = arith.constant 0 : index
    %9 = vector.load %arg9[%c0_6, %c0_7] : memref<16x512xbf16, #tpu.memory_space<vmem>>, vector<16x512xbf16>
    tpu.vector_store %arg9[%c0_6, %c0_7], %8 {strides = array<i32>} : memref<16x512xbf16, #tpu.memory_space<vmem>>, vector<16x512xbf16>,
    %c0_8 = arith.constant 0 : index
    %c0_9 = arith.constant 0 : index
    %10 = vector.load %arg9[%c0_8, %c0_9] : memref<16x512xbf16, #tpu.memory_space<vmem>>, vector<16x512xbf16>
    %c0_10 = arith.constant 0 : index
    %c0_11 = arith.constant 0 : index
    %11 = vector.load %arg4[%c0_10, %c0_11] : memref<512x256xbf16, #tpu.memory_space<vmem>>, vector<512x256xbf16>
    %cst_12 = arith.constant dense<0.000000e+00> : vector<16x256xf32>
    %12 = tpu.matmul %10, %11, %cst_12 {dimension_numbers = #tpu.dot_dimension_numbers<[1], [0], [0], [1], [0, 0, 1, 1], [], []>} : vector<16x512xbf16>, vector<512x256xbf16>, vector<16x256xf32> -> vector<16x256xf32>
    %c0_13 = arith.constant 0 : index
    %c0_14 = arith.constant 0 : index
    %13 = vector.load %arg5[%c0_13, %c0_14] : memref<1x256xf32, #tpu.memory_space<vmem>>, vector<1x256xf32>
    %14 = vector.broadcast %13 : vector<1x256xf32> to vector<16x256xf32>
    %15 = arith.addf %12, %14 : vector<16x256xf32>
    %cst_15 = arith.constant 0.000000e+00 : f32
    %16 = vector.broadcast %cst_15 : f32 to vector<16x256xf32>
    %17 = arith.maximumf %15, %16 : vector<16x256xf32>
    %18 = arith.truncf %17 : vector<16x256xf32> to vector<16x256xbf16>
    %c0_16 = arith.constant 0 : index
    %c0_17 = arith.constant 0 : index
    %19 = vector.load %arg10[%c0_16, %c0_17] : memref<16x256xbf16, #tpu.memory_space<vmem>>, vector<16x256xbf16>
    tpu.vector_store %arg10[%c0_16, %c0_17], %18 {strides = array<i32>} : memref<16x256xbf16, #tpu.memory_space<vmem>>, vector<16x256xbf16>,
    %c0_18 = arith.constant 0 : index
    %c0_19 = arith.constant 0 : index
    %20 = vector.load %arg10[%c0_18, %c0_19] : memref<16x256xbf16, #tpu.memory_space<vmem>>, vector<16x256xbf16>
    %c0_20 = arith.constant 0 : index
    %c0_21 = arith.constant 0 : index
    %21 = vector.load %arg6[%c0_20, %c0_21] : memref<256x128xbf16, #tpu.memory_space<vmem>>, vector<256x128xbf16>
    %cst_22 = arith.constant dense<0.000000e+00> : vector<16x128xf32>
    %22 = tpu.matmul %20, %21, %cst_22 {dimension_numbers = #tpu.dot_dimension_numbers<[1], [0], [0], [1], [0, 0, 1, 1], [], []>} : vector<16x256xbf16>, vector<256x128xbf16>, vector<16x128xf32> -> vector<16x128xf32>
    %c0_23 = arith.constant 0 : index
    %c0_24 = arith.constant 0 : index
    %23 = vector.load %arg7[%c0_23, %c0_24] : memref<1x128xf32, #tpu.memory_space<vmem>>, vector<1x128xf32>
    %24 = vector.broadcast %23 : vector<1x128xf32> to vector<16x128xf32>
    %25 = arith.addf %22, %24 : vector<16x128xf32>
    %c0_25 = arith.constant 0 : index
    %c0_26 = arith.constant 0 : index
    %26 = vector.load %arg8[%c0_25, %c0_26] : memref<16x128xf32, #tpu.memory_space<vmem>>, vector<16x128xf32>
    tpu.vector_store %arg8[%c0_25, %c0_26], %25 {strides = array<i32>} : memref<16x128xf32, #tpu.memory_space<vmem>>, vector<16x128xf32>,
    return
  }
  func.func @transform_0(%arg0: i32) -> (i32, i32) {
    %c0_i32 = arith.constant 0 : i32
    %c0_i32_0 = arith.constant 0 : i32
    return %arg0, %c0_i32 : i32, i32
  }
  func.func @transform_1(%arg0: i32) -> (i32, i32) {
    %c0_i32 = arith.constant 0 : i32
    %c0_i32_0 = arith.constant 0 : i32
    %c0_i32_1 = arith.constant 0 : i32
    return %c0_i32, %c0_i32_0 : i32, i32
  }
  func.func @transform_2(%arg0: i32) -> (i32, i32) {
    %c0_i32 = arith.constant 0 : i32
    %c0_i32_0 = arith.constant 0 : i32
    %c0_i32_1 = arith.constant 0 : i32
    return %c0_i32, %c0_i32_0 : i32, i32
  }
  func.func @transform_3(%arg0: i32) -> (i32, i32) {
    %c0_i32 = arith.constant 0 : i32
    %c0_i32_0 = arith.constant 0 : i32
    %c0_i32_1 = arith.constant 0 : i32
    return %c0_i32, %c0_i32_0 : i32, i32
  }
  func.func @transform_4(%arg0: i32) -> (i32, i32) {
    %c0_i32 = arith.constant 0 : i32
    %c0_i32_0 = arith.constant 0 : i32
    %c0_i32_1 = arith.constant 0 : i32
    return %c0_i32, %c0_i32_0 : i32, i32
  }
  func.func @transform_5(%arg0: i32) -> (i32, i32) {
    %c0_i32 = arith.constant 0 : i32
    %c0_i32_0 = arith.constant 0 : i32
    %c0_i32_1 = arith.constant 0 : i32
    return %c0_i32, %c0_i32_0 : i32, i32
  }
  func.func @transform_6(%arg0: i32) -> (i32, i32) {
    %c0_i32 = arith.constant 0 : i32
    %c0_i32_0 = arith.constant 0 : i32
    %c0_i32_1 = arith.constant 0 : i32
    return %c0_i32, %c0_i32_0 : i32, i32
  }
  func.func @transform_7(%arg0: i32) -> (i32, i32) {
    %c0_i32 = arith.constant 0 : i32
    %c0_i32_0 = arith.constant 0 : i32
    return %arg0, %c0_i32 : i32, i32
  }
}

module attributes {stable_mosaic.version = 11 : i64} {
  func.func @_fused_mlp_kernel(%arg0: i32, %arg1: memref<16x768xbf16, #tpu.memory_space<vmem>>, %arg2: memref<768x512xbf16, #tpu.memory_space<vmem>>, %arg3: memref<1x512xf32, #tpu.memory_space<vmem>>, %arg4: memref<512x256xbf16, #tpu.memory_space<vmem>>, %arg5: memref<1x256xf32, #tpu.memory_space<vmem>>, %arg6: memref<256x128xbf16, #tpu.memory_space<vmem>>, %arg7: memref<1x128xf32, #tpu.memory_space<vmem>>, %arg8: memref<16x128xf32, #tpu.memory_space<vmem>>, %arg9: memref<16x512xbf16, #tpu.memory_space<vmem>>, %arg10: memref<16x256xbf16, #tpu.memory_space<vmem>>) attributes {dimension_semantics = [#tpu.dimension_semantics<parallel>], iteration_bounds = array<i64: 1>, scalar_prefetch = 0 : i64, scratch_operands = 2 : i64, tpu.core_type = #tpu.core_type<tc>, window_params = [{transform_indices = @transform_0, window_bounds = array<i64: 16, 768>}, {pipeline_mode = #tpu.pipeline_mode<synchronous>, transform_indices = @transform_1, window_bounds = array<i64: 768, 512>}, {pipeline_mode = #tpu.pipeline_mode<synchronous>, transform_indices = @transform_2, window_bounds = array<i64: 1, 512>}, {pipeline_mode = #tpu.pipeline_mode<synchronous>, transform_indices = @transform_3, window_bounds = array<i64: 512, 256>}, {pipeline_mode = #tpu.pipeline_mode<synchronous>, transform_indices = @transform_4, window_bounds = array<i64: 1, 256>}, {pipeline_mode = #tpu.pipeline_mode<synchronous>, transform_indices = @transform_5, window_bounds = array<i64: 256, 128>}, {pipeline_mode = #tpu.pipeline_mode<synchronous>, transform_indices = @transform_6, window_bounds = array<i64: 1, 128>}, {transform_indices = @transform_7, window_bounds = array<i64: 16, 128>}]} {
    %c0 = arith.constant 0 : index
    %c0_0 = arith.constant 0 : index
    %0 = vector.load %arg1[%c0, %c0_0] : memref<16x768xbf16, #tpu.memory_space<vmem>>, vector<16x768xbf16>
    %c0_1 = arith.constant 0 : index
    %c0_2 = arith.constant 0 : index
    %1 = vector.load %arg2[%c0_1, %c0_2] : memref<768x512xbf16, #tpu.memory_space<vmem>>, vector<768x512xbf16>
    %cst = arith.constant dense<0.000000e+00> : vector<16x512xf32>
    %2 = tpu.matmul %0, %1, %cst {dimension_numbers = #tpu.dot_dimension_numbers<[1], [0], [0], [1], [0, 0, 1, 1], [], []>} : vector<16x768xbf16>, vector<768x512xbf16>, vector<16x512xf32> -> vector<16x512xf32>
    %c0_3 = arith.constant 0 : index
    %c0_4 = arith.constant 0 : index
    %3 = vector.load %arg3[%c0_3, %c0_4] : memref<1x512xf32, #tpu.memory_space<vmem>>, vector<1x512xf32>
    %4 = vector.broadcast %3 : vector<1x512xf32> to vector<16x512xf32>
    %5 = arith.addf %2, %4 : vector<16x512xf32>
    %cst_5 = arith.constant 0.000000e+00 : f32
    %6 = vector.broadcast %cst_5 : f32 to vector<16x512xf32>
    %7 = arith.maximumf %5, %6 : vector<16x512xf32>
    %8 = arith.truncf %7 : vector<16x512xf32> to vector<16x512xbf16>
    %c0_6 = arith.constant 0 : index
    %c0_7 = arith.constant 0 : index
    %9 = vector.load %arg9[%c0_6, %c0_7] : memref<16x512xbf16, #tpu.memory_space<vmem>>, vector<16x512xbf16>
    tpu.vector_store %arg9[%c0_6, %c0_7], %8 {strides = array<i32>} : memref<16x512xbf16, #tpu.memory_space<vmem>>, vector<16x512xbf16>,
    %c0_8 = arith.constant 0 : index
    %c0_9 = arith.constant 0 : index
    %10 = vector.load %arg9[%c0_8, %c0_9] : memref<16x512xbf16, #tpu.memory_space<vmem>>, vector<16x512xbf16>
    %c0_10 = arith.constant 0 : index
    %c0_11 = arith.constant 0 : index
    %11 = vector.load %arg4[%c0_10, %c0_11] : memref<512x256xbf16, #tpu.memory_space<vmem>>, vector<512x256xbf16>
    %cst_12 = arith.constant dense<0.000000e+00> : vector<16x256xf32>
    %12 = tpu.matmul %10, %11, %cst_12 {dimension_numbers = #tpu.dot_dimension_numbers<[1], [0], [0], [1], [0, 0, 1, 1], [], []>} : vector<16x512xbf16>, vector<512x256xbf16>, vector<16x256xf32> -> vector<16x256xf32>
    %c0_13 = arith.constant 0 : index
    %c0_14 = arith.constant 0 : index
    %13 = vector.load %arg5[%c0_13, %c0_14] : memref<1x256xf32, #tpu.memory_space<vmem>>, vector<1x256xf32>
    %14 = vector.broadcast %13 : vector<1x256xf32> to vector<16x256xf32>
    %15 = arith.addf %12, %14 : vector<16x256xf32>
    %cst_15 = arith.constant 0.000000e+00 : f32
    %16 = vector.broadcast %cst_15 : f32 to vector<16x256xf32>
    %17 = arith.maximumf %15, %16 : vector<16x256xf32>
    %18 = arith.truncf %17 : vector<16x256xf32> to vector<16x256xbf16>
    %c0_16 = arith.constant 0 : index
    %c0_17 = arith.constant 0 : index
    %19 = vector.load %arg10[%c0_16, %c0_17] : memref<16x256xbf16, #tpu.memory_space<vmem>>, vector<16x256xbf16>
    tpu.vector_store %arg10[%c0_16, %c0_17], %18 {strides = array<i32>} : memref<16x256xbf16, #tpu.memory_space<vmem>>, vector<16x256xbf16>,
    %c0_18 = arith.constant 0 : index
    %c0_19 = arith.constant 0 : index
    %20 = vector.load %arg10[%c0_18, %c0_19] : memref<16x256xbf16, #tpu.memory_space<vmem>>, vector<16x256xbf16>
    %c0_20 = arith.constant 0 : index
    %c0_21 = arith.constant 0 : index
    %21 = vector.load %arg6[%c0_20, %c0_21] : memref<256x128xbf16, #tpu.memory_space<vmem>>, vector<256x128xbf16>
    %cst_22 = arith.constant dense<0.000000e+00> : vector<16x128xf32>
    %22 = tpu.matmul %20, %21, %cst_22 {dimension_numbers = #tpu.dot_dimension_numbers<[1], [0], [0], [1], [0, 0, 1, 1], [], []>} : vector<16x256xbf16>, vector<256x128xbf16>, vector<16x128xf32> -> vector<16x128xf32>
    %c0_23 = arith.constant 0 : index
    %c0_24 = arith.constant 0 : index
    %23 = vector.load %arg7[%c0_23, %c0_24] : memref<1x128xf32, #tpu.memory_space<vmem>>, vector<1x128xf32>
    %24 = vector.broadcast %23 : vector<1x128xf32> to vector<16x128xf32>
    %25 = arith.addf %22, %24 : vector<16x128xf32>
    %c0_25 = arith.constant 0 : index
    %c0_26 = arith.constant 0 : index
    %26 = vector.load %arg8[%c0_25, %c0_26] : memref<16x128xf32, #tpu.memory_space<vmem>>, vector<16x128xf32>
    tpu.vector_store %arg8[%c0_25, %c0_26], %25 {strides = array<i32>} : memref<16x128xf32, #tpu.memory_space<vmem>>, vector<16x128xf32>,
    return
  }
  func.func @transform_0(%arg0: i32) -> (i32, i32) {
    %c0_i32 = arith.constant 0 : i32
    %c0_i32_0 = arith.constant 0 : i32
    return %arg0, %c0_i32 : i32, i32
  }
  func.func @transform_1(%arg0: i32) -> (i32, i32) {
    %c0_i32 = arith.constant 0 : i32
    %c0_i32_0 = arith.constant 0 : i32
    %c0_i32_1 = arith.constant 0 : i32
    return %c0_i32, %c0_i32_0 : i32, i32
  }
  func.func @transform_2(%arg0: i32) -> (i32, i32) {
    %c0_i32 = arith.constant 0 : i32
    %c0_i32_0 = arith.constant 0 : i32
    %c0_i32_1 = arith.constant 0 : i32
    return %c0_i32, %c0_i32_0 : i32, i32
  }
  func.func @transform_3(%arg0: i32) -> (i32, i32) {
    %c0_i32 = arith.constant 0 : i32
    %c0_i32_0 = arith.constant 0 : i32
    %c0_i32_1 = arith.constant 0 : i32
    return %c0_i32, %c0_i32_0 : i32, i32
  }
  func.func @transform_4(%arg0: i32) -> (i32, i32) {
    %c0_i32 = arith.constant 0 : i32
    %c0_i32_0 = arith.constant 0 : i32
    %c0_i32_1 = arith.constant 0 : i32
    return %c0_i32, %c0_i32_0 : i32, i32
  }
  func.func @transform_5(%arg0: i32) -> (i32, i32) {
    %c0_i32 = arith.constant 0 : i32
    %c0_i32_0 = arith.constant 0 : i32
    %c0_i32_1 = arith.constant 0 : i32
    return %c0_i32, %c0_i32_0 : i32, i32
  }
  func.func @transform_6(%arg0: i32) -> (i32, i32) {
    %c0_i32 = arith.constant 0 : i32
    %c0_i32_0 = arith.constant 0 : i32
    %c0_i32_1 = arith.constant 0 : i32
    return %c0_i32, %c0_i32_0 : i32, i32
  }
  func.func @transform_7(%arg0: i32) -> (i32, i32) {
    %c0_i32 = arith.constant 0 : i32
    %c0_i32_0 = arith.constant 0 : i32
    return %arg0, %c0_i32 : i32, i32
  }
}

</mosaic_0001>

<bundles_post_ra>
// kernel: tpu_custom_call.1
= control target key start
LH: loop header
LB: loop body
LE: loop exit
PB: predicated region body
PF: predicated region fallthrough
CT: control target
= control target key end

     0   :  { %12 = vsyncpa [#allocation5], 0  ;;  %s4164_s0 = inlined_call_operand.hbm [shape: bf16[16,768], index: 0, kind: input, shape index: {}]   ;;  %s4165_s1 = inlined_call_operand.hbm [shape: bf16[768,512], index: 1, kind: input, shape index: {}]   ;;  %s4166_s2 = inlined_call_operand.hbm [shape: f32[1,512], index: 2, kind: input, shape index: {}]   ;;  %s4167_s3 = inlined_call_operand.hbm [shape: bf16[512,256], index: 3, kind: input, shape index: {}]   ;;  %s4168_s4 = inlined_call_operand.vmem [shape: f32[1,256], index: 4, kind: input, shape index: {}]   ;;  %s4169_s5 = inlined_call_operand.hbm [shape: bf16[256,128], index: 5, kind: input, shape index: {}]   ;;  %s4170_s6 = inlined_call_operand.vmem [shape: f32[1,128], index: 6, kind: input, shape index: {}]   ;;  %s4171_s7 = inlined_call_operand.hbm [shape: f32[16,128], index: 7, kind: output, shape index: {}]  }
   0x1   :  { %13 = vsyncpa [#allocation8], 0 }
   0x2   :  { %14 = vsyncpa [#allocation11], 0  ;;  %s33_s26 = sshll.u32 %s4165_s1, 4  ;;  %s34_s26 = int_to_ptr.hbm [resolvable:$true] %s33_s26 }
   0x3   :  { %15 = vsyncpa [#allocation6], 0  ;;  %s3969_s27 = smov [#allocation7]   ;;  %s57_s8 = sshll.u32 %s4167_s3, 4  ;;  %s58_s8 = int_to_ptr.hbm [resolvable:$true] %s57_s8 }
   0x4   :  { %s35_s28 = sshll.u32 %s3969_s27, 4  ;;  %s3970_s9 = smov 256   ;;  %s36_s28 = int_to_ptr.vmem [resolvable:$true] %s35_s28 }
   0x5   :  { %s3971_s10 = smov 16   ;;  %s3972_s11 = smov [#allocation10]  }
   0x6   :  { %41 = dma.hbm_to_vmem [thread:$0]  %s34_s26, 24576, %s36_s28, [#allocation8], %s3970_s9, %s3970_s9, %s3971_s10  }
   0x7   :  { %s59_s12 = sshll.u32 %s3972_s11, 4  ;;  %s3973_s13 = smov 128   ;;  %s60_s12 = int_to_ptr.vmem [resolvable:$true] %s59_s12 }
   0x8   :  { %s3974_s14 = smov 8   ;;  %s20_s16 = sshll.u32 %s4164_s0, 4  ;;  %s21_s16 = int_to_ptr.hbm [resolvable:$true] %s20_s16 }
   0x9   :  { %65 = dma.hbm_to_vmem [thread:$0]  %s58_s8, 8192, %s60_s12, [#allocation11], %s3973_s13, %s3973_s13, %s3974_s14  }
   0xa   :  { %s3975_s17 = smov [#allocation4]   ;;  %s47_s20 = sshll.u32 %s4166_s2, 4  ;;  %s48_s20 = int_to_ptr.hbm [resolvable:$true] %s47_s20 }
   0xb   :  { %s22_s3 = sshll.u32 %s3975_s17, 4  ;;  %s3976_s21 = smov 384   ;;  %s23_s3 = int_to_ptr.vmem [resolvable:$true] %s22_s3 }
   0xc   :  { %s3977_s22 = smov 24   ;;  %s3978_s23 = smov [#allocation9]  }
   0xd   :  { %28 = dma.hbm_to_vmem [thread:$0]  %s21_s16, 768, %s23_s3, [#allocation5], %s3976_s21, %s3976_s21, %s3977_s22  }
   0xe   :  { %s49_s24 = sshll.u32 %s3978_s23, 4  ;;  %s72_s27 = sshll.u32 %s4169_s5, 4  ;;  %s50_s24 = int_to_ptr.vmem [resolvable:$true] %s49_s24  ;;  %s73_s27 = int_to_ptr.hbm [resolvable:$true] %s72_s27 }
   0xf   :  { %52 = dma.hbm_to_vmem [thread:$0]  %s48_s20, 64, %s50_s24, [#allocation8]  }
  0x10   :  { %s3979_s0 = smov [#allocation12]   ;;  %s3980_s29 = smov 64  }
  0x11   :  { %s74_s28 = sshll.u32 %s3979_s0, 4  ;;  %s3981_s30 = smov 4   ;;  %s75_s28 = int_to_ptr.vmem [resolvable:$true] %s74_s28 }
  0x12   :  { %80 = dma.hbm_to_vmem [thread:$0]  %s73_s27, 2048, %s75_s28, [#allocation11], %s3980_s29, %s3980_s29, %s3981_s30  }
  0x13   :  { %3961 = dma.done.wait [#allocation5], 768  }
  0x14   :  { %3962 = vsyncadd [#allocation5], 4294966528 }
  0x15   :  { %3963 = dma.done.wait [#allocation8], 24640  }
  0x16   :  { %3964 = vsyncadd [#allocation8], 4294942656 }
  0x17   :  { %3965 = dma.done.wait [#allocation11], 10240  }
  0x18   :  { %3966 = vsyncadd [#allocation11], 4294957056  ;;  %v2520_v0 = vld [vmem:[#allocation7 + $0xe0] sm:$0xf]  ;;  %v3554_v1 = vld [vmem:[#allocation7 + $0xec] sm:$0xf0] }
  0x19   :  { %v2648_v2 = vld [vmem:[#allocation7 + $0x1e0] sm:$0xf]  ;;  %v2521_v3 = vor.u32 %v3554_v1, %v2520_v0  ;;  %v3586_v4 = vld [vmem:[#allocation7 + $0x1ec] sm:$0xf0]  ;;  %s3982_s9 = smov [#allocation13]   ;;  %s2367_s1 = sshll.u32 %s4171_s7, 4  ;;  %s2368_s1 = int_to_ptr.hbm [resolvable:$true] %s2367_s1 }
  0x1a   :  { %v2776_v5 = vld [vmem:[#allocation7 + $0x2e0] sm:$0xf]  ;;  %v3618_v6 = vld [vmem:[#allocation7 + $0x2ec] sm:$0xf0]  ;;  %v2649_v7 = vor.u32 %v3586_v4, %v2648_v2  ;;  %s2365_s10 = sshll.u32 %s3982_s9, 4  ;;  %s2366_s10 = int_to_ptr.vmem [resolvable:$true] %s2365_s10 }
  0x1b   :  { %v2777_v8 = vor.u32 %v3618_v6, %v2776_v5  ;;  %v2904_v9 = vld [vmem:[#allocation7 + $0x3e0] sm:$0xf]  ;;  %v3650_v10 = vld [vmem:[#allocation7 + $0x3ec] sm:$0xf0]  ;;  %1301 = vmatpush.bf16.msra.mxu0 %v2521_v3 }
  0x1c   :  { %v2504_v11 = vld [vmem:[#allocation7 + $0xc0] sm:$0xf]  ;;  %v2905_v12 = vor.u32 %v3650_v10, %v2904_v9  ;;  %v3550_v13 = vld [vmem:[#allocation7 + $0xcc] sm:$0xf0]  ;;  %1315 = vmatpush.bf16.msra.mxu1 %v2649_v7 }
  0x1d   :  { %v2632_v14 = vld [vmem:[#allocation7 + $0x1c0] sm:$0xf]  ;;  %v3582_v15 = vld [vmem:[#allocation7 + $0x1cc] sm:$0xf0]  ;;  %1329 = vmatpush.bf16.msra.mxu2 %v2777_v8  ;;  %v2505_v16 = vor.u32 %v3550_v13, %v2504_v11 }
  0x1e   :  { %v2633_v17 = vor.u32 %v3582_v15, %v2632_v14  ;;  %v2760_v18 = vld [vmem:[#allocation7 + $0x2c0] sm:$0xf]  ;;  %v3614_v19 = vld [vmem:[#allocation7 + $0x2cc] sm:$0xf0]  ;;  %1343 = vmatpush.bf16.msra.mxu3 %v2905_v12 }
  0x1f   :  { %v2888_v20 = vld [vmem:[#allocation7 + $0x3c0] sm:$0xf]  ;;  %v2761_v21 = vor.u32 %v3614_v19, %v2760_v18  ;;  %v3646_v22 = vld [vmem:[#allocation7 + $0x3cc] sm:$0xf0]  ;;  %1302 = vmatpush.bf16.msra.mxu0 %v2505_v16 }
  0x20   :  { %v2488_v23 = vld [vmem:[#allocation7 + $0xa0] sm:$0xf]  ;;  %v3546_v24 = vld [vmem:[#allocation7 + $0xac] sm:$0xf0]  ;;  %v2889_v25 = vor.u32 %v3646_v22, %v2888_v20  ;;  %1316 = vmatpush.bf16.msra.mxu1 %v2633_v17 }
  0x21   :  { %v2616_v26 = vld [vmem:[#allocation7 + $0x1a0] sm:$0xf]  ;;  %v3578_v27 = vld [vmem:[#allocation7 + $0x1ac] sm:$0xf0]  ;;  %v2489_v29 = vor.u32 %v3546_v24, %v2488_v23  ;;  %1330 = vmatpush.bf16.msra.mxu2 %v2761_v21 }
  0x22   :  { %v2744_v28 = vld [vmem:[#allocation7 + $0x2a0] sm:$0xf]  ;;  %v3610_v30 = vld [vmem:[#allocation7 + $0x2ac] sm:$0xf0]  ;;  %v2617_v33 = vor.u32 %v3578_v27, %v2616_v26  ;;  %1344 = vmatpush.bf16.msra.mxu3 %v2889_v25 }
  0x23   :  { %v2872_v31 = vld [vmem:[#allocation7 + $0x3a0] sm:$0xf]  ;;  %v3642_v32 = vld [vmem:[#allocation7 + $0x3ac] sm:$0xf0]  ;;  %v2745_v34 = vor.u32 %v3610_v30, %v2744_v28  ;;  %1303 = vmatpush.bf16.msra.mxu0 %v2489_v29 }
  0x24   :  { %v2472_v35 = vld [vmem:[#allocation7 + $0x80] sm:$0xf]  ;;  %v3542_v36 = vld [vmem:[#allocation7 + $0x8c] sm:$0xf0]  ;;  %v2873_v38 = vor.u32 %v3642_v32, %v2872_v31  ;;  %1317 = vmatpush.bf16.msra.mxu1 %v2617_v33  ;;  %v3552_v33 = vld [vmem:[#allocation7 + $0xe4] sm:$0xf] }
  0x25   :  { %v2600_v37 = vld [vmem:[#allocation7 + $0x180] sm:$0xf]  ;;  %v3574_v39 = vld [vmem:[#allocation7 + $0x18c] sm:$0xf0]  ;;  %v2473_v44 = vor.u32 %v3542_v36, %v2472_v35  ;;  %1331 = vmatpush.bf16.msra.mxu2 %v2745_v34  ;;  %v2522_v34 = vld [vmem:[#allocation7 + $0xf0] sm:$0xf0] }
  0x26   :  { %v2728_v40 = vld [vmem:[#allocation7 + $0x280] sm:$0xf]  ;;  %v3606_v41 = vld [vmem:[#allocation7 + $0x28c] sm:$0xf0]  ;;  %v2601_v45 = vor.u32 %v3574_v39, %v2600_v37  ;;  %1345 = vmatpush.bf16.msra.mxu3 %v2873_v38  ;;  %v3584_v37 = vld [vmem:[#allocation7 + $0x1e4] sm:$0xf] }
  0x27   :  { %v2856_v42 = vld [vmem:[#allocation7 + $0x380] sm:$0xf]  ;;  %v3638_v43 = vld [vmem:[#allocation7 + $0x38c] sm:$0xf0]  ;;  %v2729_v46 = vor.u32 %v3606_v41, %v2728_v40  ;;  %1304 = vmatpush.bf16.msra.mxu0 %v2473_v44  ;;  %v2650_v38 = vld [vmem:[#allocation7 + $0x1f0] sm:$0xf0] }
  0x28   :  { %v2456_v47 = vld [vmem:[#allocation7 + $0x60] sm:$0xf]  ;;  %v3538_v48 = vld [vmem:[#allocation7 + $0x6c] sm:$0xf0]  ;;  %v2857_v50 = vor.u32 %v3638_v43, %v2856_v42  ;;  %1318 = vmatpush.bf16.msra.mxu1 %v2601_v45  ;;  %v2525_v43 = vor.u32 %v3552_v33, %v2522_v34  ;;  %v2458_v33 = vld [vmem:[#allocation7 + $0x70] sm:$0xf0] }
  0x29   :  { %v2584_v49 = vld [vmem:[#allocation7 + $0x160] sm:$0xf]  ;;  %v3570_v51 = vld [vmem:[#allocation7 + $0x16c] sm:$0xf0]  ;;  %v2457_v56 = vor.u32 %v3538_v48, %v2456_v47  ;;  %1332 = vmatpush.bf16.msra.mxu2 %v2729_v46  ;;  %v2653_v47 = vor.u32 %v3584_v37, %v2650_v38  ;;  %v3548_v48 = vld [vmem:[#allocation7 + $0xc4] sm:$0xf] }
  0x2a   :  { %v2712_v52 = vld [vmem:[#allocation7 + $0x260] sm:$0xf]  ;;  %v3602_v53 = vld [vmem:[#allocation7 + $0x26c] sm:$0xf0]  ;;  %v2585_v57 = vor.u32 %v3570_v51, %v2584_v49  ;;  %1346 = vmatpush.bf16.msra.mxu3 %v2857_v50  ;;  %v2506_v49 = vld [vmem:[#allocation7 + $0xd0] sm:$0xf0] }
  0x2b   :  { %v2840_v54 = vld [vmem:[#allocation7 + $0x360] sm:$0xf]  ;;  %v3634_v55 = vld [vmem:[#allocation7 + $0x36c] sm:$0xf0]  ;;  %v2713_v58 = vor.u32 %v3602_v53, %v2712_v52  ;;  %1305 = vmatpush.bf16.msra.mxu0 %v2457_v56  ;;  %v3580_v50 = vld [vmem:[#allocation7 + $0x1c4] sm:$0xf] }
  0x2c   :  { %v2440_v59 = vld [vmem:[#allocation7 + $0x40] sm:$0xf]  ;;  %v3534_v60 = vld [vmem:[#allocation7 + $0x4c] sm:$0xf0]  ;;  %v2841_v62 = vor.u32 %v3634_v55, %v2840_v54  ;;  %1319 = vmatpush.bf16.msra.mxu1 %v2585_v57  ;;  %v2634_v51 = vld [vmem:[#allocation7 + $0x1d0] sm:$0xf0] }
  0x2d   :  { %v2568_v61 = vld [vmem:[#allocation7 + $0x140] sm:$0xf]  ;;  %v3566_v63 = vld [vmem:[#allocation7 + $0x14c] sm:$0xf0]  ;;  %v2441_v4 = vor.u32 %v3534_v60, %v2440_v59  ;;  %1333 = vmatpush.bf16.msra.mxu2 %v2713_v58  ;;  %v3521_v53 = vld [vmem:[#allocation4 + $0x14] sm:$0xf0]  ;;  %v2509_v59 = vor.u32 %v3548_v48, %v2506_v49 }
  0x2e   :  { %v2696_v0 = vld [vmem:[#allocation7 + $0x240] sm:$0xf]  ;;  %v3598_v1 = vld [vmem:[#allocation7 + $0x24c] sm:$0xf0]  ;;  %v2569_v5 = vor.u32 %v3566_v63, %v2568_v61  ;;  %1347 = vmatpush.bf16.msra.mxu3 %v2841_v62  ;;  %v3544_v62 = vld [vmem:[#allocation7 + $0xa4] sm:$0xf]  ;;  %v2637_v63 = vor.u32 %v3580_v50, %v2634_v51 }
  0x2f   :  { %v2824_v2 = vld [vmem:[#allocation7 + $0x340] sm:$0xf]  ;;  %v3630_v3 = vld [vmem:[#allocation7 + $0x34c] sm:$0xf0]  ;;  %v2697_v6 = vor.u32 %v3598_v1, %v2696_v0  ;;  %1306 = vmatpush.bf16.msra.mxu0 %v2441_v4  ;;  %v2490_v0 = vld [vmem:[#allocation7 + $0xb0] sm:$0xf0] }
  0x30   :  { %v2424_v7 = vld [vmem:[#allocation7 + $0x20] sm:$0xf]  ;;  %v3530_v8 = vld [vmem:[#allocation7 + $0x2c] sm:$0xf0]  ;;  %v2825_v10 = vor.u32 %v3630_v3, %v2824_v2  ;;  %1320 = vmatpush.bf16.msra.mxu1 %v2569_v5  ;;  %v3518_v1 = vld [vmem:[#allocation4 + $0x4] sm:$0xf] }
  0x31   :  { %v2552_v9 = vld [vmem:[#allocation7 + $0x120] sm:$0xf]  ;;  %v3562_v11 = vld [vmem:[#allocation7 + $0x12c] sm:$0xf0]  ;;  %v2425_v16 = vor.u32 %v3530_v8, %v2424_v7  ;;  %1334 = vmatpush.bf16.msra.mxu2 %v2697_v6  ;;  %v2386_v2 = vld [vmem:[#allocation4 + $0x18] sm:$0xf0] }
  0x32   :  { %v2680_v12 = vld [vmem:[#allocation7 + $0x220] sm:$0xf]  ;;  %v3594_v13 = vld [vmem:[#allocation7 + $0x22c] sm:$0xf0]  ;;  %v2553_v19 = vor.u32 %v3562_v11, %v2552_v9  ;;  %1348 = vmatpush.bf16.msra.mxu3 %v2825_v10  ;;  %v3576_v3 = vld [vmem:[#allocation7 + $0x1a4] sm:$0xf]  ;;  %v4044_v6 = vor.u32 %v3518_v1, %v2386_v2 }
  0x33   :  { %v2808_v14 = vld [vmem:[#allocation7 + $0x320] sm:$0xf]  ;;  %v3626_v15 = vld [vmem:[#allocation7 + $0x32c] sm:$0xf0]  ;;  %v2681_v20 = vor.u32 %v3594_v13, %v2680_v12  ;;  %1307 = vmatpush.bf16.msra.mxu0 %v2425_v16  ;;  %v2618_v4 = vld [vmem:[#allocation7 + $0x1b0] sm:$0xf0]  ;;  %v2493_v12 = vor.u32 %v3544_v62, %v2490_v0 }
  0x34   :  { %v2408_v17 = vld [vmem:[#allocation7] sm:$0xf]  ;;  %v3526_v18 = vld [vmem:[#allocation7 + $0xc] sm:$0xf0]  ;;  %v2809_v24 = vor.u32 %v3626_v15, %v2808_v14  ;;  %1321 = vmatpush.bf16.msra.mxu1 %v2553_v19  ;;  %v3540_v13 = vld [vmem:[#allocation7 + $0x84] sm:$0xf]  ;;  %v2621_v16 = vor.u32 %v3576_v3, %v2618_v4 }
  0x35   :  { %v2536_v21 = vld [vmem:[#allocation7 + $0x100] sm:$0xf]  ;;  %v3558_v22 = vld [vmem:[#allocation7 + $0x10c] sm:$0xf0]  ;;  %v2409_v31 = vor.u32 %v3526_v18, %v2408_v17  ;;  %1335 = vmatpush.bf16.msra.mxu2 %v2681_v20  ;;  %v2474_v14 = vld [vmem:[#allocation7 + $0x90] sm:$0xf0] }
  0x36   :  { %v2664_v23 = vld [vmem:[#allocation7 + $0x200] sm:$0xf]  ;;  %v3590_v25 = vld [vmem:[#allocation7 + $0x20c] sm:$0xf0]  ;;  %v2537_v35 = vor.u32 %v3558_v22, %v2536_v21  ;;  %1349 = vmatpush.bf16.msra.mxu3 %v2809_v24  ;;  %v2392_v15 = vld [vmem:[#allocation4 + $0x8] sm:$0xf] }
  0x37   :  { %v2792_v26 = vld [vmem:[#allocation7 + $0x300] sm:$0xf]  ;;  %v3622_v27 = vld [vmem:[#allocation7 + $0x30c] sm:$0xf0]  ;;  %v2665_v36 = vor.u32 %v3590_v25, %v2664_v23  ;;  %1308 = vmatpush.bf16.msra.mxu0 %v2409_v31  ;;  %v3519_v18 = vld [vmem:[#allocation4 + $0xc] sm:$0xf] }
  0x38   :  { %v3032_v28 = vld [vmem:[#allocation7 + $0x4e0] sm:$0xf]  ;;  %v3682_v29 = vld [vmem:[#allocation7 + $0x4ec] sm:$0xf0]  ;;  %v2793_v39 = vor.u32 %v3622_v27, %v2792_v26  ;;  %1322 = vmatpush.bf16.msra.mxu1 %v2537_v35  ;;  %v2394_v19 = vld [vmem:[#allocation4 + $0x20] sm:$0xf0]  ;;  %v2477_v26 = vor.u32 %v3540_v13, %v2474_v14 }
  0x39   :  { %v3160_v30 = vld [vmem:[#allocation7 + $0x5e0] sm:$0xf]  ;;  %v3714_v32 = vld [vmem:[#allocation7 + $0x5ec] sm:$0xf0]  ;;  %v3033_v40 = vor.u32 %v3682_v29, %v3032_v28  ;;  %1336 = vmatpush.bf16.msra.mxu2 %v2665_v36  ;;  %v3572_v20 = vld [vmem:[#allocation7 + $0x184] sm:$0xf]  ;;  %v4049_v23 = vor.u32 %v3519_v18, %v2394_v19 }
  0x3a   :  { %v3016_v41 = vld [vmem:[#allocation7 + $0x4c0] sm:$0xf]  ;;  %v3161_v42 = vor.u32 %v3714_v32, %v3160_v30  ;;  %v3678_v44 = vld [vmem:[#allocation7 + $0x4cc] sm:$0xf0]  ;;  %1350 = vmatpush.bf16.msra.mxu3 %v2793_v39  ;;  %v2602_v21 = vld [vmem:[#allocation7 + $0x190] sm:$0xf0] }
  0x3b   :  { %v3144_v45 = vld [vmem:[#allocation7 + $0x5c0] sm:$0xf]  ;;  %v3710_v46 = vld [vmem:[#allocation7 + $0x5cc] sm:$0xf0]  ;;  %1357 = vmatpush.bf16.msrb.mxu0 %v3033_v40  ;;  %v3017_v54 = vor.u32 %v3678_v44, %v3016_v41  ;;  %1323 = vmatmul.bf16.vlgmr.msra.gmra.mxu1 %v4044_v6  ;;  %v2605_v30 = vor.u32 %v3572_v20, %v2602_v21  ;;  %v3536_v32 = vld [vmem:[#allocation7 + $0x64] sm:$0xf] }
  0x3c   :  { %v2384_v52 = vld [vmem:[#allocation4] sm:$0xf]  ;;  %v3000_v55 = vld [vmem:[#allocation7 + $0x4a0] sm:$0xf]  ;;  %1371 = vmatpush.bf16.msrb.mxu1 %v3161_v42  ;;  %v3145_v58 = vor.u32 %v3710_v46, %v3144_v45  ;;  %v3568_v34 = vld [vmem:[#allocation7 + $0x164] sm:$0xf]  ;;  %v2461_v38 = vor.u32 %v3536_v32, %v2458_v33 }
  0x3d   :  { %v3674_v56 = vld [vmem:[#allocation7 + $0x4ac] sm:$0xf0]  ;;  %v4041_v57 = vor.u32 %v3521_v53, %v2384_v52  ;;  %1385 = vmatpush.bf16.msrb.mxu2 %v2525_v43  ;;  %v3128_v60 = vld [vmem:[#allocation7 + $0x5a0] sm:$0xf]  ;;  %v2586_v35 = vld [vmem:[#allocation7 + $0x170] sm:$0xf0]  ;;  %1351 = vmatmul.bf16.vlgmr.msra.gmra.mxu3 %v4049_v23 }
  0x3e   :  { %v3706_v61 = vld [vmem:[#allocation7 + $0x5ac] sm:$0xf0]  ;;  %1399 = vmatpush.bf16.msrb.mxu3 %v2653_v47  ;;  %v2984_v5 = vld [vmem:[#allocation7 + $0x480] sm:$0xf]  ;;  %v3001_v7 = vor.u32 %v3674_v56, %v3000_v55  ;;  %v2589_v42 = vor.u32 %v3568_v34, %v2586_v35  ;;  %v3532_v44 = vld [vmem:[#allocation7 + $0x44] sm:$0xf] }
  0x3f   :  { %1309 = vmatmul.bf16.vlgmr.msra.gmra.mxu0 %v4041_v57  ;;  %v3670_v8 = vld [vmem:[#allocation7 + $0x48c] sm:$0xf0]  ;;  %v3112_v9 = vld [vmem:[#allocation7 + $0x580] sm:$0xf]  ;;  %v3129_v11 = vor.u32 %v3706_v61, %v3128_v60  ;;  %v2442_v45 = vld [vmem:[#allocation7 + $0x50] sm:$0xf0] }
  0x40   :  { %1358 = vmatpush.bf16.msrb.mxu0 %v3017_v54  ;;  %v3702_v10 = vld [vmem:[#allocation7 + $0x58c] sm:$0xf0]  ;;  %1372 = vmatpush.bf16.msrb.mxu1 %v3145_v58  ;;  %v2985_v24 = vor.u32 %v3670_v8, %v2984_v5  ;;  %v2968_v27 = vld [vmem:[#allocation7 + $0x460] sm:$0xf]  ;;  %v3564_v46 = vld [vmem:[#allocation7 + $0x144] sm:$0xf]  ;;  %v2445_v50 = vor.u32 %v3532_v44, %v2442_v45 }
  0x41   :  { %1386 = vmatpush.bf16.msrb.mxu2 %v2509_v59  ;;  %v3522_v17 = vld [vmem:[#allocation4 + $0x1c] sm:$0xf0]  ;;  %v3113_v25 = vor.u32 %v3702_v10, %v3112_v9  ;;  %v3096_v29 = vld [vmem:[#allocation7 + $0x560] sm:$0xf]  ;;  %v2570_v47 = vld [vmem:[#allocation7 + $0x150] sm:$0xf0] }
  0x42   :  { %1400 = vmatpush.bf16.msrb.mxu3 %v2637_v63  ;;  %v4047_v22 = vor.u32 %v3522_v17, %v2392_v15  ;;  %v3666_v28 = vld [vmem:[#allocation7 + $0x46c] sm:$0xf0]  ;;  %v2952_v39 = vld [vmem:[#allocation7 + $0x440] sm:$0xf]  ;;  %v2573_v54 = vor.u32 %v3564_v46, %v2570_v47  ;;  %v3528_v56 = vld [vmem:[#allocation7 + $0x24] sm:$0xf] }
  0x43   :  { %v3698_v31 = vld [vmem:[#allocation7 + $0x56c] sm:$0xf0]  ;;  %v2969_v36 = vor.u32 %v3666_v28, %v2968_v27  ;;  %v3080_v41 = vld [vmem:[#allocation7 + $0x540] sm:$0xf]  ;;  %v2426_v58 = vld [vmem:[#allocation7 + $0x30] sm:$0xf0] }
  0x44   :  { %1359 = vmatpush.bf16.msrb.mxu0 %v3001_v7  ;;  %1373 = vmatpush.bf16.msrb.mxu1 %v3129_v11  ;;  %v3097_v37 = vor.u32 %v3698_v31, %v3096_v29  ;;  %v3662_v40 = vld [vmem:[#allocation7 + $0x44c] sm:$0xf0]  ;;  %v2936_v51 = vld [vmem:[#allocation7 + $0x420] sm:$0xf]  ;;  %v3560_v59 = vld [vmem:[#allocation7 + $0x124] sm:$0xf]  ;;  %v2429_v2 = vor.u32 %v3528_v56, %v2426_v58 }
  0x45   :  { %1387 = vmatpush.bf16.msrb.mxu2 %v2493_v12  ;;  %v3694_v43 = vld [vmem:[#allocation7 + $0x54c] sm:$0xf0]  ;;  %v2953_v48 = vor.u32 %v3662_v40, %v2952_v39  ;;  %v3064_v53 = vld [vmem:[#allocation7 + $0x520] sm:$0xf]  ;;  %v2554_v60 = vld [vmem:[#allocation7 + $0x130] sm:$0xf0] }
  0x46   :  { %1401 = vmatpush.bf16.msrb.mxu3 %v2621_v16  ;;  %1337 = vmatmul.bf16.vlgmr.msra.gmra.mxu2 %v4047_v22  ;;  %v3081_v49 = vor.u32 %v3694_v43, %v3080_v41  ;;  %v3658_v52 = vld [vmem:[#allocation7 + $0x42c] sm:$0xf0]  ;;  %v2920_v62 = vld [vmem:[#allocation7 + $0x400] sm:$0xf]  ;;  %v3524_v4 = vld [vmem:[#allocation7 + $0x4] sm:$0xf]  ;;  %v2557_v7 = vor.u32 %v3560_v59, %v2554_v60 }
  0x47   :  { %v3690_v55 = vld [vmem:[#allocation7 + $0x52c] sm:$0xf0]  ;;  %v2937_v61 = vor.u32 %v3658_v52, %v2936_v51  ;;  %v3048_v0 = vld [vmem:[#allocation7 + $0x500] sm:$0xf]  ;;  %v2410_v5 = vld [vmem:[#allocation7 + $0x10] sm:$0xf0] }
  0x48   :  { %1360 = vmatpush.bf16.msrb.mxu0 %v2985_v24  ;;  %1374 = vmatpush.bf16.msrb.mxu1 %v3113_v25  ;;  %v3654_v63 = vld [vmem:[#allocation7 + $0x40c] sm:$0xf0]  ;;  %v3065_v1 = vor.u32 %v3690_v55, %v3064_v53  ;;  %v3556_v8 = vld [vmem:[#allocation7 + $0x104] sm:$0xf]  ;;  %v2538_v9 = vld [vmem:[#allocation7 + $0x110] sm:$0xf0]  ;;  %v2413_v19 = vor.u32 %v3524_v4, %v2410_v5 }
  0x49   :  { %1388 = vmatpush.bf16.msrb.mxu2 %v2477_v26  ;;  %v3686_v3 = vld [vmem:[#allocation7 + $0x50c] sm:$0xf0]  ;;  %v3616_v10 = vld [vmem:[#allocation7 + $0x2e4] sm:$0xf]  ;;  %v2778_v11 = vld [vmem:[#allocation7 + $0x2f0] sm:$0xf0]  ;;  %v2921_v14 = vor.u32 %v3654_v63, %v2920_v62  ;;  %v2541_v25 = vor.u32 %v3556_v8, %v2538_v9 }
  0x4a   :  { %1402 = vmatpush.bf16.msrb.mxu3 %v2605_v30  ;;  %v3648_v12 = vld [vmem:[#allocation7 + $0x3e4] sm:$0xf]  ;;  %v2906_v13 = vld [vmem:[#allocation7 + $0x3f0] sm:$0xf0]  ;;  %v3049_v18 = vor.u32 %v3686_v3, %v3048_v0  ;;  %v2400_v21 = vld [vmem:[#allocation4 + $0x10] sm:$0xf]  ;;  %v2781_v26 = vor.u32 %v3616_v10, %v2778_v11 }
  0x4b   :  { %v3680_v15 = vld [vmem:[#allocation7 + $0x4e4] sm:$0xf]  ;;  %v3034_v16 = vld [vmem:[#allocation7 + $0x4f0] sm:$0xf0]  ;;  %v3523_v24 = vld [vmem:[#allocation4 + $0x24] sm:$0xf0]  ;;  %v2909_v29 = vor.u32 %v3648_v12, %v2906_v13 }
  0x4c   :  { %1361 = vmatpush.bf16.msrb.mxu0 %v2969_v36  ;;  %1375 = vmatpush.bf16.msrb.mxu1 %v3097_v37  ;;  %v3712_v17 = vld [vmem:[#allocation7 + $0x5e4] sm:$0xf]  ;;  %v3162_v20 = vld [vmem:[#allocation7 + $0x5f0] sm:$0xf0]  ;;  %v2402_v28 = vld [vmem:[#allocation4 + $0x28] sm:$0xf0]  ;;  %v3037_v30 = vor.u32 %v3680_v15, %v3034_v16  ;;  %v4053_v35 = vor.u32 %v3523_v24, %v2400_v21 }
  0x4d   :  { %1389 = vmatpush.bf16.msrb.mxu2 %v2461_v38  ;;  %v3520_v27 = vld [vmem:[#allocation4 + $0x14] sm:$0xf]  ;;  %v2762_v32 = vld [vmem:[#allocation7 + $0x2d0] sm:$0xf0]  ;;  %v3165_v34 = vor.u32 %v3712_v17, %v3162_v20 }
  0x4e   :  { %1403 = vmatpush.bf16.msrb.mxu3 %v2589_v42  ;;  %v3612_v31 = vld [vmem:[#allocation7 + $0x2c4] sm:$0xf]  ;;  %v2890_v36 = vld [vmem:[#allocation7 + $0x3d0] sm:$0xf0]  ;;  %v4055_v39 = vor.u32 %v3520_v27, %v2402_v28 }
  0x4f   :  { %v3644_v33 = vld [vmem:[#allocation7 + $0x3c4] sm:$0xf]  ;;  %v3018_v38 = vld [vmem:[#allocation7 + $0x4d0] sm:$0xf0]  ;;  %v2765_v42 = vor.u32 %v3612_v31, %v2762_v32 }
  0x50   :  { %1362 = vmatpush.bf16.msrb.mxu0 %v2953_v48  ;;  %1376 = vmatpush.bf16.msrb.mxu1 %v3081_v49  ;;  %v3676_v37 = vld [vmem:[#allocation7 + $0x4c4] sm:$0xf]  ;;  %v3146_v41 = vld [vmem:[#allocation7 + $0x5d0] sm:$0xf0]  ;;  %v2893_v43 = vor.u32 %v3644_v33, %v2890_v36 }
  0x51   :  { %1390 = vmatpush.bf16.msrb.mxu2 %v2445_v50  ;;  %v3708_v40 = vld [vmem:[#allocation7 + $0x5c4] sm:$0xf]  ;;  %v3021_v44 = vor.u32 %v3676_v37, %v3018_v38  ;;  %v2746_v46 = vld [vmem:[#allocation7 + $0x2b0] sm:$0xf0] }
  0x52   :  { %1404 = vmatpush.bf16.msrb.mxu3 %v2573_v54  ;;  %v3608_v45 = vld [vmem:[#allocation7 + $0x2a4] sm:$0xf]  ;;  %v3149_v48 = vor.u32 %v3708_v40, %v3146_v41  ;;  %v2874_v49 = vld [vmem:[#allocation7 + $0x3b0] sm:$0xf0] }
  0x53   :  { %v3640_v47 = vld [vmem:[#allocation7 + $0x3a4] sm:$0xf]  ;;  %v3002_v51 = vld [vmem:[#allocation7 + $0x4b0] sm:$0xf0]  ;;  %v2749_v54 = vor.u32 %v3608_v45, %v2746_v46 }
  0x54   :  { %1363 = vmatpush.bf16.msrb.mxu0 %v2937_v61  ;;  %1377 = vmatpush.bf16.msrb.mxu1 %v3065_v1  ;;  %v3672_v50 = vld [vmem:[#allocation7 + $0x4a4] sm:$0xf]  ;;  %v3130_v53 = vld [vmem:[#allocation7 + $0x5b0] sm:$0xf0]  ;;  %v2877_v55 = vor.u32 %v3640_v47, %v2874_v49 }
  0x55   :  { %1391 = vmatpush.bf16.msrb.mxu2 %v2429_v2  ;;  %v3704_v52 = vld [vmem:[#allocation7 + $0x5a4] sm:$0xf]  ;;  %v3005_v56 = vor.u32 %v3672_v50, %v3002_v51  ;;  %v2730_v59 = vld [vmem:[#allocation7 + $0x290] sm:$0xf0] }
  0x56   :  { %1405 = vmatpush.bf16.msrb.mxu3 %v2557_v7  ;;  %v3604_v58 = vld [vmem:[#allocation7 + $0x284] sm:$0xf]  ;;  %v3133_v61 = vor.u32 %v3704_v52, %v3130_v53  ;;  %v2858_v62 = vld [vmem:[#allocation7 + $0x390] sm:$0xf0] }
  0x57   :  { %v3636_v60 = vld [vmem:[#allocation7 + $0x384] sm:$0xf]  ;;  %v2986_v0 = vld [vmem:[#allocation7 + $0x490] sm:$0xf0]  ;;  %v2733_v3 = vor.u32 %v3604_v58, %v2730_v59  ;;  %v3555_v58 = vld [vmem:[#allocation7 + $0xf4] sm:$0xf0] }
  0x58   :  { %1364 = vmatpush.bf16.msrb.mxu0 %v2921_v14  ;;  %1378 = vmatpush.bf16.msrb.mxu1 %v3049_v18  ;;  %v3668_v63 = vld [vmem:[#allocation7 + $0x484] sm:$0xf]  ;;  %v3114_v2 = vld [vmem:[#allocation7 + $0x590] sm:$0xf0]  ;;  %v2861_v4 = vor.u32 %v3636_v60, %v2858_v62  ;;  %v2656_v59 = vld [vmem:[#allocation7 + $0x1e8] sm:$0xf] }
  0x59   :  { %1392 = vmatpush.bf16.msrb.mxu2 %v2413_v19  ;;  %v3700_v1 = vld [vmem:[#allocation7 + $0x584] sm:$0xf]  ;;  %v2989_v5 = vor.u32 %v3668_v63, %v2986_v0  ;;  %v2714_v8 = vld [vmem:[#allocation7 + $0x270] sm:$0xf0]  ;;  %v2784_v62 = vld [vmem:[#allocation7 + $0x2e8] sm:$0xf] }
  0x5a   :  { %1406 = vmatpush.bf16.msrb.mxu3 %v2541_v25  ;;  %v3600_v7 = vld [vmem:[#allocation7 + $0x264] sm:$0xf]  ;;  %v3117_v10 = vor.u32 %v3700_v1, %v3114_v2  ;;  %v2842_v11 = vld [vmem:[#allocation7 + $0x370] sm:$0xf0]  ;;  %v3619_v63 = vld [vmem:[#allocation7 + $0x2f4] sm:$0xf0] }
  0x5b   :  { %1365 = vmatmul.bf16.vlgmr.msrb.gmra.mxu0 %v4053_v35  ;;  %1379 = vmatmul.bf16.vlgmr.msrb.gmra.mxu1 %v4055_v39  ;;  %v3632_v9 = vld [vmem:[#allocation7 + $0x364] sm:$0xf]  ;;  %v2970_v13 = vld [vmem:[#allocation7 + $0x470] sm:$0xf0]  ;;  %v2717_v16 = vor.u32 %v3600_v7, %v2714_v8  ;;  %v2912_v2 = vld [vmem:[#allocation7 + $0x3e8] sm:$0xf]  ;;  %v2785_v8 = vor.u32 %v3619_v63, %v2784_v62 }
  0x5c   :  { %1413 = vmatpush.bf16.msra.mxu0 %v2781_v26  ;;  %1427 = vmatpush.bf16.msra.mxu1 %v2909_v29  ;;  %v3664_v12 = vld [vmem:[#allocation7 + $0x464] sm:$0xf]  ;;  %v3098_v15 = vld [vmem:[#allocation7 + $0x570] sm:$0xf0]  ;;  %v2845_v17 = vor.u32 %v3632_v9, %v2842_v11  ;;  %v2512_v9 = vld [vmem:[#allocation7 + $0xc8] sm:$0xf] }
  0x5d   :  { %1441 = vmatpush.bf16.msra.mxu2 %v3037_v30  ;;  %1407 = vmatmul.bf16.vlgmr.msrb.gmra.mxu3 %v4044_v6  ;;  %v3696_v14 = vld [vmem:[#allocation7 + $0x564] sm:$0xf]  ;;  %v2973_v18 = vor.u32 %v3664_v12, %v2970_v13  ;;  %v2698_v20 = vld [vmem:[#allocation7 + $0x250] sm:$0xf0]  ;;  %v2640_v11 = vld [vmem:[#allocation7 + $0x1c8] sm:$0xf] }
  0x5e   :  { %1455 = vmatpush.bf16.msra.mxu3 %v3165_v34  ;;  %1393 = vmatmul.bf16.vlgmr.msrb.gmra.mxu2 %v4041_v57  ;;  %v3596_v19 = vld [vmem:[#allocation7 + $0x244] sm:$0xf]  ;;  %v3101_v24 = vor.u32 %v3696_v14, %v3098_v15  ;;  %v2826_v25 = vld [vmem:[#allocation7 + $0x350] sm:$0xf0]  ;;  %v3583_v13 = vld [vmem:[#allocation7 + $0x1d4] sm:$0xf0] }
  0x5f   :  { %v3628_v21 = vld [vmem:[#allocation7 + $0x344] sm:$0xf]  ;;  %v2954_v27 = vld [vmem:[#allocation7 + $0x450] sm:$0xf0]  ;;  %v2701_v30 = vor.u32 %v3596_v19, %v2698_v20  ;;  %v2768_v14 = vld [vmem:[#allocation7 + $0x2c8] sm:$0xf]  ;;  %v2641_v19 = vor.u32 %v3583_v13, %v2640_v11 }
  0x60   :  { %1414 = vmatpush.bf16.msra.mxu0 %v2765_v42  ;;  %1428 = vmatpush.bf16.msra.mxu1 %v2893_v43  ;;  %v3660_v26 = vld [vmem:[#allocation7 + $0x444] sm:$0xf]  ;;  %v3082_v29 = vld [vmem:[#allocation7 + $0x550] sm:$0xf0]  ;;  %v2829_v31 = vor.u32 %v3628_v21, %v2826_v25  ;;  %v3615_v15 = vld [vmem:[#allocation7 + $0x2d4] sm:$0xf0] }
  0x61   :  { %1442 = vmatpush.bf16.msra.mxu2 %v3021_v44  ;;  %v3692_v28 = vld [vmem:[#allocation7 + $0x544] sm:$0xf]  ;;  %v2957_v32 = vor.u32 %v3660_v26, %v2954_v27  ;;  %v2682_v34 = vld [vmem:[#allocation7 + $0x230] sm:$0xf0]  ;;  %v2769_v20 = vor.u32 %v3615_v15, %v2768_v14  ;;  %v2496_v21 = vld [vmem:[#allocation7 + $0xa8] sm:$0xf] }
  0x62   :  { %1456 = vmatpush.bf16.msra.mxu3 %v3149_v48  ;;  %v3592_v33 = vld [vmem:[#allocation7 + $0x224] sm:$0xf]  ;;  %v3085_v37 = vor.u32 %v3692_v28, %v3082_v29  ;;  %v2810_v38 = vld [vmem:[#allocation7 + $0x330] sm:$0xf0]  ;;  %v2624_v25 = vld [vmem:[#allocation7 + $0x1a8] sm:$0xf] }
  0x63   :  { %v3624_v36 = vld [vmem:[#allocation7 + $0x324] sm:$0xf]  ;;  %v2938_v41 = vld [vmem:[#allocation7 + $0x430] sm:$0xf0]  ;;  %v2685_v44 = vor.u32 %v3592_v33, %v2682_v34  ;;  %v3579_v27 = vld [vmem:[#allocation7 + $0x1b4] sm:$0xf0] }
  0x64   :  { %1415 = vmatpush.bf16.msra.mxu0 %v2749_v54  ;;  %1429 = vmatpush.bf16.msra.mxu1 %v2877_v55  ;;  %v3656_v40 = vld [vmem:[#allocation7 + $0x424] sm:$0xf]  ;;  %v3066_v43 = vld [vmem:[#allocation7 + $0x530] sm:$0xf0]  ;;  %v2813_v48 = vor.u32 %v3624_v36, %v2810_v38  ;;  %v2752_v28 = vld [vmem:[#allocation7 + $0x2a8] sm:$0xf]  ;;  %v2625_v33 = vor.u32 %v3579_v27, %v2624_v25 }
  0x65   :  { %1443 = vmatpush.bf16.msra.mxu2 %v3005_v56  ;;  %v3688_v42 = vld [vmem:[#allocation7 + $0x524] sm:$0xf]  ;;  %v2666_v46 = vld [vmem:[#allocation7 + $0x210] sm:$0xf0]  ;;  %v2941_v49 = vor.u32 %v3656_v40, %v2938_v41  ;;  %v2528_v56 = vld [vmem:[#allocation7 + $0xe8] sm:$0xf] }
  0x66   :  { %1457 = vmatpush.bf16.msra.mxu3 %v3133_v61  ;;  %v3588_v45 = vld [vmem:[#allocation7 + $0x204] sm:$0xf]  ;;  %v2794_v50 = vld [vmem:[#allocation7 + $0x310] sm:$0xf0]  ;;  %v3069_v53 = vor.u32 %v3688_v42, %v3066_v43  ;;  %v3587_v61 = vld [vmem:[#allocation7 + $0x1f4] sm:$0xf0] }
  0x67   :  { %v3620_v47 = vld [vmem:[#allocation7 + $0x304] sm:$0xf]  ;;  %v2922_v52 = vld [vmem:[#allocation7 + $0x410] sm:$0xf0]  ;;  %v2669_v60 = vor.u32 %v3588_v45, %v2666_v46  ;;  %v2657_v7 = vor.u32 %v3587_v61, %v2656_v59  ;;  %v3611_v29 = vld [vmem:[#allocation7 + $0x2b4] sm:$0xf0] }
  0x68   :  { %1416 = vmatpush.bf16.msra.mxu0 %v2733_v3  ;;  %1430 = vmatpush.bf16.msra.mxu1 %v2861_v4  ;;  %v3652_v51 = vld [vmem:[#allocation7 + $0x404] sm:$0xf]  ;;  %v3050_v55 = vld [vmem:[#allocation7 + $0x510] sm:$0xf0]  ;;  %v2797_v0 = vor.u32 %v3620_v47, %v2794_v50  ;;  %v3651_v3 = vld [vmem:[#allocation7 + $0x3f4] sm:$0xf0]  ;;  %v2753_v34 = vor.u32 %v3611_v29, %v2752_v28 }
  0x69   :  { %1444 = vmatpush.bf16.msra.mxu2 %v2989_v5  ;;  %v3684_v54 = vld [vmem:[#allocation7 + $0x504] sm:$0xf]  ;;  %v2925_v1 = vor.u32 %v3652_v51, %v2922_v52  ;;  %v2529_v5 = vor.u32 %v3555_v58, %v2528_v56  ;;  %v2913_v12 = vor.u32 %v3651_v3, %v2912_v2  ;;  %v2480_v36 = vld [vmem:[#allocation7 + $0x88] sm:$0xf]  ;;  %v3575_v41 = vld [vmem:[#allocation7 + $0x194] sm:$0xf0] }
  0x6a   :  { %1458 = vmatpush.bf16.msra.mxu3 %v3117_v10  ;;  %v3053_v4 = vor.u32 %v3684_v54, %v3050_v55  ;;  %v3551_v10 = vld [vmem:[#allocation7 + $0xd4] sm:$0xf0]  ;;  %v2608_v38 = vld [vmem:[#allocation7 + $0x188] sm:$0xf] }
  0x6b   :  { %v2736_v42 = vld [vmem:[#allocation7 + $0x288] sm:$0xf]  ;;  %v3607_v43 = vld [vmem:[#allocation7 + $0x294] sm:$0xf0]  ;;  %v2609_v47 = vor.u32 %v3575_v41, %v2608_v38  ;;  %v3553_v41 = vld [vmem:[#allocation7 + $0xec] sm:$0xf] }
  0x6c   :  { %1417 = vmatpush.bf16.msra.mxu0 %v2717_v16  ;;  %1431 = vmatpush.bf16.msra.mxu1 %v2845_v17  ;;  %v2896_v16 = vld [vmem:[#allocation7 + $0x3c8] sm:$0xf]  ;;  %v3647_v17 = vld [vmem:[#allocation7 + $0x3d4] sm:$0xf0] }
  0x6d   :  { %1445 = vmatpush.bf16.msra.mxu2 %v2973_v18  ;;  %v2513_v18 = vor.u32 %v3551_v10, %v2512_v9  ;;  %v2897_v26 = vor.u32 %v3647_v17, %v2896_v16  ;;  %v3639_v45 = vld [vmem:[#allocation7 + $0x394] sm:$0xf0]  ;;  %v2592_v51 = vld [vmem:[#allocation7 + $0x168] sm:$0xf] }
  0x6e   :  { %1459 = vmatpush.bf16.msra.mxu3 %v3101_v24  ;;  %v3547_v24 = vld [vmem:[#allocation7 + $0xb4] sm:$0xf0]  ;;  %v2720_v54 = vld [vmem:[#allocation7 + $0x268] sm:$0xf] }
  0x6f   :  { %v3539_v50 = vld [vmem:[#allocation7 + $0x74] sm:$0xf0]  ;;  %v2848_v56 = vld [vmem:[#allocation7 + $0x368] sm:$0xf] }
  0x70   :  { %1418 = vmatpush.bf16.msra.mxu0 %v2701_v30  ;;  %1432 = vmatpush.bf16.msra.mxu1 %v2829_v31  ;;  %v2880_v30 = vld [vmem:[#allocation7 + $0x3a8] sm:$0xf]  ;;  %v3643_v31 = vld [vmem:[#allocation7 + $0x3b4] sm:$0xf0] }
  0x71   :  { %1446 = vmatpush.bf16.msra.mxu2 %v2957_v32  ;;  %v2497_v32 = vor.u32 %v3547_v24, %v2496_v21  ;;  %v2881_v40 = vor.u32 %v3643_v31, %v2880_v30  ;;  %v3603_v55 = vld [vmem:[#allocation7 + $0x274] sm:$0xf0]  ;;  %v2448_v62 = vld [vmem:[#allocation7 + $0x48] sm:$0xf] }
  0x72   :  { %1460 = vmatpush.bf16.msra.mxu3 %v3085_v37  ;;  %v3543_v37 = vld [vmem:[#allocation7 + $0x94] sm:$0xf0]  ;;  %v2721_v61 = vor.u32 %v3603_v55, %v2720_v54  ;;  %v2704_v3 = vld [vmem:[#allocation7 + $0x248] sm:$0xf] }
  0x73   :  { %v2481_v46 = vor.u32 %v3543_v37, %v2480_v36  ;;  %v3635_v58 = vld [vmem:[#allocation7 + $0x374] sm:$0xf0]  ;;  %v2432_v11 = vld [vmem:[#allocation7 + $0x28] sm:$0xf] }
  0x74   :  { %1419 = vmatpush.bf16.msra.mxu0 %v2685_v44  ;;  %1433 = vmatpush.bf16.msra.mxu1 %v2813_v48  ;;  %v2864_v44 = vld [vmem:[#allocation7 + $0x388] sm:$0xf]  ;;  %v2737_v48 = vor.u32 %v3607_v43, %v2736_v42  ;;  %v3535_v63 = vld [vmem:[#allocation7 + $0x54] sm:$0xf0]  ;;  %v2530_v42 = vld [vmem:[#allocation7 + $0xf8] sm:$0xf0] }
  0x75   :  { %1447 = vmatpush.bf16.msra.mxu2 %v2941_v49  ;;  %v2464_v49 = vld [vmem:[#allocation7 + $0x68] sm:$0xf]  ;;  %v2865_v52 = vor.u32 %v3639_v45, %v2864_v44  ;;  %v3567_v2 = vld [vmem:[#allocation7 + $0x154] sm:$0xf0]  ;;  %v3585_v45 = vld [vmem:[#allocation7 + $0x1ec] sm:$0xf] }
  0x76   :  { %1461 = vmatpush.bf16.msra.mxu3 %v3069_v53  ;;  %v3571_v53 = vld [vmem:[#allocation7 + $0x174] sm:$0xf0]  ;;  %v2465_v59 = vor.u32 %v3539_v50, %v2464_v49  ;;  %v2560_v13 = vld [vmem:[#allocation7 + $0x128] sm:$0xf]  ;;  %v2533_v50 = vor.u32 %v3553_v41, %v2530_v42 }
  0x77   :  { %v3563_v15 = vld [vmem:[#allocation7 + $0x134] sm:$0xf0]  ;;  %v2688_v16 = vld [vmem:[#allocation7 + $0x228] sm:$0xf] }
  0x78   :  { %1420 = vmatpush.bf16.msra.mxu0 %v2669_v60  ;;  %1434 = vmatpush.bf16.msra.mxu1 %v2797_v0  ;;  %v2593_v60 = vor.u32 %v3571_v53, %v2592_v51  ;;  %v2576_v0 = vld [vmem:[#allocation7 + $0x148] sm:$0xf]  ;;  %v3595_v17 = vld [vmem:[#allocation7 + $0x234] sm:$0xf0]  ;;  %v2561_v25 = vor.u32 %v3563_v15, %v2560_v13 }
  0x79   :  { %1448 = vmatpush.bf16.msra.mxu2 %v2925_v1  ;;  %v2849_v1 = vor.u32 %v3635_v58, %v2848_v56  ;;  %v2577_v9 = vor.u32 %v3567_v2, %v2576_v0  ;;  %v2416_v21 = vld [vmem:[#allocation7 + $0x8] sm:$0xf]  ;;  %v3527_v24 = vld [vmem:[#allocation7 + $0x14] sm:$0xf0]  ;;  %v3549_v56 = vld [vmem:[#allocation7 + $0xcc] sm:$0xf] }
  0x7a   :  { %1462 = vmatpush.bf16.msra.mxu3 %v3053_v4  ;;  %v3599_v4 = vld [vmem:[#allocation7 + $0x254] sm:$0xf0]  ;;  %v2544_v27 = vld [vmem:[#allocation7 + $0x108] sm:$0xf]  ;;  %v2417_v38 = vor.u32 %v3527_v24, %v2416_v21  ;;  %v2514_v58 = vld [vmem:[#allocation7 + $0xd8] sm:$0xf0] }
  0x7b   :  { %1421 = vmatmul.bf16.vlgmr.msra.gmra.mxu0 %v4047_v22  ;;  %1435 = vmatmul.bf16.vlgmr.msra.gmra.mxu1 %v4049_v23  ;;  %v2705_v10 = vor.u32 %v3599_v4, %v2704_v3  ;;  %v3559_v28 = vld [vmem:[#allocation7 + $0x114] sm:$0xf0]  ;;  %v2672_v29 = vld [vmem:[#allocation7 + $0x208] sm:$0xf]  ;;  %v2610_v21 = vld [vmem:[#allocation7 + $0x198] sm:$0xf0] }
  0x7c   :  { %1469 = vmatpush.bf16.msrb.mxu0 %v2529_v5  ;;  %1483 = vmatpush.bf16.msrb.mxu1 %v2657_v7  ;;  %v2832_v5 = vld [vmem:[#allocation7 + $0x348] sm:$0xf]  ;;  %v3631_v7 = vld [vmem:[#allocation7 + $0x354] sm:$0xf0]  ;;  %v2545_v43 = vor.u32 %v3559_v28, %v2544_v27 }
  0x7d   :  { %1497 = vmatpush.bf16.msrb.mxu2 %v2785_v8  ;;  %1463 = vmatmul.bf16.vlgmr.msra.gmra.mxu3 %v4055_v39  ;;  %v2449_v8 = vor.u32 %v3535_v63, %v2448_v62  ;;  %v2833_v14 = vor.u32 %v3631_v7, %v2832_v5  ;;  %v3591_v31 = vld [vmem:[#allocation7 + $0x214] sm:$0xf0]  ;;  %v3168_v37 = vld [vmem:[#allocation7 + $0x5e8] sm:$0xf]  ;;  %v2517_v63 = vor.u32 %v3549_v56, %v2514_v58  ;;  %v3545_v5 = vld [vmem:[#allocation7 + $0xac] sm:$0xf] }
  0x7e   :  { %1511 = vmatpush.bf16.msrb.mxu3 %v2913_v12  ;;  %1449 = vmatmul.bf16.vlgmr.msra.gmra.mxu2 %v4053_v35  ;;  %v3531_v12 = vld [vmem:[#allocation7 + $0x34] sm:$0xf0]  ;;  %v2673_v44 = vor.u32 %v3591_v31, %v2672_v29  ;;  %v3024_v51 = vld [vmem:[#allocation7 + $0x4c8] sm:$0xf]  ;;  %v2498_v7 = vld [vmem:[#allocation7 + $0xb8] sm:$0xf0] }
  0x7f   :  { %v3683_v36 = vld [vmem:[#allocation7 + $0x4f4] sm:$0xf0]  ;;  %v3152_v53 = vld [vmem:[#allocation7 + $0x5c8] sm:$0xf] }
  0x80   :  { %1470 = vmatpush.bf16.msrb.mxu0 %v2513_v18  ;;  %1484 = vmatpush.bf16.msrb.mxu1 %v2641_v19  ;;  %v2816_v18 = vld [vmem:[#allocation7 + $0x328] sm:$0xf]  ;;  %v3627_v19 = vld [vmem:[#allocation7 + $0x334] sm:$0xf0] }
  0x81   :  { %1498 = vmatpush.bf16.msrb.mxu2 %v2769_v20  ;;  %v2433_v20 = vor.u32 %v3531_v12, %v2432_v11  ;;  %v2817_v30 = vor.u32 %v3627_v19, %v2816_v18  ;;  %v3711_v55 = vld [vmem:[#allocation7 + $0x5d4] sm:$0xf0]  ;;  %v3008_v0 = vld [vmem:[#allocation7 + $0x4a8] sm:$0xf]  ;;  %v2501_v12 = vor.u32 %v3545_v5, %v2498_v7  ;;  %v3541_v18 = vld [vmem:[#allocation7 + $0x8c] sm:$0xf] }
  0x82   :  { %1512 = vmatpush.bf16.msrb.mxu3 %v2897_v26  ;;  %v2689_v26 = vor.u32 %v3595_v17, %v2688_v16  ;;  %v3153_v62 = vor.u32 %v3711_v55, %v3152_v53  ;;  %v3136_v2 = vld [vmem:[#allocation7 + $0x5a8] sm:$0xf]  ;;  %v3707_v4 = vld [vmem:[#allocation7 + $0x5b4] sm:$0xf0]  ;;  %v2482_v19 = vld [vmem:[#allocation7 + $0x98] sm:$0xf0] }
  0x83   :  { %v3137_v11 = vor.u32 %v3707_v4, %v3136_v2  ;;  %v2992_v13 = vld [vmem:[#allocation7 + $0x488] sm:$0xf]  ;;  %v3703_v17 = vld [vmem:[#allocation7 + $0x594] sm:$0xf0]  ;;  %v3525_v7 = vld [vmem:[#allocation7 + $0xc] sm:$0xf] }
  0x84   :  { %1471 = vmatpush.bf16.msrb.mxu0 %v2497_v32  ;;  %1485 = vmatpush.bf16.msrb.mxu1 %v2625_v33  ;;  %v2800_v32 = vld [vmem:[#allocation7 + $0x308] sm:$0xf]  ;;  %v3623_v33 = vld [vmem:[#allocation7 + $0x314] sm:$0xf0] }
  0x85   :  { %1499 = vmatpush.bf16.msrb.mxu2 %v2753_v34  ;;  %v3040_v34 = vld [vmem:[#allocation7 + $0x4e8] sm:$0xf]  ;;  %v3667_v28 = vld [vmem:[#allocation7 + $0x474] sm:$0xf0] }
  0x86   :  { %1513 = vmatpush.bf16.msrb.mxu3 %v2881_v40  ;;  %v3715_v40 = vld [vmem:[#allocation7 + $0x5f4] sm:$0xf0]  ;;  %v3120_v15 = vld [vmem:[#allocation7 + $0x588] sm:$0xf] }
  0x87   :  { %v3169_v49 = vor.u32 %v3715_v40, %v3168_v37  ;;  %v2976_v27 = vld [vmem:[#allocation7 + $0x468] sm:$0xf]  ;;  %v3699_v31 = vld [vmem:[#allocation7 + $0x574] sm:$0xf0] }
  0x88   :  { %1472 = vmatpush.bf16.msrb.mxu0 %v2481_v46  ;;  %1486 = vmatpush.bf16.msrb.mxu1 %v2609_v47  ;;  %v2658_v46 = vld [vmem:[#allocation7 + $0x1f8] sm:$0xf0]  ;;  %v2801_v47 = vor.u32 %v3623_v33, %v2800_v32  ;;  %v3104_v29 = vld [vmem:[#allocation7 + $0x568] sm:$0xf]  ;;  %v3537_v32 = vld [vmem:[#allocation7 + $0x6c] sm:$0xf]  ;;  %v2977_v37 = vor.u32 %v3667_v28, %v2976_v27 }
  0x89   :  { %1500 = vmatpush.bf16.msrb.mxu2 %v2737_v48  ;;  %v3041_v48 = vor.u32 %v3683_v36, %v3040_v34  ;;  %v2661_v54 = vor.u32 %v3585_v45, %v2658_v46  ;;  %v2466_v33 = vld [vmem:[#allocation7 + $0x78] sm:$0xf0]  ;;  %v3569_v34 = vld [vmem:[#allocation7 + $0x16c] sm:$0xf]  ;;  %v2960_v41 = vld [vmem:[#allocation7 + $0x448] sm:$0xf] }
  0x8a   :  { %1514 = vmatpush.bf16.msrb.mxu3 %v2865_v52  ;;  %v3679_v52 = vld [vmem:[#allocation7 + $0x4d4] sm:$0xf0]  ;;  %v2594_v36 = vld [vmem:[#allocation7 + $0x178] sm:$0xf0]  ;;  %v2469_v40 = vor.u32 %v3537_v32, %v2466_v33  ;;  %v3533_v46 = vld [vmem:[#allocation7 + $0x4c] sm:$0xf] }
  0x8b   :  { %v3663_v42 = vld [vmem:[#allocation7 + $0x454] sm:$0xf0]  ;;  %v2944_v53 = vld [vmem:[#allocation7 + $0x428] sm:$0xf]  ;;  %v2898_v33 = vld [vmem:[#allocation7 + $0x3d8] sm:$0xf0] }
  0x8c   :  { %1473 = vmatpush.bf16.msrb.mxu0 %v2465_v59  ;;  %1487 = vmatpush.bf16.msrb.mxu1 %v2593_v60  ;;  %v3581_v59 = vld [vmem:[#allocation7 + $0x1cc] sm:$0xf]  ;;  %v2642_v60 = vld [vmem:[#allocation7 + $0x1d8] sm:$0xf0]  ;;  %v3695_v45 = vld [vmem:[#allocation7 + $0x554] sm:$0xf0] }
  0x8d   :  { %1501 = vmatpush.bf16.msrb.mxu2 %v2721_v61  ;;  %v3025_v61 = vor.u32 %v3679_v52, %v3024_v51  ;;  %v2645_v3 = vor.u32 %v3581_v59, %v2642_v60  ;;  %v3072_v55 = vld [vmem:[#allocation7 + $0x528] sm:$0xf]  ;;  %v3691_v58 = vld [vmem:[#allocation7 + $0x534] sm:$0xf0]  ;;  %v3529_v59 = vld [vmem:[#allocation7 + $0x2c] sm:$0xf] }
  0x8e   :  { %1515 = vmatpush.bf16.msrb.mxu3 %v2849_v1  ;;  %v3675_v1 = vld [vmem:[#allocation7 + $0x4b4] sm:$0xf0]  ;;  %v2434_v60 = vld [vmem:[#allocation7 + $0x38] sm:$0xf0]  ;;  %v3073_v2 = vor.u32 %v3691_v58, %v3072_v55  ;;  %v3056_v4 = vld [vmem:[#allocation7 + $0x508] sm:$0xf] }
  0x8f   :  { %v3687_v5 = vld [vmem:[#allocation7 + $0x514] sm:$0xf0]  ;;  %v3605_v55 = vld [vmem:[#allocation7 + $0x28c] sm:$0xf] }
  0x90   :  { %1474 = vmatpush.bf16.msrb.mxu0 %v2449_v8  ;;  %1488 = vmatpush.bf16.msrb.mxu1 %v2577_v9  ;;  %v3577_v8 = vld [vmem:[#allocation7 + $0x1ac] sm:$0xf]  ;;  %v2626_v9 = vld [vmem:[#allocation7 + $0x1b8] sm:$0xf0] }
  0x91   :  { %1502 = vmatpush.bf16.msrb.mxu2 %v2705_v10  ;;  %v3009_v10 = vor.u32 %v3675_v1, %v3008_v0  ;;  %v2629_v16 = vor.u32 %v3577_v8, %v2626_v9  ;;  %v2928_v0 = vld [vmem:[#allocation7 + $0x408] sm:$0xf]  ;;  %v3655_v1 = vld [vmem:[#allocation7 + $0x414] sm:$0xf0]  ;;  %v2418_v9 = vld [vmem:[#allocation7 + $0x18] sm:$0xf0] }
  0x92   :  { %1516 = vmatpush.bf16.msrb.mxu3 %v2833_v14  ;;  %v3671_v14 = vld [vmem:[#allocation7 + $0x494] sm:$0xf0]  ;;  %v3637_v58 = vld [vmem:[#allocation7 + $0x38c] sm:$0xf] }
  0x93   :  { %v2993_v24 = vor.u32 %v3671_v14, %v2992_v13  ;;  %v2786_v13 = vld [vmem:[#allocation7 + $0x2f8] sm:$0xf0]  ;;  %v3649_v14 = vld [vmem:[#allocation7 + $0x3ec] sm:$0xf] }
  0x94   :  { %1475 = vmatpush.bf16.msrb.mxu0 %v2433_v20  ;;  %1489 = vmatpush.bf16.msrb.mxu1 %v2561_v25  ;;  %v3573_v20 = vld [vmem:[#allocation7 + $0x18c] sm:$0xf]  ;;  %v3121_v25 = vor.u32 %v3703_v17, %v3120_v15  ;;  %v2929_v15 = vor.u32 %v3655_v1, %v2928_v0 }
  0x95   :  { %1503 = vmatpush.bf16.msrb.mxu2 %v2689_v26  ;;  %v2485_v26 = vor.u32 %v3541_v18, %v2482_v19  ;;  %v3681_v17 = vld [vmem:[#allocation7 + $0x4ec] sm:$0xf]  ;;  %v3042_v18 = vld [vmem:[#allocation7 + $0x4f8] sm:$0xf0]  ;;  %v3057_v19 = vor.u32 %v3687_v5, %v3056_v4 }
  0x96   :  { %1517 = vmatpush.bf16.msrb.mxu3 %v2817_v30  ;;  %v2613_v30 = vor.u32 %v3573_v20, %v2610_v21  ;;  %v2421_v20 = vor.u32 %v3525_v7, %v2418_v9  ;;  %v3713_v21 = vld [vmem:[#allocation7 + $0x5ec] sm:$0xf]  ;;  %v3045_v28 = vor.u32 %v3681_v17, %v3042_v18  ;;  %v2850_v7 = vld [vmem:[#allocation7 + $0x378] sm:$0xf0] }
  0x97   :  { %v3633_v4 = vld [vmem:[#allocation7 + $0x36c] sm:$0xf]  ;;  %v2978_v9 = vld [vmem:[#allocation7 + $0x478] sm:$0xf0] }
  0x98   :  { %1476 = vmatpush.bf16.msrb.mxu0 %v2417_v38  ;;  %1490 = vmatpush.bf16.msrb.mxu1 %v2545_v43  ;;  %v3105_v38 = vor.u32 %v3699_v31, %v3104_v29  ;;  %v3088_v43 = vld [vmem:[#allocation7 + $0x548] sm:$0xf]  ;;  %v3613_v29 = vld [vmem:[#allocation7 + $0x2cc] sm:$0xf] }
  0x99   :  { %1504 = vmatpush.bf16.msrb.mxu2 %v2673_v44  ;;  %v2597_v44 = vor.u32 %v3569_v34, %v2594_v36  ;;  %v3089_v51 = vor.u32 %v3695_v45, %v3088_v43  ;;  %v3645_v31 = vld [vmem:[#allocation7 + $0x3cc] sm:$0xf]  ;;  %v3026_v36 = vld [vmem:[#allocation7 + $0x4d8] sm:$0xf0] }
  0x9a   :  { %1518 = vmatpush.bf16.msrb.mxu3 %v2801_v47  ;;  %v2450_v47 = vld [vmem:[#allocation7 + $0x58] sm:$0xf0]  ;;  %v3677_v34 = vld [vmem:[#allocation7 + $0x4cc] sm:$0xf] }
  0x9b   :  { %1477 = vmatmul.bf16.vlgmr.msrb.gmra.mxu0 %v4041_v57  ;;  %1491 = vmatmul.bf16.vlgmr.msrb.gmra.mxu1 %v4044_v6  ;;  %v2453_v52 = vor.u32 %v3533_v46, %v2450_v47  ;;  %v3609_v43 = vld [vmem:[#allocation7 + $0x2ac] sm:$0xf]  ;;  %v2882_v47 = vld [vmem:[#allocation7 + $0x3b8] sm:$0xf0] }
  0x9c   :  { %1525 = vmatpush.bf16.msra.mxu0 %v3041_v48  ;;  %1539 = vmatpush.bf16.msra.mxu1 %v3169_v49  ;;  %v3565_v48 = vld [vmem:[#allocation7 + $0x14c] sm:$0xf]  ;;  %v2578_v49 = vld [vmem:[#allocation7 + $0x158] sm:$0xf0] }
  0x9d   :  { %1553 = vmatpush.bf16.msra.mxu2 %v2533_v50  ;;  %1519 = vmatmul.bf16.vlgmr.msrb.gmra.mxu3 %v4049_v23  ;;  %v2961_v50 = vor.u32 %v3663_v42, %v2960_v41  ;;  %v2581_v56 = vor.u32 %v3565_v48, %v2578_v49  ;;  %v2901_v41 = vor.u32 %v3645_v31, %v2898_v33  ;;  %v3641_v45 = vld [vmem:[#allocation7 + $0x3ac] sm:$0xf]  ;;  %v3010_v49 = vld [vmem:[#allocation7 + $0x4b8] sm:$0xf0] }
  0x9e   :  { %1567 = vmatpush.bf16.msra.mxu3 %v2661_v54  ;;  %1505 = vmatmul.bf16.vlgmr.msrb.gmra.mxu2 %v4047_v22  ;;  %v3659_v54 = vld [vmem:[#allocation7 + $0x434] sm:$0xf0]  ;;  %v3029_v42 = vor.u32 %v3677_v34, %v3026_v36  ;;  %v3673_v48 = vld [vmem:[#allocation7 + $0x4ac] sm:$0xf]  ;;  %v2818_v33 = vld [vmem:[#allocation7 + $0x338] sm:$0xf0] }
  0x9f   :  { %v3629_v17 = vld [vmem:[#allocation7 + $0x34c] sm:$0xf]  ;;  %v2946_v36 = vld [vmem:[#allocation7 + $0x438] sm:$0xf0] }
  0xa0   :  { %1526 = vmatpush.bf16.msra.mxu0 %v3025_v61  ;;  %1540 = vmatpush.bf16.msra.mxu1 %v3153_v62  ;;  %v3561_v61 = vld [vmem:[#allocation7 + $0x12c] sm:$0xf]  ;;  %v2562_v62 = vld [vmem:[#allocation7 + $0x138] sm:$0xf0] }
  0xa1   :  { %1554 = vmatpush.bf16.msra.mxu2 %v2517_v63  ;;  %v2945_v63 = vor.u32 %v3659_v54, %v2944_v53  ;;  %v2565_v8 = vor.u32 %v3561_v61, %v2562_v62  ;;  %v2885_v53 = vor.u32 %v3641_v45, %v2882_v47  ;;  %v3013_v54 = vor.u32 %v3673_v48, %v3010_v49  ;;  %v3669_v61 = vld [vmem:[#allocation7 + $0x48c] sm:$0xf]  ;;  %v2994_v62 = vld [vmem:[#allocation7 + $0x498] sm:$0xf0] }
  0xa2   :  { %1568 = vmatpush.bf16.msra.mxu3 %v2645_v3  ;;  %v2437_v3 = vor.u32 %v3529_v59, %v2434_v60  ;;  %v2866_v60 = vld [vmem:[#allocation7 + $0x398] sm:$0xf0]  ;;  %v3625_v31 = vld [vmem:[#allocation7 + $0x32c] sm:$0xf] }
  0xa3   :  { %v2869_v1 = vor.u32 %v3637_v58, %v2866_v60  ;;  %v3657_v34 = vld [vmem:[#allocation7 + $0x42c] sm:$0xf]  ;;  %v2930_v49 = vld [vmem:[#allocation7 + $0x418] sm:$0xf0] }
  0xa4   :  { %1527 = vmatpush.bf16.msra.mxu0 %v3009_v10  ;;  %1541 = vmatpush.bf16.msra.mxu1 %v3137_v11  ;;  %v3557_v10 = vld [vmem:[#allocation7 + $0x10c] sm:$0xf]  ;;  %v2546_v11 = vld [vmem:[#allocation7 + $0x118] sm:$0xf0] }
  0xa5   :  { %1555 = vmatpush.bf16.msra.mxu2 %v2501_v12  ;;  %v3617_v12 = vld [vmem:[#allocation7 + $0x2ec] sm:$0xf] }
  0xa6   :  { %1569 = vmatpush.bf16.msra.mxu3 %v2629_v16  ;;  %v2914_v16 = vld [vmem:[#allocation7 + $0x3f8] sm:$0xf0]  ;;  %v3621_v45 = vld [vmem:[#allocation7 + $0x30c] sm:$0xf] }
  0xa7   :  { %v2917_v27 = vor.u32 %v3649_v14, %v2914_v16  ;;  %v2706_v16 = vld [vmem:[#allocation7 + $0x258] sm:$0xf0]  ;;  %v3653_v48 = vld [vmem:[#allocation7 + $0x40c] sm:$0xf] }
  0xa8   :  { %1528 = vmatpush.bf16.msra.mxu0 %v2993_v24  ;;  %1542 = vmatpush.bf16.msra.mxu1 %v3121_v25  ;;  %v3170_v24 = vld [vmem:[#allocation7 + $0x5f8] sm:$0xf0]  ;;  %v2549_v25 = vor.u32 %v3557_v10, %v2546_v11  ;;  %v3697_v10 = vld [vmem:[#allocation7 + $0x56c] sm:$0xf] }
  0xa9   :  { %1556 = vmatpush.bf16.msra.mxu2 %v2485_v26  ;;  %v2789_v26 = vor.u32 %v3617_v12, %v2786_v13  ;;  %v3173_v32 = vor.u32 %v3713_v21, %v3170_v24  ;;  %v3106_v11 = vld [vmem:[#allocation7 + $0x578] sm:$0xf0]  ;;  %v2853_v13 = vor.u32 %v3633_v4, %v2850_v7  ;;  %v3693_v24 = vld [vmem:[#allocation7 + $0x54c] sm:$0xf] }
  0xaa   :  { %1570 = vmatpush.bf16.msra.mxu3 %v2613_v30  ;;  %v2770_v30 = vld [vmem:[#allocation7 + $0x2d8] sm:$0xf0]  ;;  %v3109_v18 = vor.u32 %v3697_v10, %v3106_v11 }
  0xab   :  { %v2962_v21 = vld [vmem:[#allocation7 + $0x458] sm:$0xf0] }
  0xac   :  { %1529 = vmatpush.bf16.msra.mxu0 %v2977_v37  ;;  %1543 = vmatpush.bf16.msra.mxu1 %v3105_v38  ;;  %v3709_v37 = vld [vmem:[#allocation7 + $0x5cc] sm:$0xf]  ;;  %v3154_v38 = vld [vmem:[#allocation7 + $0x5d8] sm:$0xf0] }
  0xad   :  { %1557 = vmatpush.bf16.msra.mxu2 %v2469_v40  ;;  %v2773_v40 = vor.u32 %v3613_v29, %v2770_v30  ;;  %v3157_v46 = vor.u32 %v3709_v37, %v3154_v38  ;;  %v3593_v29 = vld [vmem:[#allocation7 + $0x22c] sm:$0xf]  ;;  %v2690_v30 = vld [vmem:[#allocation7 + $0x238] sm:$0xf0] }
  0xae   :  { %1571 = vmatpush.bf16.msra.mxu3 %v2597_v44  ;;  %v2754_v44 = vld [vmem:[#allocation7 + $0x2b8] sm:$0xf0]  ;;  %v3689_v37 = vld [vmem:[#allocation7 + $0x52c] sm:$0xf] }
  0xaf   :  { %v3074_v38 = vld [vmem:[#allocation7 + $0x538] sm:$0xf0] }
  0xb0   :  { %1530 = vmatpush.bf16.msra.mxu0 %v2961_v50  ;;  %1544 = vmatpush.bf16.msra.mxu1 %v3089_v51  ;;  %v3705_v50 = vld [vmem:[#allocation7 + $0x5ac] sm:$0xf]  ;;  %v3138_v51 = vld [vmem:[#allocation7 + $0x5b8] sm:$0xf0]  ;;  %v3077_v47 = vor.u32 %v3689_v37, %v3074_v38  ;;  %v3200_v37 = vld [vmem:[#allocation10 + $0x10] sm:$0xf] }
  0xb1   :  { %1558 = vmatpush.bf16.msra.mxu2 %v2453_v52  ;;  %v2757_v52 = vor.u32 %v3609_v43, %v2754_v44  ;;  %v3141_v59 = vor.u32 %v3705_v50, %v3138_v51  ;;  %v2949_v43 = vor.u32 %v3657_v34, %v2946_v36  ;;  %v2674_v44 = vld [vmem:[#allocation7 + $0x218] sm:$0xf0]  ;;  %v3685_v50 = vld [vmem:[#allocation7 + $0x50c] sm:$0xf]  ;;  %v4093_v34 = vld [vmem:[#allocation9] sm:$0xf] }
  0xb2   :  { %1572 = vmatpush.bf16.msra.mxu3 %v2581_v56  ;;  %v2738_v56 = vld [vmem:[#allocation7 + $0x298] sm:$0xf0] }
  0xb3   :  { %v2741_v0 = vor.u32 %v3605_v55, %v2738_v56  ;;  %v3058_v51 = vld [vmem:[#allocation7 + $0x518] sm:$0xf0]  ;;  %v3312_v55 = vld [vmem:[#allocation10 + $0xf0] sm:$0xf] }
  0xb4   :  { %1531 = vmatpush.bf16.msra.mxu0 %v2945_v63  ;;  %1545 = vmatpush.bf16.msra.mxu1 %v3073_v2  ;;  %v3701_v63 = vld [vmem:[#allocation7 + $0x58c] sm:$0xf]  ;;  %v3751_v56 = vld [vmem:[#allocation10 + $0xf4] sm:$0xf0]  ;;  %v3061_v60 = vor.u32 %v3685_v50, %v3058_v51 }
  0xb5   :  { %1559 = vmatpush.bf16.msra.mxu2 %v2437_v3  ;;  %v3601_v2 = vld [vmem:[#allocation7 + $0x26c] sm:$0xf]  ;;  %v2722_v3 = vld [vmem:[#allocation7 + $0x278] sm:$0xf0] }
  0xb6   :  { %1573 = vmatpush.bf16.msra.mxu3 %v2565_v8  ;;  %v3665_v8 = vld [vmem:[#allocation7 + $0x46c] sm:$0xf]  ;;  %v2725_v12 = vor.u32 %v3601_v2, %v2722_v3  ;;  %v3731_v7 = vld [vmem:[#allocation10 + $0x54] sm:$0xf0] }
  0xb7   :  { %v2981_v14 = vor.u32 %v3665_v8, %v2978_v9  ;;  %v3296_v8 = vld [vmem:[#allocation10 + $0xd0] sm:$0xf]  ;;  %v3747_v9 = vld [vmem:[#allocation10 + $0xd4] sm:$0xf0]  ;;  %v3737_v51 = vld [vmem:[#allocation10 + $0x84] sm:$0xf0] }
  0xb8   :  { %1532 = vmatpush.bf16.msra.mxu0 %v2929_v15  ;;  %1546 = vmatpush.bf16.msra.mxu1 %v3057_v19  ;;  %v3597_v15 = vld [vmem:[#allocation7 + $0x24c] sm:$0xf]  ;;  %v2834_v19 = vld [vmem:[#allocation7 + $0x358] sm:$0xf0]  ;;  %v4075_v2 = vpop.f32.mrf.mxu1  ;;  %v3297_v11 = vor.u32 %v3747_v9, %v3296_v8  ;;  %v3730_v9 = vld [vmem:[#allocation10 + $0x54] sm:$0xf] }
  0xb9   :  { %1560 = vmatpush.bf16.msra.mxu2 %v2421_v20  ;;  %v3661_v20 = vld [vmem:[#allocation7 + $0x44c] sm:$0xf]  ;;  %v3723_v38 = vld [vmem:[#allocation10 + $0x14] sm:$0xf0] }
  0xba   :  { %1574 = vmatpush.bf16.msra.mxu3 %v2549_v25  ;;  %v3090_v25 = vld [vmem:[#allocation7 + $0x558] sm:$0xf0] }
  0xbb   :  { %1533 = vmatmul.bf16.vlgmr.msra.gmra.mxu0 %v4053_v35  ;;  %1547 = vmatmul.bf16.vlgmr.msra.gmra.mxu1 %v4055_v39 }
  0xbc   :  { %1581 = vmatpush.bf16.msrb.mxu0 %v2789_v26  ;;  %1595 = vmatpush.bf16.msrb.mxu1 %v2917_v27  ;;  %v2709_v26 = vor.u32 %v3597_v15, %v2706_v16  ;;  %v2837_v27 = vor.u32 %v3629_v17, %v2834_v19  ;;  %v3745_v16 = vld [vmem:[#allocation10 + $0xc4] sm:$0xf0] }
  0xbd   :  { %1609 = vmatpush.bf16.msrb.mxu2 %v3045_v28  ;;  %1575 = vmatmul.bf16.vlgmr.msra.gmra.mxu3 %v4044_v6  ;;  %v2997_v6 = vor.u32 %v3669_v61, %v2994_v62  ;;  %v2965_v28 = vor.u32 %v3661_v20, %v2962_v21  ;;  %v3313_v62 = vor.u32 %v3751_v56, %v3312_v55  ;;  %v3280_v20 = vld [vmem:[#allocation10 + $0xb0] sm:$0xf]  ;;  %v3743_v21 = vld [vmem:[#allocation10 + $0xb4] sm:$0xf0] }
  0xbe   :  { %1623 = vmatpush.bf16.msrb.mxu3 %v3173_v32  ;;  %1561 = vmatmul.bf16.vlgmr.msra.gmra.mxu2 %v4041_v57  ;;  %v3122_v57 = vld [vmem:[#allocation7 + $0x598] sm:$0xf0]  ;;  %v3093_v32 = vor.u32 %v3693_v24, %v3090_v25  ;;  %v3281_v25 = vor.u32 %v3743_v21, %v3280_v20  ;;  %v3744_v21 = vld [vmem:[#allocation10 + $0xc4] sm:$0xf] }
  0xbf   :  { %v3125_v5 = vor.u32 %v3701_v63, %v3122_v57  ;;  %v3240_v63 = vld [vmem:[#allocation10 + $0x60] sm:$0xf]  ;;  %v3733_v57 = vld [vmem:[#allocation10 + $0x64] sm:$0xf0] }
  0xc0   :  { %1582 = vmatpush.bf16.msrb.mxu0 %v2773_v40  ;;  %1596 = vmatpush.bf16.msrb.mxu1 %v2901_v41  ;;  %v2693_v40 = vor.u32 %v3593_v29, %v2690_v30  ;;  %v3589_v41 = vld [vmem:[#allocation7 + $0x20c] sm:$0xf]  ;;  %v3241_v3 = vor.u32 %v3733_v57, %v3240_v63  ;;  %v4083_v15 = vpop.f32.mrf.mxu3  ;;  %v4087_v19 = vpop.f32.mrf.mxu1  ;;  %v3732_v63 = vld [vmem:[#allocation10 + $0x64] sm:$0xf]  ;;  %v3242_v57 = vld [vmem:[#allocation10 + $0x68] sm:$0xf0] }
  0xc1   :  { %1610 = vmatpush.bf16.msrb.mxu2 %v3029_v42  ;;  %v2821_v42 = vor.u32 %v3625_v31, %v2818_v33  ;;  %v3741_v31 = vld [vmem:[#allocation10 + $0xa4] sm:$0xf0] }
  0xc2   :  { %1624 = vmatpush.bf16.msrb.mxu3 %v3157_v46  ;;  %v2802_v46 = vld [vmem:[#allocation7 + $0x318] sm:$0xf0] }
  0xc3   :  { %v2805_v58 = vor.u32 %v3621_v45, %v2802_v46  ;;  %v3192_v46 = vld [vmem:[#allocation10] sm:$0xf] }
  0xc4   :  { %1583 = vmatpush.bf16.msrb.mxu0 %v2757_v52  ;;  %1597 = vmatpush.bf16.msrb.mxu1 %v2885_v53  ;;  %v3248_v52 = vld [vmem:[#allocation10 + $0x70] sm:$0xf]  ;;  %v3735_v53 = vld [vmem:[#allocation10 + $0x74] sm:$0xf0] }
  0xc5   :  { %1611 = vmatpush.bf16.msrb.mxu2 %v3013_v54  ;;  %v2677_v54 = vor.u32 %v3589_v41, %v2674_v44  ;;  %v3249_v61 = vor.u32 %v3735_v53, %v3248_v52  ;;  %v303_v44 = vperm.slane %v4093_v34, 0  ;;  %v3734_v52 = vld [vmem:[#allocation10 + $0x74] sm:$0xf]  ;;  %v3250_v53 = vld [vmem:[#allocation10 + $0x78] sm:$0xf0] }
  0xc6   :  { %1625 = vmatpush.bf16.msrb.mxu3 %v3141_v59  ;;  %v2933_v59 = vor.u32 %v3653_v48, %v2930_v49  ;;  %v3256_v48 = vld [vmem:[#allocation10 + $0x80] sm:$0xf] }
  0xc7   :  { %v3257_v56 = vor.u32 %v3737_v51, %v3256_v48  ;;  %v3740_v48 = vld [vmem:[#allocation10 + $0xa4] sm:$0xf] }
  0xc8   :  { %1584 = vmatpush.bf16.msrb.mxu0 %v2741_v0  ;;  %1598 = vmatpush.bf16.msrb.mxu1 %v2869_v1  ;;  %v3304_v0 = vld [vmem:[#allocation10 + $0xe0] sm:$0xf]  ;;  %v3749_v1 = vld [vmem:[#allocation10 + $0xe4] sm:$0xf0] }
  0xc9   :  { %1612 = vmatpush.bf16.msrb.mxu2 %v2997_v6  ;;  %v4073_v6 = vpop.f32.mrf.mxu0  ;;  %v3305_v4 = vor.u32 %v3749_v1, %v3304_v0  ;;  %v3748_v0 = vld [vmem:[#allocation10 + $0xe4] sm:$0xf] }
  0xca   :  { %1626 = vmatpush.bf16.msrb.mxu3 %v3125_v5  ;;  %v3232_v5 = vld [vmem:[#allocation10 + $0x50] sm:$0xf] }
  0xcb   :  { %v3233_v10 = vor.u32 %v3731_v7, %v3232_v5 }
  0xcc   :  { %1585 = vmatpush.bf16.msrb.mxu0 %v2725_v12  ;;  %1599 = vmatpush.bf16.msrb.mxu1 %v2853_v13  ;;  %v4081_v12 = vpop.f32.mrf.mxu2  ;;  %v3224_v13 = vld [vmem:[#allocation10 + $0x40] sm:$0xf] }
  0xcd   :  { %1613 = vmatpush.bf16.msrb.mxu2 %v2981_v14  ;;  %v3288_v14 = vld [vmem:[#allocation10 + $0xc0] sm:$0xf] }
  0xce   :  { %1627 = vmatpush.bf16.msrb.mxu3 %v3109_v18  ;;  %v3216_v18 = vld [vmem:[#allocation10 + $0x30] sm:$0xf] }
  0xd0   :  { %1586 = vmatpush.bf16.msrb.mxu0 %v2709_v26  ;;  %1600 = vmatpush.bf16.msrb.mxu1 %v2837_v27  ;;  %v3208_v26 = vld [vmem:[#allocation10 + $0x20] sm:$0xf]  ;;  %v3725_v27 = vld [vmem:[#allocation10 + $0x24] sm:$0xf0] }
  0xd1   :  { %1614 = vmatpush.bf16.msrb.mxu2 %v2965_v28  ;;  %v4085_v17 = vpop.f32.mrf.mxu0  ;;  %v3272_v28 = vld [vmem:[#allocation10 + $0xa0] sm:$0xf]  ;;  %v3209_v30 = vor.u32 %v3725_v27, %v3208_v26 }
  0xd2   :  { %1628 = vmatpush.bf16.msrb.mxu3 %v3093_v32  ;;  %v4091_v32 = vpop.f32.mrf.mxu3  ;;  %v3273_v33 = vor.u32 %v3741_v31, %v3272_v28 }
  0xd4   :  { %1587 = vmatpush.bf16.msrb.mxu0 %v2693_v40  ;;  %1601 = vmatpush.bf16.msrb.mxu1 %v2821_v42  ;;  %v4089_v29 = vpop.f32.mrf.mxu2  ;;  %v3264_v40 = vld [vmem:[#allocation10 + $0x90] sm:$0xf]  ;;  %v3201_v42 = vor.u32 %v3723_v38, %v3200_v37  ;;  %v3218_v37 = vld [vmem:[#allocation10 + $0x38] sm:$0xf0]  ;;  %v3742_v38 = vld [vmem:[#allocation10 + $0xb4] sm:$0xf] }
  0xd5   :  { %1615 = vmatpush.bf16.msrb.mxu2 %v2949_v43  ;;  %v3739_v43 = vld [vmem:[#allocation10 + $0x94] sm:$0xf0] }
  0xd6   :  { %1629 = vmatpush.bf16.msrb.mxu3 %v3077_v47  ;;  %v3265_v45 = vor.u32 %v3739_v43, %v3264_v40  ;;  %v3721_v47 = vld [vmem:[#allocation10 + $0x4] sm:$0xf0]  ;;  %v3282_v40 = vld [vmem:[#allocation10 + $0xb8] sm:$0xf0] }
  0xd7   :  { %v3193_v50 = vor.u32 %v3721_v47, %v3192_v46  ;;  %v3210_v46 = vld [vmem:[#allocation10 + $0x28] sm:$0xf0] }
  0xd8   :  { %1588 = vmatpush.bf16.msrb.mxu0 %v2677_v54  ;;  %1602 = vmatpush.bf16.msrb.mxu1 %v2805_v58  ;;  %v4097_v41 = vpop.f32.mrf.mxu1  ;;  %v1311_v54 = vadd.f32 %v4073_v6, %v303_v44  ;;  %v3253_v58 = vor.u32 %v3734_v52, %v3250_v53  ;;  %v3245_v6 = vor.u32 %v3732_v63, %v3242_v57 }
  0xd9   :  { %1616 = vmatpush.bf16.msrb.mxu2 %v2933_v59  ;;  %v4095_v36 = vpop.f32.mrf.mxu0  ;;  %v3750_v59 = vld [vmem:[#allocation10 + $0xf4] sm:$0xf] }
  0xda   :  { %1630 = vmatpush.bf16.msrb.mxu3 %v3061_v60  ;;  %v3314_v60 = vld [vmem:[#allocation10 + $0xf8] sm:$0xf0]  ;;  %v1325_v1 = vadd.f32 %v4075_v2, %v1311_v54 }
  0xdb   :  { %1589 = vmatmul.bf16.vlgmr.msrb.gmra.mxu0 %v4047_v22  ;;  %1603 = vmatmul.bf16.vlgmr.msrb.gmra.mxu1 %v4049_v23  ;;  %v3729_v22 = vld [vmem:[#allocation10 + $0x44] sm:$0xf0] }
  0xdc   :  { %2067 = vmatpush.bf16.msra.mxu0 %v3249_v61  ;;  %2081 = vmatpush.bf16.msra.mxu1 %v3313_v62  ;;  %v3225_v23 = vor.u32 %v3729_v22, %v3224_v13  ;;  %v304_v61 = vperm.slane %v4093_v34, 1  ;;  %v3317_v62 = vor.u32 %v3750_v59, %v3314_v60  ;;  %v3298_v13 = vld [vmem:[#allocation10 + $0xd8] sm:$0xf0]  ;;  %v1313_v22 = vadd.f32 %v4085_v17, %v303_v44 }
  0xdd   :  { %1617 = vmatmul.bf16.vlgmr.msrb.gmra.mxu2 %v4053_v35  ;;  %1631 = vmatmul.bf16.vlgmr.msrb.gmra.mxu3 %v4055_v39  ;;  %v3289_v35 = vor.u32 %v3745_v16, %v3288_v14  ;;  %v3727_v39 = vld [vmem:[#allocation10 + $0x34] sm:$0xf0]  ;;  %v1339_v14 = vadd.f32 %v4081_v12, %v1325_v1 }
  0xde   :  { %v3217_v24 = vor.u32 %v3727_v39, %v3216_v18  ;;  %v3728_v18 = vld [vmem:[#allocation10 + $0x44] sm:$0xf]  ;;  %v3226_v39 = vld [vmem:[#allocation10 + $0x48] sm:$0xf0] }
  0xdf   :  { %v1353_v26 = vadd.f32 %v4083_v15, %v1339_v14  ;;  %v3229_v17 = vor.u32 %v3728_v18, %v3226_v39  ;;  %v3285_v15 = vor.u32 %v3742_v38, %v3282_v40  ;;  %v3781_v40 = vld [vmem:[#allocation10 + $0x1e4] sm:$0xf0] }
  0xe0   :  { %2068 = vmatpush.bf16.msra.mxu0 %v3241_v3  ;;  %2082 = vmatpush.bf16.msra.mxu1 %v3305_v4  ;;  %v1408_v55 = vpop.f32.mrf.mxu3  ;;  %v3306_v4 = vld [vmem:[#allocation10 + $0xe8] sm:$0xf0]  ;;  %v4105_v5 = vpop.f32.mrf.mxu1 }
  0xe1   :  { %v1394_v49 = vpop.f32.mrf.mxu2  ;;  %v4103_v3 = vpop.f32.mrf.mxu0  ;;  %v3309_v8 = vor.u32 %v3748_v0, %v3306_v4  ;;  %v3194_v4 = vld [vmem:[#allocation10 + $0x8] sm:$0xf0] }
  0xe2   :  { %v1395_v7 = vadd.f32 %v1394_v49, %v304_v61  ;;  %v3274_v49 = vld [vmem:[#allocation10 + $0xa8] sm:$0xf0] }
  0xe4   :  { %2069 = vmatpush.bf16.msra.mxu0 %v3233_v10  ;;  %2083 = vmatpush.bf16.msra.mxu1 %v3297_v11  ;;  %v3234_v10 = vld [vmem:[#allocation10 + $0x58] sm:$0xf0]  ;;  %v3746_v11 = vld [vmem:[#allocation10 + $0xd4] sm:$0xf]  ;;  %v1409_v16 = vadd.f32 %v1408_v55, %v1395_v7  ;;  %v3277_v55 = vor.u32 %v3740_v48, %v3274_v49  ;;  %v3352_v49 = vld [vmem:[#allocation10 + $0x140] sm:$0xf] }
  0xe5   :  { %v3237_v2 = vor.u32 %v3730_v9, %v3234_v10  ;;  %v3736_v9 = vld [vmem:[#allocation10 + $0x84] sm:$0xf]  ;;  %v3258_v10 = vld [vmem:[#allocation10 + $0x88] sm:$0xf0] }
  0xe8   :  { %2070 = vmatpush.bf16.msra.mxu0 %v3225_v23  ;;  %2084 = vmatpush.bf16.msra.mxu1 %v3289_v35  ;;  %v3301_v35 = vor.u32 %v3746_v11, %v3298_v13  ;;  %v1410_v20 = vpop.f32.mrf.mxu3 }
  0xe9   :  { %v1396_v23 = vpop.f32.mrf.mxu2 }
  0xea   :  { %v1397_v31 = vadd.f32 %v1396_v23, %v304_v61  ;;  %v3738_v61 = vld [vmem:[#allocation10 + $0x94] sm:$0xf] }
  0xec   :  { %2071 = vmatpush.bf16.msra.mxu0 %v3217_v24  ;;  %2085 = vmatpush.bf16.msra.mxu1 %v3281_v25  ;;  %v3290_v24 = vld [vmem:[#allocation10 + $0xc8] sm:$0xf0]  ;;  %v1327_v25 = vadd.f32 %v4087_v19, %v1313_v22  ;;  %v1411_v47 = vadd.f32 %v1410_v20, %v1397_v31  ;;  %v3368_v31 = vld [vmem:[#allocation10 + $0x160] sm:$0xf] }
  0xee   :  { %v1341_v43 = vadd.f32 %v4089_v29, %v1327_v25 }
  0xf0   :  { %2072 = vmatpush.bf16.msra.mxu0 %v3209_v30  ;;  %2086 = vmatpush.bf16.msra.mxu1 %v3273_v33  ;;  %v3293_v30 = vor.u32 %v3744_v21, %v3290_v24  ;;  %v3726_v33 = vld [vmem:[#allocation10 + $0x34] sm:$0xf]  ;;  %v1355_v52 = vadd.f32 %v4091_v32, %v1341_v43  ;;  %v3763_v43 = vld [vmem:[#allocation10 + $0x154] sm:$0xf0] }
  0xf1   :  { %v3221_v19 = vor.u32 %v3726_v33, %v3218_v37  ;;  %v3765_v33 = vld [vmem:[#allocation10 + $0x164] sm:$0xf0]  ;;  %v3432_v37 = vld [vmem:[#allocation10 + $0x1e0] sm:$0xf] }
  0xf2   :  { %v1369_v0 = vadd.f32 %v4103_v3, %v1355_v52  ;;  %v3261_v3 = vor.u32 %v3736_v9, %v3258_v10  ;;  %v3369_v38 = vor.u32 %v3765_v33, %v3368_v31  ;;  %v3755_v9 = vld [vmem:[#allocation10 + $0x114] sm:$0xf0]  ;;  %v3392_v10 = vld [vmem:[#allocation10 + $0x190] sm:$0xf]  ;;  %v3780_v31 = vld [vmem:[#allocation10 + $0x1e4] sm:$0xf] }
  0xf4   :  { %2073 = vmatpush.bf16.msra.mxu0 %v3201_v42  ;;  %2087 = vmatpush.bf16.msra.mxu1 %v3265_v45  ;;  %v1367_v42 = vadd.f32 %v4095_v36, %v1353_v26  ;;  %v3724_v45 = vld [vmem:[#allocation10 + $0x24] sm:$0xf]  ;;  %v1383_v13 = vadd.f32 %v4105_v5, %v1369_v0  ;;  %v3376_v26 = vld [vmem:[#allocation10 + $0x170] sm:$0xf]  ;;  %v3757_v0 = vld [vmem:[#allocation10 + $0x124] sm:$0xf0] }
  0xf5   :  { %v3213_v29 = vor.u32 %v3724_v45, %v3210_v46 }
  0xf6   :  { %v1381_v51 = vadd.f32 %v4097_v41, %v1367_v42  ;;  %v1641_v23 = vmax.f32 %v1383_v13, 0.0  ;;  %v3360_v42 = vld [vmem:[#allocation10 + $0x150] sm:$0xf]  ;;  %v3771_v13 = vld [vmem:[#allocation10 + $0x194] sm:$0xf0] }
  0xf7   :  { %v3361_v45 = vor.u32 %v3763_v43, %v3360_v42 }
  0xf8   :  { %2074 = vmatpush.bf16.msra.mxu0 %v3193_v50  ;;  %2088 = vmatpush.bf16.msra.mxu1 %v3257_v56  ;;  %v1422_v27 = vpop.f32.mrf.mxu0  ;;  %v1436_v12 = vpop.f32.mrf.mxu1  ;;  %v3722_v56 = vld [vmem:[#allocation10 + $0x14] sm:$0xf]  ;;  %v1637_v57 = vmax.f32 %v1381_v51, 0.0  ;;  %v3416_v51 = vld [vmem:[#allocation10 + $0x1c0] sm:$0xf] }
  0xf9   :  { %v1423_v28 = vadd.f32 %v1422_v27, %v1409_v16  ;;  %v3767_v27 = vld [vmem:[#allocation10 + $0x174] sm:$0xf0] }
  0xfb   :  { %v1437_v44 = vadd.f32 %v1436_v12, %v1423_v28  ;;  %v3440_v28 = vld [vmem:[#allocation10 + $0x1f0] sm:$0xf]  ;;  %v3783_v12 = vld [vmem:[#allocation10 + $0x1f4] sm:$0xf0] }
  0xfc   :  { %2123 = vmatpush.bf16.msrb.mxu0 %v3253_v58  ;;  %2137 = vmatpush.bf16.msrb.mxu1 %v3317_v62  ;;  %v3202_v58 = vld [vmem:[#allocation10 + $0x18] sm:$0xf0] }
  0xfd   :  { %v3266_v62 = vld [vmem:[#allocation10 + $0x98] sm:$0xf0]  ;;  %v3205_v32 = vor.u32 %v3722_v56, %v3202_v58  ;;  %v3759_v56 = vld [vmem:[#allocation10 + $0x134] sm:$0xf0]  ;;  %v3408_v58 = vld [vmem:[#allocation10 + $0x1b0] sm:$0xf] }
  0xfe   :  { %v3269_v1 = vor.u32 %v3738_v61, %v3266_v62  ;;  %v3775_v61 = vld [vmem:[#allocation10 + $0x1b4] sm:$0xf0] }
  0xff   :  { %v3409_v62 = vor.u32 %v3775_v61, %v3408_v58 }
 0x100   :  { %2124 = vmatpush.bf16.msrb.mxu0 %v3245_v6  ;;  %2138 = vmatpush.bf16.msrb.mxu1 %v3309_v8  ;;  %v1424_v54 = vpop.f32.mrf.mxu0  ;;  %v1464_v36 = vpop.f32.mrf.mxu3  ;;  %v3720_v6 = vld [vmem:[#allocation10 + $0x4] sm:$0xf] }
 0x101   :  { %v1450_v50 = vpop.f32.mrf.mxu2  ;;  %v1425_v59 = vadd.f32 %v1424_v54, %v1411_v47  ;;  %v1438_v63 = vpop.f32.mrf.mxu1  ;;  %v3777_v54 = vld [vmem:[#allocation10 + $0x1c4] sm:$0xf0] }
 0x102   :  { %v1451_v53 = vadd.f32 %v1450_v50, %v1437_v44  ;;  %v3433_v44 = vor.u32 %v3781_v40, %v3432_v37  ;;  %v3761_v50 = vld [vmem:[#allocation10 + $0x144] sm:$0xf0]  ;;  %v306_v40 = vperm.slane %v4093_v34, 3 }
 0x103   :  { %v1439_v8 = vadd.f32 %v1438_v63, %v1425_v59 }
 0x104   :  { %2125 = vmatpush.bf16.msrb.mxu0 %v3237_v2  ;;  %2139 = vmatpush.bf16.msrb.mxu1 %v3301_v35  ;;  %v1465_v60 = vadd.f32 %v1464_v36, %v1451_v53  ;;  %v3197_v2 = vor.u32 %v3720_v6, %v3194_v4  ;;  %v3353_v53 = vor.u32 %v3761_v50, %v3352_v49  ;;  %v3760_v49 = vld [vmem:[#allocation10 + $0x144] sm:$0xf] }
 0x106   :  { %v1638_v41 = vmax.f32 %v1465_v60, 0.0 }
 0x108   :  { %2126 = vmatpush.bf16.msrb.mxu0 %v3229_v17  ;;  %2140 = vmatpush.bf16.msrb.mxu1 %v3293_v30  ;;  %v1645_v7 = vpack.c.bf16 %v1638_v41, %v1637_v57  ;;  %v1466_v14 = vpop.f32.mrf.mxu3  ;;  %v3377_v17 = vor.u32 %v3767_v27, %v3376_v26  ;;  %v3441_v30 = vor.u32 %v3783_v12, %v3440_v28  ;;  %v3336_v57 = vld [vmem:[#allocation10 + $0x120] sm:$0xf]  ;;  %v3764_v12 = vld [vmem:[#allocation10 + $0x164] sm:$0xf] }
 0x109   :  { %v1452_v11 = vpop.f32.mrf.mxu2  ;;  %v3337_v41 = vor.u32 %v3757_v0, %v3336_v57 }
 0x10a   :  { %1649 = vst [vmem:[#allocation2] sm:$0xff] %v1645_v7  ;;  %v1453_v22 = vadd.f32 %v1452_v11, %v1439_v8  ;;  %2095 = vmatpush.bf16.msra.mxu2 %v3377_v17  ;;  %2109 = vmatpush.bf16.msra.mxu3 %v3441_v30  ;;  %v3328_v8 = vld [vmem:[#allocation10 + $0x110] sm:$0xf]  ;;  %v3370_v30 = vld [vmem:[#allocation10 + $0x168] sm:$0xf0] }
 0x10b   :  { %v3329_v11 = vor.u32 %v3755_v9, %v3328_v8  ;;  %v3373_v37 = vor.u32 %v3764_v12, %v3370_v30  ;;  %v3410_v8 = vld [vmem:[#allocation10 + $0x1b8] sm:$0xf0]  ;;  %v3756_v9 = vld [vmem:[#allocation10 + $0x124] sm:$0xf] }
 0x10c   :  { %2127 = vmatpush.bf16.msrb.mxu0 %v3221_v19  ;;  %2141 = vmatpush.bf16.msrb.mxu1 %v3285_v15  ;;  %v1467_v16 = vadd.f32 %v1466_v14, %v1453_v22  ;;  %v3424_v19 = vld [vmem:[#allocation10 + $0x1d0] sm:$0xf]  ;;  %v3779_v15 = vld [vmem:[#allocation10 + $0x1d4] sm:$0xf0]  ;;  %v3393_v14 = vor.u32 %v3771_v13, %v3392_v10  ;;  %v3338_v10 = vld [vmem:[#allocation10 + $0x128] sm:$0xf0] }
 0x10d   :  { %v3425_v47 = vor.u32 %v3779_v15, %v3424_v19  ;;  %v3762_v19 = vld [vmem:[#allocation10 + $0x154] sm:$0xf]  ;;  %v3362_v15 = vld [vmem:[#allocation10 + $0x158] sm:$0xf0]  ;;  %v3752_v30 = vld [vmem:[#allocation10 + $0x104] sm:$0xf] }
 0x10e   :  { %v1642_v35 = vmax.f32 %v1467_v16, 0.0  ;;  %2096 = vmatpush.bf16.msra.mxu2 %v3369_v38  ;;  %2110 = vmatpush.bf16.msra.mxu3 %v3433_v44  ;;  %v3753_v16 = vld [vmem:[#allocation10 + $0x104] sm:$0xf0]  ;;  %v3434_v38 = vld [vmem:[#allocation10 + $0x1e8] sm:$0xf0] }
 0x10f   :  { %v3437_v42 = vor.u32 %v3780_v31, %v3434_v38  ;;  %v3768_v38 = vld [vmem:[#allocation10 + $0x184] sm:$0xf] }
 0x110   :  { %2128 = vmatpush.bf16.msrb.mxu0 %v3213_v29  ;;  %2142 = vmatpush.bf16.msrb.mxu1 %v3277_v55  ;;  %v1647_v18 = vpack.c.bf16 %v1642_v35, %v1641_v23  ;;  %v3417_v29 = vor.u32 %v3777_v54, %v3416_v51  ;;  %v3344_v55 = vld [vmem:[#allocation10 + $0x130] sm:$0xf]  ;;  %v3354_v51 = vld [vmem:[#allocation10 + $0x148] sm:$0xf0] }
 0x111   :  { %v3176_v39 = vld [vmem:[#allocation2] sm:$0xf]  ;;  %v3716_v21 = vld [vmem:[#allocation2 + $0x4] sm:$0xf]  ;;  %v3345_v60 = vor.u32 %v3759_v56, %v3344_v55  ;;  %v3418_v54 = vld [vmem:[#allocation10 + $0x1c8] sm:$0xf0]  ;;  %v3357_v56 = vor.u32 %v3760_v49, %v3354_v51 }
 0x112   :  { %1651 = vst [vmem:[#allocation2 + $0x10] sm:$0xff] %v1647_v18  ;;  %2097 = vmatpush.bf16.msra.mxu2 %v3361_v45  ;;  %2111 = vmatpush.bf16.msra.mxu3 %v3425_v47  ;;  %v3384_v18 = vld [vmem:[#allocation10 + $0x180] sm:$0xf]  ;;  %v3778_v45 = vld [vmem:[#allocation10 + $0x1d4] sm:$0xf] }
 0x113   :  { %v3426_v47 = vld [vmem:[#allocation10 + $0x1d8] sm:$0xf0] }
 0x114   :  { %2129 = vmatpush.bf16.msrb.mxu0 %v3205_v32  ;;  %2143 = vmatpush.bf16.msrb.mxu1 %v3269_v1  ;;  %v3400_v32 = vld [vmem:[#allocation10 + $0x1a0] sm:$0xf]  ;;  %v3773_v1 = vld [vmem:[#allocation10 + $0x1a4] sm:$0xf0]  ;;  %v3429_v50 = vor.u32 %v3778_v45, %v3426_v47 }
 0x115   :  { %v3401_v6 = vor.u32 %v3773_v1, %v3400_v32  ;;  %v3758_v32 = vld [vmem:[#allocation10 + $0x134] sm:$0xf]  ;;  %v3346_v1 = vld [vmem:[#allocation10 + $0x138] sm:$0xf0] }
 0x116   :  { %2098 = vmatpush.bf16.msra.mxu2 %v3353_v53  ;;  %2112 = vmatpush.bf16.msra.mxu3 %v3417_v29  ;;  %v3776_v53 = vld [vmem:[#allocation10 + $0x1c4] sm:$0xf] }
 0x117   :  { %v3421_v58 = vor.u32 %v3776_v53, %v3418_v54 }
 0x118   :  { %2130 = vmatpush.bf16.msrb.mxu0 %v3197_v2  ;;  %2144 = vmatpush.bf16.msrb.mxu1 %v3261_v3  ;;  %v1478_v46 = vpop.f32.mrf.mxu0  ;;  %v4117_v48 = vpop.f32.mrf.mxu1  ;;  %v305_v2 = vperm.slane %v4093_v34, 2  ;;  %v3320_v3 = vld [vmem:[#allocation10 + $0x100] sm:$0xf] }
 0x119   :  { %v3718_v20 = vld [vmem:[#allocation2 + $0xc] sm:$0xf0]  ;;  %v3178_v24 = vld [vmem:[#allocation2 + $0x10] sm:$0xf0]  ;;  %v3321_v35 = vor.u32 %v3753_v16, %v3320_v3  ;;  %v3341_v16 = vor.u32 %v3756_v9, %v3338_v10  ;;  %v3789_v9 = vld [vmem:[#allocation12 + $0x18] sm:$0xff] }
 0x11a   :  { %v3177_v25 = vor.u32 %v3718_v20, %v3176_v39  ;;  %v3181_v5 = vor.u32 %v3716_v21, %v3178_v24  ;;  %2099 = vmatpush.bf16.msra.mxu2 %v3345_v60  ;;  %2113 = vmatpush.bf16.msra.mxu3 %v3409_v62  ;;  %v3769_v39 = vld [vmem:[#allocation10 + $0x184] sm:$0xf0]  ;;  %v3766_v20 = vld [vmem:[#allocation10 + $0x174] sm:$0xf]  ;;  %v3378_v24 = vld [vmem:[#allocation10 + $0x178] sm:$0xf0]  ;;  %v1479_v17 = vadd.f32 %v1478_v46, %v305_v2 }
 0x11b   :  { %v3385_v21 = vor.u32 %v3769_v39, %v3384_v18  ;;  %v3381_v26 = vor.u32 %v3766_v20, %v3378_v24  ;;  %v3365_v46 = vor.u32 %v3762_v19, %v3362_v15  ;;  %v3754_v18 = vld [vmem:[#allocation10 + $0x114] sm:$0xf]  ;;  %v3330_v20 = vld [vmem:[#allocation10 + $0x118] sm:$0xf0] }
 0x11c   :  { %2075 = vmatmul.bf16.vlgmr.msra.gmra.mxu0 %v3177_v25  ;;  %2089 = vmatmul.bf16.vlgmr.msra.gmra.mxu1 %v3181_v5  ;;  %v1493_v43 = vadd.f32 %v4117_v48, %v1479_v17  ;;  %v3394_v24 = vld [vmem:[#allocation10 + $0x198] sm:$0xf0] }
 0x11d   :  { %v3797_v10 = vld [vmem:[#allocation12 + $0x58] sm:$0xff] }
 0x11e   :  { %2100 = vmatpush.bf16.msra.mxu2 %v3337_v41  ;;  %2114 = vmatpush.bf16.msra.mxu3 %v3401_v6 }
 0x120   :  { %v4121_v36 = vpop.f32.mrf.mxu3  ;;  %v4123_v59 = vpop.f32.mrf.mxu0 }
 0x121   :  { %v4119_v52 = vpop.f32.mrf.mxu2  ;;  %v4125_v63 = vpop.f32.mrf.mxu1  ;;  %v1481_v34 = vadd.f32 %v4123_v59, %v305_v2  ;;  %v3774_v59 = vld [vmem:[#allocation10 + $0x1b4] sm:$0xf]  ;;  %v3402_v2 = vld [vmem:[#allocation10 + $0x1a8] sm:$0xf0] }
 0x122   :  { %2101 = vmatpush.bf16.msra.mxu2 %v3329_v11  ;;  %2115 = vmatpush.bf16.msra.mxu3 %v3393_v14  ;;  %v1507_v48 = vadd.f32 %v4119_v52, %v1493_v43  ;;  %v3349_v52 = vor.u32 %v3758_v32, %v3346_v1  ;;  %v3413_v13 = vor.u32 %v3774_v59, %v3410_v8  ;;  %v3772_v14 = vld [vmem:[#allocation10 + $0x1a4] sm:$0xf]  ;;  %v3791_v32 = vld [vmem:[#allocation12 + $0x28] sm:$0xff] }
 0x123   :  { %v1495_v61 = vadd.f32 %v4125_v63, %v1481_v34  ;;  %v3799_v1 = vld [vmem:[#allocation12 + $0x68] sm:$0xff]  ;;  %v3790_v59 = vld [vmem:[#allocation12 + $0x20] sm:$0xff] }
 0x124   :  { %v1521_v62 = vadd.f32 %v4121_v36, %v1507_v48 }
 0x126   :  { %2102 = vmatpush.bf16.msra.mxu2 %v3321_v35  ;;  %2116 = vmatpush.bf16.msra.mxu3 %v3385_v21  ;;  %v3405_v35 = vor.u32 %v3772_v14, %v3402_v2  ;;  %v3770_v21 = vld [vmem:[#allocation10 + $0x194] sm:$0xf]  ;;  %v1721_v14 = vld [vmem:[%s4168_s4] sm:$0x3] }
 0x127   :  { %v3397_v12 = vor.u32 %v3770_v21, %v3394_v24  ;;  %v1724_v24 = vperm.slane %v1721_v14, 1 }
 0x128   :  { %v4129_v7 = vpop.f32.mrf.mxu3 }
 0x129   :  { %v4127_v4 = vpop.f32.mrf.mxu2 }
 0x12a   :  { %2151 = vmatpush.bf16.msrb.mxu2 %v3381_v26  ;;  %v1509_v36 = vadd.f32 %v4127_v4, %v1495_v61  ;;  %v3333_v4 = vor.u32 %v3754_v18, %v3330_v20  ;;  %v3794_v20 = vld [vmem:[#allocation12 + $0x40] sm:$0xff] }
 0x12c   :  { %2131 = vmatmul.bf16.vlgmr.msrb.gmra.mxu0 %v3177_v25  ;;  %2145 = vmatmul.bf16.vlgmr.msrb.gmra.mxu1 %v3181_v5  ;;  %v3782_v25 = vld [vmem:[#allocation10 + $0x1f4] sm:$0xf]  ;;  %v3442_v5 = vld [vmem:[#allocation10 + $0x1f8] sm:$0xf0]  ;;  %v1523_v26 = vadd.f32 %v4129_v7, %v1509_v36  ;;  %v3787_v36 = vld [vmem:[#allocation12 + $0x8] sm:$0xff] }
 0x12d   :  { %v3445_v27 = vor.u32 %v3782_v25, %v3442_v5 }
 0x12e   :  { %2152 = vmatpush.bf16.msrb.mxu2 %v3373_v37  ;;  %v3322_v37 = vld [vmem:[#allocation10 + $0x108] sm:$0xf0] }
 0x12f   :  { %2165 = vmatpush.bf16.msrb.mxu3 %v3445_v27  ;;  %v3325_v7 = vor.u32 %v3752_v30, %v3322_v37 }
 0x132   :  { %2153 = vmatpush.bf16.msrb.mxu2 %v3365_v46 }
 0x133   :  { %2166 = vmatpush.bf16.msrb.mxu3 %v3437_v42 }
 0x136   :  { %2154 = vmatpush.bf16.msrb.mxu2 %v3357_v56 }
 0x137   :  { %2167 = vmatpush.bf16.msrb.mxu3 %v3429_v50 }
 0x138   :  { %v4131_v22 = vpop.f32.mrf.mxu0  ;;  %v4134_v23 = vpop.f32.mrf.mxu1 }
 0x139   :  { %v1535_v63 = vadd.f32 %v4131_v22, %v1521_v62  ;;  %v3801_v62 = vld [vmem:[#allocation12 + $0x78] sm:$0xff] }
 0x13a   :  { %2155 = vmatpush.bf16.msrb.mxu2 %v3349_v52  ;;  %2345 = vmatpush.bf16.msra.mxu1 %v3801_v62 }
 0x13b   :  { %2168 = vmatpush.bf16.msrb.mxu3 %v3421_v58  ;;  %v1549_v5 = vadd.f32 %v4134_v23, %v1535_v63 }
 0x13d   :  { %v1639_v42 = vmax.f32 %v1549_v5, 0.0 }
 0x13e   :  { %2156 = vmatpush.bf16.msrb.mxu2 %v3341_v16 }
 0x13f   :  { %2169 = vmatpush.bf16.msrb.mxu3 %v3413_v13  ;;  %v3796_v13 = vld [vmem:[#allocation12 + $0x50] sm:$0xff] }
 0x140   :  { %v1576_v33 = vpop.f32.mrf.mxu3  ;;  %v4138_v44 = vpop.f32.mrf.mxu0 }
 0x141   :  { %v1562_v28 = vpop.f32.mrf.mxu2  ;;  %v4140_v29 = vpop.f32.mrf.mxu1  ;;  %v1537_v43 = vadd.f32 %v4138_v44, %v1523_v26 }
 0x142   :  { %v1563_v55 = vadd.f32 %v1562_v28, %v306_v40  ;;  %2157 = vmatpush.bf16.msrb.mxu2 %v3333_v4 }
 0x143   :  { %2170 = vmatpush.bf16.msrb.mxu3 %v3405_v35  ;;  %v1551_v49 = vadd.f32 %v4140_v29, %v1537_v43  ;;  %v3793_v29 = vld [vmem:[#allocation12 + $0x38] sm:$0xff]  ;;  %v1723_v35 = vperm.slane %v1721_v14, 0 }
 0x144   :  { %v1577_v57 = vadd.f32 %v1576_v33, %v1563_v55  ;;  %2331 = vmatpush.bf16.msra.mxu0 %v3793_v29 }
 0x145   :  { %v1643_v54 = vmax.f32 %v1551_v49, 0.0 }
 0x146   :  { %2158 = vmatpush.bf16.msrb.mxu2 %v3325_v7 }
 0x147   :  { %2171 = vmatpush.bf16.msrb.mxu3 %v3397_v12 }
 0x148   :  { %v1578_v0 = vpop.f32.mrf.mxu3 }
 0x149   :  { %v1564_v60 = vpop.f32.mrf.mxu2 }
 0x14a   :  { %v1565_v3 = vadd.f32 %v1564_v60, %v306_v40  ;;  %v3386_v40 = vld [vmem:[#allocation10 + $0x188] sm:$0xf0] }
 0x14b   :  { %v3389_v15 = vor.u32 %v3768_v38, %v3386_v40 }
 0x14c   :  { %v1579_v27 = vadd.f32 %v1578_v0, %v1565_v3  ;;  %v3800_v0 = vld [vmem:[#allocation12 + $0x70] sm:$0xff]  ;;  %v3795_v3 = vld [vmem:[#allocation12 + $0x48] sm:$0xff] }
 0x14d   :  { %2172 = vmatpush.bf16.msrb.mxu3 %v3389_v15  ;;  %2346 = vmatpush.bf16.msra.mxu1 %v3800_v0 }
 0x151   :  { %2347 = vmatpush.bf16.msra.mxu1 %v3799_v1 }
 0x158   :  { %v1590_v41 = vpop.f32.mrf.mxu0  ;;  %v1604_v11 = vpop.f32.mrf.mxu1 }
 0x159   :  { %v1591_v6 = vadd.f32 %v1590_v41, %v1577_v57  ;;  %v3792_v57 = vld [vmem:[#allocation12 + $0x30] sm:$0xff] }
 0x15a   :  { %2332 = vmatpush.bf16.msra.mxu0 %v3792_v57 }
 0x15b   :  { %v1605_v39 = vadd.f32 %v1604_v11, %v1591_v6  ;;  %v3798_v6 = vld [vmem:[#allocation12 + $0x60] sm:$0xff]  ;;  %v3788_v11 = vld [vmem:[#allocation12 + $0x10] sm:$0xff] }
 0x15c   :  { %2348 = vmatpush.bf16.msra.mxu1 %v3798_v6 }
 0x15e   :  { %2333 = vmatpush.bf16.msra.mxu0 %v3791_v32 }
 0x160   :  { %v1618_v25 = vpop.f32.mrf.mxu2  ;;  %v1632_v22 = vpop.f32.mrf.mxu3  ;;  %2349 = vmatpush.bf16.msra.mxu1 %v3797_v10 }
 0x161   :  { %v1619_v17 = vadd.f32 %v1618_v25, %v1605_v39  ;;  %v1592_v28 = vpop.f32.mrf.mxu0  ;;  %v1606_v19 = vpop.f32.mrf.mxu1  ;;  %v3786_v39 = vld [vmem:[#allocation12] sm:$0xff] }
 0x162   :  { %v1593_v33 = vadd.f32 %v1592_v28, %v1579_v27  ;;  %2334 = vmatpush.bf16.msra.mxu0 %v3790_v59 }
 0x163   :  { %v1633_v31 = vadd.f32 %v1632_v22, %v1619_v17 }
 0x164   :  { %v1607_v46 = vadd.f32 %v1606_v19, %v1593_v33  ;;  %2350 = vmatpush.bf16.msra.mxu1 %v3796_v13 }
 0x165   :  { %v1640_v23 = vmax.f32 %v1633_v31, 0.0 }
 0x166   :  { %2335 = vmatpush.bf16.msra.mxu0 %v3789_v9 }
 0x167   :  { %v1646_v45 = vpack.c.bf16 %v1640_v23, %v1639_v42 }
 0x168   :  { %v1620_v47 = vpop.f32.mrf.mxu2  ;;  %v1634_v51 = vpop.f32.mrf.mxu3  ;;  %2351 = vmatpush.bf16.msra.mxu1 %v3795_v3 }
 0x169   :  { %1650 = vst [vmem:[#allocation2 + $0x8] sm:$0xff] %v1646_v45  ;;  %v1621_v50 = vadd.f32 %v1620_v47, %v1607_v46 }
 0x16a   :  { %2336 = vmatpush.bf16.msra.mxu0 %v3788_v11 }
 0x16b   :  { %v1635_v53 = vadd.f32 %v1634_v51, %v1621_v50 }
 0x16c   :  { %2352 = vmatpush.bf16.msra.mxu1 %v3794_v20 }
 0x16d   :  { %v1644_v34 = vmax.f32 %v1635_v53, 0.0 }
 0x16e   :  { %2337 = vmatpush.bf16.msra.mxu0 %v3787_v36 }
 0x16f   :  { %v1648_v44 = vpack.c.bf16 %v1644_v34, %v1643_v54 }
 0x170   :  { %v3184_v48 = vld [vmem:[#allocation2 + $0x8] sm:$0xf]  ;;  %v3717_v56 = vld [vmem:[#allocation2 + $0xc] sm:$0xf] }
 0x171   :  { %1652 = vst [vmem:[#allocation2 + $0x18] sm:$0xff] %v1648_v44 }
 0x172   :  { %2338 = vmatpush.bf16.msra.mxu0 %v3786_v39 }
 0x178   :  { %v3719_v55 = vld [vmem:[#allocation2 + $0x14] sm:$0xf0]  ;;  %v3186_v58 = vld [vmem:[#allocation2 + $0x18] sm:$0xf0] }
 0x179   :  { %v3185_v60 = vor.u32 %v3719_v55, %v3184_v48  ;;  %v3189_v61 = vor.u32 %v3717_v56, %v3186_v58 }
 0x17b   :  { %2103 = vmatmul.bf16.vlgmr.msra.gmra.mxu2 %v3185_v60  ;;  %2117 = vmatmul.bf16.vlgmr.msra.gmra.mxu3 %v3189_v61 }
 0x18b   :  { %2159 = vmatmul.bf16.vlgmr.msrb.gmra.mxu2 %v3185_v60  ;;  %2173 = vmatmul.bf16.vlgmr.msrb.gmra.mxu3 %v3189_v61  ;;  %v3816_v61 = vld [vmem:[%s4170_s6] ss:$0 sm:$0xff] }
 0x199   :  { %v2076_v41 = vpop.f32.mrf.mxu0  ;;  %v2090_v52 = vpop.f32.mrf.mxu1 }
 0x19a   :  { %v2077_v21 = vadd.f32 %v2076_v41, %v1723_v35 }
 0x19c   :  { %v2091_v26 = vadd.f32 %v2090_v52, %v2077_v21 }
 0x1a1   :  { %v2078_v8 = vpop.f32.mrf.mxu0  ;;  %v2092_v16 = vpop.f32.mrf.mxu1 }
 0x1a2   :  { %v2079_v28 = vadd.f32 %v2078_v8, %v1723_v35 }
 0x1a4   :  { %v2093_v38 = vadd.f32 %v2092_v16, %v2079_v28 }
 0x1a9   :  { %v2132_v18 = vpop.f32.mrf.mxu0  ;;  %v2146_v17 = vpop.f32.mrf.mxu1 }
 0x1aa   :  { %v2133_v27 = vadd.f32 %v2132_v18, %v1724_v24 }
 0x1ac   :  { %v2147_v4 = vadd.f32 %v2146_v17, %v2133_v27 }
 0x1b1   :  { %v2134_v12 = vpop.f32.mrf.mxu0  ;;  %v2148_v7 = vpop.f32.mrf.mxu1 }
 0x1b2   :  { %v2135_v40 = vadd.f32 %v2134_v12, %v1724_v24 }
 0x1b4   :  { %v2149_v15 = vadd.f32 %v2148_v7, %v2135_v40 }
 0x1fe   :  { %v2104_v2 = vpop.f32.mrf.mxu2  ;;  %v2118_v63 = vpop.f32.mrf.mxu3 }
 0x1ff   :  { %v2105_v22 = vadd.f32 %v2104_v2, %v2091_v26 }
 0x201   :  { %v2119_v33 = vadd.f32 %v2118_v63, %v2105_v22 }
 0x203   :  { %v2179_v43 = vmax.f32 %v2119_v33, 0.0 }
 0x206   :  { %v2106_v25 = vpop.f32.mrf.mxu2  ;;  %v2120_v5 = vpop.f32.mrf.mxu3 }
 0x207   :  { %v2107_v23 = vadd.f32 %v2106_v25, %v2093_v38 }
 0x209   :  { %v2121_v47 = vadd.f32 %v2120_v5, %v2107_v23 }
 0x20b   :  { %v2181_v53 = vmax.f32 %v2121_v47, 0.0 }
 0x20e   :  { %v2160_v30 = vpop.f32.mrf.mxu2  ;;  %v2174_v31 = vpop.f32.mrf.mxu3 }
 0x20f   :  { %v2161_v37 = vadd.f32 %v2160_v30, %v2147_v4 }
 0x211   :  { %v2175_v42 = vadd.f32 %v2174_v31, %v2161_v37 }
 0x213   :  { %v2180_v19 = vmax.f32 %v2175_v42, 0.0 }
 0x215   :  { %v2183_v45 = vpack.c.bf16 %v2180_v19, %v2179_v43 }
 0x216   :  { %v2162_v46 = vpop.f32.mrf.mxu2  ;;  %v2176_v50 = vpop.f32.mrf.mxu3 }
 0x217   :  { %2185 = vst [vmem:[#allocation3] sm:$0xff] %v2183_v45  ;;  %v2163_v49 = vadd.f32 %v2162_v46, %v2149_v15 }
 0x219   :  { %v2177_v51 = vadd.f32 %v2176_v50, %v2163_v49 }
 0x21b   :  { %v2182_v54 = vmax.f32 %v2177_v51, 0.0 }
 0x21d   :  { %v2184_v34 = vpack.c.bf16 %v2182_v54, %v2181_v53 }
 0x21e   :  { %v3448_v44 = vld [vmem:[#allocation3] sm:$0xf]  ;;  %v3784_v55 = vld [vmem:[#allocation3 + $0x4] sm:$0xf] }
 0x21f   :  { %2186 = vst [vmem:[#allocation3 + $0x8] sm:$0xff] %v2184_v34 }
 0x226   :  { %v3785_v48 = vld [vmem:[#allocation3 + $0x4] sm:$0xf0]  ;;  %v3450_v56 = vld [vmem:[#allocation3 + $0x8] sm:$0xf0] }
 0x227   :  { %v3449_v58 = vor.u32 %v3785_v48, %v3448_v44  ;;  %v3453_v60 = vor.u32 %v3784_v55, %v3450_v56 }
 0x229   :  { %2339 = vmatmul.bf16.vlgmr.msra.gmra.mxu0 %v3449_v58  ;;  %2353 = vmatmul.bf16.vlgmr.msra.gmra.mxu1 %v3453_v60 }
 0x2a6   :  { %v2340_v29 = vpop.f32.mrf.mxu0  ;;  %v2354_v62 = vpop.f32.mrf.mxu1 }
 0x2a7   :  { %v2341_v57 = vadd.f32 %v3816_v61, %v2340_v29 }
 0x2a9   :  { %v2355_v0 = vadd.f32 %v2354_v62, %v2341_v57 }
 0x2ab   :  { %2359 = vst [vmem:[#allocation13] sm:$0xff] %v2355_v0 }
 0x2ae   :  { %v2342_v41 = vpop.f32.mrf.mxu0  ;;  %v2356_v1 = vpop.f32.mrf.mxu1 }
 0x2af   :  { %v2343_v32 = vadd.f32 %v3816_v61, %v2342_v41 }
 0x2b1   :  { %v2357_v59 = vadd.f32 %v2356_v1, %v2343_v32 }
 0x2b3   :  { %2360 = vst [vmem:[#allocation13 + $0x8] sm:$0xff] %v2357_v59 }
 0x2b4   :  { %2373 = dma.vmem_to_hbm [thread:$0]  %s2366_s10, 256, %s2368_s1, [#allocation6], %s3973_s13, %s3973_s13, %s3974_s14  }
 0x2b5   :  { %3967 = dma.done.wait [#allocation6], 256  }
 0x2b6   :  { %3968 = vsyncadd [#allocation6], 4294967040 }
 0x2b7   :  { %2378 = vsyncpa [#allocation5], 1 }
 0x2b8   :  { %2379 = vsyncpa [#allocation8], 1 }
 0x2b9   :  { %2380 = vsyncpa [#allocation11], 1 }
 0x2ba   :  { %2381 = vsyncpa [#allocation6], 1 }

// kernel: tpu_custom_call.1
= control target key start
LH: loop header
LB: loop body
LE: loop exit
PB: predicated region body
PF: predicated region fallthrough
CT: control target
= control target key end

     0   :  { %12 = vsyncpa [#allocation5], 0  ;;  %s4164_s0 = inlined_call_operand.hbm [shape: bf16[16,768], index: 0, kind: input, shape index: {}]   ;;  %s4165_s1 = inlined_call_operand.hbm [shape: bf16[768,512], index: 1, kind: input, shape index: {}]   ;;  %s4166_s2 = inlined_call_operand.hbm [shape: f32[1,512], index: 2, kind: input, shape index: {}]   ;;  %s4167_s3 = inlined_call_operand.hbm [shape: bf16[512,256], index: 3, kind: input, shape index: {}]   ;;  %s4168_s4 = inlined_call_operand.vmem [shape: f32[1,256], index: 4, kind: input, shape index: {}]   ;;  %s4169_s5 = inlined_call_operand.hbm [shape: bf16[256,128], index: 5, kind: input, shape index: {}]   ;;  %s4170_s6 = inlined_call_operand.vmem [shape: f32[1,128], index: 6, kind: input, shape index: {}]   ;;  %s4171_s7 = inlined_call_operand.hbm [shape: f32[16,128], index: 7, kind: output, shape index: {}]  }
   0x1   :  { %13 = vsyncpa [#allocation8], 0 }
   0x2   :  { %14 = vsyncpa [#allocation11], 0  ;;  %s33_s26 = sshll.u32 %s4165_s1, 4  ;;  %s34_s26 = int_to_ptr.hbm [resolvable:$true] %s33_s26 }
   0x3   :  { %15 = vsyncpa [#allocation6], 0  ;;  %s3969_s27 = smov [#allocation7]   ;;  %s57_s8 = sshll.u32 %s4167_s3, 4  ;;  %s58_s8 = int_to_ptr.hbm [resolvable:$true] %s57_s8 }
   0x4   :  { %s35_s28 = sshll.u32 %s3969_s27, 4  ;;  %s3970_s9 = smov 256   ;;  %s36_s28 = int_to_ptr.vmem [resolvable:$true] %s35_s28 }
   0x5   :  { %s3971_s10 = smov 16   ;;  %s3972_s11 = smov [#allocation10]  }
   0x6   :  { %41 = dma.hbm_to_vmem [thread:$0]  %s34_s26, 24576, %s36_s28, [#allocation8], %s3970_s9, %s3970_s9, %s3971_s10  }
   0x7   :  { %s59_s12 = sshll.u32 %s3972_s11, 4  ;;  %s3973_s13 = smov 128   ;;  %s60_s12 = int_to_ptr.vmem [resolvable:$true] %s59_s12 }
   0x8   :  { %s3974_s14 = smov 8   ;;  %s20_s16 = sshll.u32 %s4164_s0, 4  ;;  %s21_s16 = int_to_ptr.hbm [resolvable:$true] %s20_s16 }
   0x9   :  { %65 = dma.hbm_to_vmem [thread:$0]  %s58_s8, 8192, %s60_s12, [#allocation11], %s3973_s13, %s3973_s13, %s3974_s14  }
   0xa   :  { %s3975_s17 = smov [#allocation4]   ;;  %s47_s20 = sshll.u32 %s4166_s2, 4  ;;  %s48_s20 = int_to_ptr.hbm [resolvable:$true] %s47_s20 }
   0xb   :  { %s22_s3 = sshll.u32 %s3975_s17, 4  ;;  %s3976_s21 = smov 384   ;;  %s23_s3 = int_to_ptr.vmem [resolvable:$true] %s22_s3 }
   0xc   :  { %s3977_s22 = smov 24   ;;  %s3978_s23 = smov [#allocation9]  }
   0xd   :  { %28 = dma.hbm_to_vmem [thread:$0]  %s21_s16, 768, %s23_s3, [#allocation5], %s3976_s21, %s3976_s21, %s3977_s22  }
   0xe   :  { %s49_s24 = sshll.u32 %s3978_s23, 4  ;;  %s72_s27 = sshll.u32 %s4169_s5, 4  ;;  %s50_s24 = int_to_ptr.vmem [resolvable:$true] %s49_s24  ;;  %s73_s27 = int_to_ptr.hbm [resolvable:$true] %s72_s27 }
   0xf   :  { %52 = dma.hbm_to_vmem [thread:$0]  %s48_s20, 64, %s50_s24, [#allocation8]  }
  0x10   :  { %s3979_s0 = smov [#allocation12]   ;;  %s3980_s29 = smov 64  }
  0x11   :  { %s74_s28 = sshll.u32 %s3979_s0, 4  ;;  %s3981_s30 = smov 4   ;;  %s75_s28 = int_to_ptr.vmem [resolvable:$true] %s74_s28 }
  0x12   :  { %80 = dma.hbm_to_vmem [thread:$0]  %s73_s27, 2048, %s75_s28, [#allocation11], %s3980_s29, %s3980_s29, %s3981_s30  }
  0x13   :  { %3961 = dma.done.wait [#allocation5], 768  }
  0x14   :  { %3962 = vsyncadd [#allocation5], 4294966528 }
  0x15   :  { %3963 = dma.done.wait [#allocation8], 24640  }
  0x16   :  { %3964 = vsyncadd [#allocation8], 4294942656 }
  0x17   :  { %3965 = dma.done.wait [#allocation11], 10240  }
  0x18   :  { %3966 = vsyncadd [#allocation11], 4294957056  ;;  %v2520_v0 = vld [vmem:[#allocation7 + $0xe0] sm:$0xf]  ;;  %v3554_v1 = vld [vmem:[#allocation7 + $0xec] sm:$0xf0] }
  0x19   :  { %v2648_v2 = vld [vmem:[#allocation7 + $0x1e0] sm:$0xf]  ;;  %v2521_v3 = vor.u32 %v3554_v1, %v2520_v0  ;;  %v3586_v4 = vld [vmem:[#allocation7 + $0x1ec] sm:$0xf0]  ;;  %s3982_s9 = smov [#allocation13]   ;;  %s2367_s1 = sshll.u32 %s4171_s7, 4  ;;  %s2368_s1 = int_to_ptr.hbm [resolvable:$true] %s2367_s1 }
  0x1a   :  { %v2776_v5 = vld [vmem:[#allocation7 + $0x2e0] sm:$0xf]  ;;  %v3618_v6 = vld [vmem:[#allocation7 + $0x2ec] sm:$0xf0]  ;;  %v2649_v7 = vor.u32 %v3586_v4, %v2648_v2  ;;  %s2365_s10 = sshll.u32 %s3982_s9, 4  ;;  %s2366_s10 = int_to_ptr.vmem [resolvable:$true] %s2365_s10 }
  0x1b   :  { %v2777_v8 = vor.u32 %v3618_v6, %v2776_v5  ;;  %v2904_v9 = vld [vmem:[#allocation7 + $0x3e0] sm:$0xf]  ;;  %v3650_v10 = vld [vmem:[#allocation7 + $0x3ec] sm:$0xf0]  ;;  %1301 = vmatpush.bf16.msra.mxu0 %v2521_v3 }
  0x1c   :  { %v2504_v11 = vld [vmem:[#allocation7 + $0xc0] sm:$0xf]  ;;  %v2905_v12 = vor.u32 %v3650_v10, %v2904_v9  ;;  %v3550_v13 = vld [vmem:[#allocation7 + $0xcc] sm:$0xf0]  ;;  %1315 = vmatpush.bf16.msra.mxu1 %v2649_v7 }
  0x1d   :  { %v2632_v14 = vld [vmem:[#allocation7 + $0x1c0] sm:$0xf]  ;;  %v3582_v15 = vld [vmem:[#allocation7 + $0x1cc] sm:$0xf0]  ;;  %1329 = vmatpush.bf16.msra.mxu2 %v2777_v8  ;;  %v2505_v16 = vor.u32 %v3550_v13, %v2504_v11 }
  0x1e   :  { %v2633_v17 = vor.u32 %v3582_v15, %v2632_v14  ;;  %v2760_v18 = vld [vmem:[#allocation7 + $0x2c0] sm:$0xf]  ;;  %v3614_v19 = vld [vmem:[#allocation7 + $0x2cc] sm:$0xf0]  ;;  %1343 = vmatpush.bf16.msra.mxu3 %v2905_v12 }
  0x1f   :  { %v2888_v20 = vld [vmem:[#allocation7 + $0x3c0] sm:$0xf]  ;;  %v2761_v21 = vor.u32 %v3614_v19, %v2760_v18  ;;  %v3646_v22 = vld [vmem:[#allocation7 + $0x3cc] sm:$0xf0]  ;;  %1302 = vmatpush.bf16.msra.mxu0 %v2505_v16 }
  0x20   :  { %v2488_v23 = vld [vmem:[#allocation7 + $0xa0] sm:$0xf]  ;;  %v3546_v24 = vld [vmem:[#allocation7 + $0xac] sm:$0xf0]  ;;  %v2889_v25 = vor.u32 %v3646_v22, %v2888_v20  ;;  %1316 = vmatpush.bf16.msra.mxu1 %v2633_v17 }
  0x21   :  { %v2616_v26 = vld [vmem:[#allocation7 + $0x1a0] sm:$0xf]  ;;  %v3578_v27 = vld [vmem:[#allocation7 + $0x1ac] sm:$0xf0]  ;;  %v2489_v29 = vor.u32 %v3546_v24, %v2488_v23  ;;  %1330 = vmatpush.bf16.msra.mxu2 %v2761_v21 }
  0x22   :  { %v2744_v28 = vld [vmem:[#allocation7 + $0x2a0] sm:$0xf]  ;;  %v3610_v30 = vld [vmem:[#allocation7 + $0x2ac] sm:$0xf0]  ;;  %v2617_v33 = vor.u32 %v3578_v27, %v2616_v26  ;;  %1344 = vmatpush.bf16.msra.mxu3 %v2889_v25 }
  0x23   :  { %v2872_v31 = vld [vmem:[#allocation7 + $0x3a0] sm:$0xf]  ;;  %v3642_v32 = vld [vmem:[#allocation7 + $0x3ac] sm:$0xf0]  ;;  %v2745_v34 = vor.u32 %v3610_v30, %v2744_v28  ;;  %1303 = vmatpush.bf16.msra.mxu0 %v2489_v29 }
  0x24   :  { %v2472_v35 = vld [vmem:[#allocation7 + $0x80] sm:$0xf]  ;;  %v3542_v36 = vld [vmem:[#allocation7 + $0x8c] sm:$0xf0]  ;;  %v2873_v38 = vor.u32 %v3642_v32, %v2872_v31  ;;  %1317 = vmatpush.bf16.msra.mxu1 %v2617_v33  ;;  %v3552_v33 = vld [vmem:[#allocation7 + $0xe4] sm:$0xf] }
  0x25   :  { %v2600_v37 = vld [vmem:[#allocation7 + $0x180] sm:$0xf]  ;;  %v3574_v39 = vld [vmem:[#allocation7 + $0x18c] sm:$0xf0]  ;;  %v2473_v44 = vor.u32 %v3542_v36, %v2472_v35  ;;  %1331 = vmatpush.bf16.msra.mxu2 %v2745_v34  ;;  %v2522_v34 = vld [vmem:[#allocation7 + $0xf0] sm:$0xf0] }
  0x26   :  { %v2728_v40 = vld [vmem:[#allocation7 + $0x280] sm:$0xf]  ;;  %v3606_v41 = vld [vmem:[#allocation7 + $0x28c] sm:$0xf0]  ;;  %v2601_v45 = vor.u32 %v3574_v39, %v2600_v37  ;;  %1345 = vmatpush.bf16.msra.mxu3 %v2873_v38  ;;  %v3584_v37 = vld [vmem:[#allocation7 + $0x1e4] sm:$0xf] }
  0x27   :  { %v2856_v42 = vld [vmem:[#allocation7 + $0x380] sm:$0xf]  ;;  %v3638_v43 = vld [vmem:[#allocation7 + $0x38c] sm:$0xf0]  ;;  %v2729_v46 = vor.u32 %v3606_v41, %v2728_v40  ;;  %1304 = vmatpush.bf16.msra.mxu0 %v2473_v44  ;;  %v2650_v38 = vld [vmem:[#allocation7 + $0x1f0] sm:$0xf0] }
  0x28   :  { %v2456_v47 = vld [vmem:[#allocation7 + $0x60] sm:$0xf]  ;;  %v3538_v48 = vld [vmem:[#allocation7 + $0x6c] sm:$0xf0]  ;;  %v2857_v50 = vor.u32 %v3638_v43, %v2856_v42  ;;  %1318 = vmatpush.bf16.msra.mxu1 %v2601_v45  ;;  %v2525_v43 = vor.u32 %v3552_v33, %v2522_v34  ;;  %v2458_v33 = vld [vmem:[#allocation7 + $0x70] sm:$0xf0] }
  0x29   :  { %v2584_v49 = vld [vmem:[#allocation7 + $0x160] sm:$0xf]  ;;  %v3570_v51 = vld [vmem:[#allocation7 + $0x16c] sm:$0xf0]  ;;  %v2457_v56 = vor.u32 %v3538_v48, %v2456_v47  ;;  %1332 = vmatpush.bf16.msra.mxu2 %v2729_v46  ;;  %v2653_v47 = vor.u32 %v3584_v37, %v2650_v38  ;;  %v3548_v48 = vld [vmem:[#allocation7 + $0xc4] sm:$0xf] }
  0x2a   :  { %v2712_v52 = vld [vmem:[#allocation7 + $0x260] sm:$0xf]  ;;  %v3602_v53 = vld [vmem:[#allocation7 + $0x26c] sm:$0xf0]  ;;  %v2585_v57 = vor.u32 %v3570_v51, %v2584_v49  ;;  %1346 = vmatpush.bf16.msra.mxu3 %v2857_v50  ;;  %v2506_v49 = vld [vmem:[#allocation7 + $0xd0] sm:$0xf0] }
  0x2b   :  { %v2840_v54 = vld [vmem:[#allocation7 + $0x360] sm:$0xf]  ;;  %v3634_v55 = vld [vmem:[#allocation7 + $0x36c] sm:$0xf0]  ;;  %v2713_v58 = vor.u32 %v3602_v53, %v2712_v52  ;;  %1305 = vmatpush.bf16.msra.mxu0 %v2457_v56  ;;  %v3580_v50 = vld [vmem:[#allocation7 + $0x1c4] sm:$0xf] }
  0x2c   :  { %v2440_v59 = vld [vmem:[#allocation7 + $0x40] sm:$0xf]  ;;  %v3534_v60 = vld [vmem:[#allocation7 + $0x4c] sm:$0xf0]  ;;  %v2841_v62 = vor.u32 %v3634_v55, %v2840_v54  ;;  %1319 = vmatpush.bf16.msra.mxu1 %v2585_v57  ;;  %v2634_v51 = vld [vmem:[#allocation7 + $0x1d0] sm:$0xf0] }
  0x2d   :  { %v2568_v61 = vld [vmem:[#allocation7 + $0x140] sm:$0xf]  ;;  %v3566_v63 = vld [vmem:[#allocation7 + $0x14c] sm:$0xf0]  ;;  %v2441_v4 = vor.u32 %v3534_v60, %v2440_v59  ;;  %1333 = vmatpush.bf16.msra.mxu2 %v2713_v58  ;;  %v3521_v53 = vld [vmem:[#allocation4 + $0x14] sm:$0xf0]  ;;  %v2509_v59 = vor.u32 %v3548_v48, %v2506_v49 }
  0x2e   :  { %v2696_v0 = vld [vmem:[#allocation7 + $0x240] sm:$0xf]  ;;  %v3598_v1 = vld [vmem:[#allocation7 + $0x24c] sm:$0xf0]  ;;  %v2569_v5 = vor.u32 %v3566_v63, %v2568_v61  ;;  %1347 = vmatpush.bf16.msra.mxu3 %v2841_v62  ;;  %v3544_v62 = vld [vmem:[#allocation7 + $0xa4] sm:$0xf]  ;;  %v2637_v63 = vor.u32 %v3580_v50, %v2634_v51 }
  0x2f   :  { %v2824_v2 = vld [vmem:[#allocation7 + $0x340] sm:$0xf]  ;;  %v3630_v3 = vld [vmem:[#allocation7 + $0x34c] sm:$0xf0]  ;;  %v2697_v6 = vor.u32 %v3598_v1, %v2696_v0  ;;  %1306 = vmatpush.bf16.msra.mxu0 %v2441_v4  ;;  %v2490_v0 = vld [vmem:[#allocation7 + $0xb0] sm:$0xf0] }
  0x30   :  { %v2424_v7 = vld [vmem:[#allocation7 + $0x20] sm:$0xf]  ;;  %v3530_v8 = vld [vmem:[#allocation7 + $0x2c] sm:$0xf0]  ;;  %v2825_v10 = vor.u32 %v3630_v3, %v2824_v2  ;;  %1320 = vmatpush.bf16.msra.mxu1 %v2569_v5  ;;  %v3518_v1 = vld [vmem:[#allocation4 + $0x4] sm:$0xf] }
  0x31   :  { %v2552_v9 = vld [vmem:[#allocation7 + $0x120] sm:$0xf]  ;;  %v3562_v11 = vld [vmem:[#allocation7 + $0x12c] sm:$0xf0]  ;;  %v2425_v16 = vor.u32 %v3530_v8, %v2424_v7  ;;  %1334 = vmatpush.bf16.msra.mxu2 %v2697_v6  ;;  %v2386_v2 = vld [vmem:[#allocation4 + $0x18] sm:$0xf0] }
  0x32   :  { %v2680_v12 = vld [vmem:[#allocation7 + $0x220] sm:$0xf]  ;;  %v3594_v13 = vld [vmem:[#allocation7 + $0x22c] sm:$0xf0]  ;;  %v2553_v19 = vor.u32 %v3562_v11, %v2552_v9  ;;  %1348 = vmatpush.bf16.msra.mxu3 %v2825_v10  ;;  %v3576_v3 = vld [vmem:[#allocation7 + $0x1a4] sm:$0xf]  ;;  %v4044_v6 = vor.u32 %v3518_v1, %v2386_v2 }
  0x33   :  { %v2808_v14 = vld [vmem:[#allocation7 + $0x320] sm:$0xf]  ;;  %v3626_v15 = vld [vmem:[#allocation7 + $0x32c] sm:$0xf0]  ;;  %v2681_v20 = vor.u32 %v3594_v13, %v2680_v12  ;;  %1307 = vmatpush.bf16.msra.mxu0 %v2425_v16  ;;  %v2618_v4 = vld [vmem:[#allocation7 + $0x1b0] sm:$0xf0]  ;;  %v2493_v12 = vor.u32 %v3544_v62, %v2490_v0 }
  0x34   :  { %v2408_v17 = vld [vmem:[#allocation7] sm:$0xf]  ;;  %v3526_v18 = vld [vmem:[#allocation7 + $0xc] sm:$0xf0]  ;;  %v2809_v24 = vor.u32 %v3626_v15, %v2808_v14  ;;  %1321 = vmatpush.bf16.msra.mxu1 %v2553_v19  ;;  %v3540_v13 = vld [vmem:[#allocation7 + $0x84] sm:$0xf]  ;;  %v2621_v16 = vor.u32 %v3576_v3, %v2618_v4 }
  0x35   :  { %v2536_v21 = vld [vmem:[#allocation7 + $0x100] sm:$0xf]  ;;  %v3558_v22 = vld [vmem:[#allocation7 + $0x10c] sm:$0xf0]  ;;  %v2409_v31 = vor.u32 %v3526_v18, %v2408_v17  ;;  %1335 = vmatpush.bf16.msra.mxu2 %v2681_v20  ;;  %v2474_v14 = vld [vmem:[#allocation7 + $0x90] sm:$0xf0] }
  0x36   :  { %v2664_v23 = vld [vmem:[#allocation7 + $0x200] sm:$0xf]  ;;  %v3590_v25 = vld [vmem:[#allocation7 + $0x20c] sm:$0xf0]  ;;  %v2537_v35 = vor.u32 %v3558_v22, %v2536_v21  ;;  %1349 = vmatpush.bf16.msra.mxu3 %v2809_v24  ;;  %v2392_v15 = vld [vmem:[#allocation4 + $0x8] sm:$0xf] }
  0x37   :  { %v2792_v26 = vld [vmem:[#allocation7 + $0x300] sm:$0xf]  ;;  %v3622_v27 = vld [vmem:[#allocation7 + $0x30c] sm:$0xf0]  ;;  %v2665_v36 = vor.u32 %v3590_v25, %v2664_v23  ;;  %1308 = vmatpush.bf16.msra.mxu0 %v2409_v31  ;;  %v3519_v18 = vld [vmem:[#allocation4 + $0xc] sm:$0xf] }
  0x38   :  { %v3032_v28 = vld [vmem:[#allocation7 + $0x4e0] sm:$0xf]  ;;  %v3682_v29 = vld [vmem:[#allocation7 + $0x4ec] sm:$0xf0]  ;;  %v2793_v39 = vor.u32 %v3622_v27, %v2792_v26  ;;  %1322 = vmatpush.bf16.msra.mxu1 %v2537_v35  ;;  %v2394_v19 = vld [vmem:[#allocation4 + $0x20] sm:$0xf0]  ;;  %v2477_v26 = vor.u32 %v3540_v13, %v2474_v14 }
  0x39   :  { %v3160_v30 = vld [vmem:[#allocation7 + $0x5e0] sm:$0xf]  ;;  %v3714_v32 = vld [vmem:[#allocation7 + $0x5ec] sm:$0xf0]  ;;  %v3033_v40 = vor.u32 %v3682_v29, %v3032_v28  ;;  %1336 = vmatpush.bf16.msra.mxu2 %v2665_v36  ;;  %v3572_v20 = vld [vmem:[#allocation7 + $0x184] sm:$0xf]  ;;  %v4049_v23 = vor.u32 %v3519_v18, %v2394_v19 }
  0x3a   :  { %v3016_v41 = vld [vmem:[#allocation7 + $0x4c0] sm:$0xf]  ;;  %v3161_v42 = vor.u32 %v3714_v32, %v3160_v30  ;;  %v3678_v44 = vld [vmem:[#allocation7 + $0x4cc] sm:$0xf0]  ;;  %1350 = vmatpush.bf16.msra.mxu3 %v2793_v39  ;;  %v2602_v21 = vld [vmem:[#allocation7 + $0x190] sm:$0xf0] }
  0x3b   :  { %v3144_v45 = vld [vmem:[#allocation7 + $0x5c0] sm:$0xf]  ;;  %v3710_v46 = vld [vmem:[#allocation7 + $0x5cc] sm:$0xf0]  ;;  %1357 = vmatpush.bf16.msrb.mxu0 %v3033_v40  ;;  %v3017_v54 = vor.u32 %v3678_v44, %v3016_v41  ;;  %1323 = vmatmul.bf16.vlgmr.msra.gmra.mxu1 %v4044_v6  ;;  %v2605_v30 = vor.u32 %v3572_v20, %v2602_v21  ;;  %v3536_v32 = vld [vmem:[#allocation7 + $0x64] sm:$0xf] }
  0x3c   :  { %v2384_v52 = vld [vmem:[#allocation4] sm:$0xf]  ;;  %v3000_v55 = vld [vmem:[#allocation7 + $0x4a0] sm:$0xf]  ;;  %1371 = vmatpush.bf16.msrb.mxu1 %v3161_v42  ;;  %v3145_v58 = vor.u32 %v3710_v46, %v3144_v45  ;;  %v3568_v34 = vld [vmem:[#allocation7 + $0x164] sm:$0xf]  ;;  %v2461_v38 = vor.u32 %v3536_v32, %v2458_v33 }
  0x3d   :  { %v3674_v56 = vld [vmem:[#allocation7 + $0x4ac] sm:$0xf0]  ;;  %v4041_v57 = vor.u32 %v3521_v53, %v2384_v52  ;;  %1385 = vmatpush.bf16.msrb.mxu2 %v2525_v43  ;;  %v3128_v60 = vld [vmem:[#allocation7 + $0x5a0] sm:$0xf]  ;;  %v2586_v35 = vld [vmem:[#allocation7 + $0x170] sm:$0xf0]  ;;  %1351 = vmatmul.bf16.vlgmr.msra.gmra.mxu3 %v4049_v23 }
  0x3e   :  { %v3706_v61 = vld [vmem:[#allocation7 + $0x5ac] sm:$0xf0]  ;;  %1399 = vmatpush.bf16.msrb.mxu3 %v2653_v47  ;;  %v2984_v5 = vld [vmem:[#allocation7 + $0x480] sm:$0xf]  ;;  %v3001_v7 = vor.u32 %v3674_v56, %v3000_v55  ;;  %v2589_v42 = vor.u32 %v3568_v34, %v2586_v35  ;;  %v3532_v44 = vld [vmem:[#allocation7 + $0x44] sm:$0xf] }
  0x3f   :  { %1309 = vmatmul.bf16.vlgmr.msra.gmra.mxu0 %v4041_v57  ;;  %v3670_v8 = vld [vmem:[#allocation7 + $0x48c] sm:$0xf0]  ;;  %v3112_v9 = vld [vmem:[#allocation7 + $0x580] sm:$0xf]  ;;  %v3129_v11 = vor.u32 %v3706_v61, %v3128_v60  ;;  %v2442_v45 = vld [vmem:[#allocation7 + $0x50] sm:$0xf0] }
  0x40   :  { %1358 = vmatpush.bf16.msrb.mxu0 %v3017_v54  ;;  %v3702_v10 = vld [vmem:[#allocation7 + $0x58c] sm:$0xf0]  ;;  %1372 = vmatpush.bf16.msrb.mxu1 %v3145_v58  ;;  %v2985_v24 = vor.u32 %v3670_v8, %v2984_v5  ;;  %v2968_v27 = vld [vmem:[#allocation7 + $0x460] sm:$0xf]  ;;  %v3564_v46 = vld [vmem:[#allocation7 + $0x144] sm:$0xf]  ;;  %v2445_v50 = vor.u32 %v3532_v44, %v2442_v45 }
  0x41   :  { %1386 = vmatpush.bf16.msrb.mxu2 %v2509_v59  ;;  %v3522_v17 = vld [vmem:[#allocation4 + $0x1c] sm:$0xf0]  ;;  %v3113_v25 = vor.u32 %v3702_v10, %v3112_v9  ;;  %v3096_v29 = vld [vmem:[#allocation7 + $0x560] sm:$0xf]  ;;  %v2570_v47 = vld [vmem:[#allocation7 + $0x150] sm:$0xf0] }
  0x42   :  { %1400 = vmatpush.bf16.msrb.mxu3 %v2637_v63  ;;  %v4047_v22 = vor.u32 %v3522_v17, %v2392_v15  ;;  %v3666_v28 = vld [vmem:[#allocation7 + $0x46c] sm:$0xf0]  ;;  %v2952_v39 = vld [vmem:[#allocation7 + $0x440] sm:$0xf]  ;;  %v2573_v54 = vor.u32 %v3564_v46, %v2570_v47  ;;  %v3528_v56 = vld [vmem:[#allocation7 + $0x24] sm:$0xf] }
  0x43   :  { %v3698_v31 = vld [vmem:[#allocation7 + $0x56c] sm:$0xf0]  ;;  %v2969_v36 = vor.u32 %v3666_v28, %v2968_v27  ;;  %v3080_v41 = vld [vmem:[#allocation7 + $0x540] sm:$0xf]  ;;  %v2426_v58 = vld [vmem:[#allocation7 + $0x30] sm:$0xf0] }
  0x44   :  { %1359 = vmatpush.bf16.msrb.mxu0 %v3001_v7  ;;  %1373 = vmatpush.bf16.msrb.mxu1 %v3129_v11  ;;  %v3097_v37 = vor.u32 %v3698_v31, %v3096_v29  ;;  %v3662_v40 = vld [vmem:[#allocation7 + $0x44c] sm:$0xf0]  ;;  %v2936_v51 = vld [vmem:[#allocation7 + $0x420] sm:$0xf]  ;;  %v3560_v59 = vld [vmem:[#allocation7 + $0x124] sm:$0xf]  ;;  %v2429_v2 = vor.u32 %v3528_v56, %v2426_v58 }
  0x45   :  { %1387 = vmatpush.bf16.msrb.mxu2 %v2493_v12  ;;  %v3694_v43 = vld [vmem:[#allocation7 + $0x54c] sm:$0xf0]  ;;  %v2953_v48 = vor.u32 %v3662_v40, %v2952_v39  ;;  %v3064_v53 = vld [vmem:[#allocation7 + $0x520] sm:$0xf]  ;;  %v2554_v60 = vld [vmem:[#allocation7 + $0x130] sm:$0xf0] }
  0x46   :  { %1401 = vmatpush.bf16.msrb.mxu3 %v2621_v16  ;;  %1337 = vmatmul.bf16.vlgmr.msra.gmra.mxu2 %v4047_v22  ;;  %v3081_v49 = vor.u32 %v3694_v43, %v3080_v41  ;;  %v3658_v52 = vld [vmem:[#allocation7 + $0x42c] sm:$0xf0]  ;;  %v2920_v62 = vld [vmem:[#allocation7 + $0x400] sm:$0xf]  ;;  %v3524_v4 = vld [vmem:[#allocation7 + $0x4] sm:$0xf]  ;;  %v2557_v7 = vor.u32 %v3560_v59, %v2554_v60 }
  0x47   :  { %v3690_v55 = vld [vmem:[#allocation7 + $0x52c] sm:$0xf0]  ;;  %v2937_v61 = vor.u32 %v3658_v52, %v2936_v51  ;;  %v3048_v0 = vld [vmem:[#allocation7 + $0x500] sm:$0xf]  ;;  %v2410_v5 = vld [vmem:[#allocation7 + $0x10] sm:$0xf0] }
  0x48   :  { %1360 = vmatpush.bf16.msrb.mxu0 %v2985_v24  ;;  %1374 = vmatpush.bf16.msrb.mxu1 %v3113_v25  ;;  %v3654_v63 = vld [vmem:[#allocation7 + $0x40c] sm:$0xf0]  ;;  %v3065_v1 = vor.u32 %v3690_v55, %v3064_v53  ;;  %v3556_v8 = vld [vmem:[#allocation7 + $0x104] sm:$0xf]  ;;  %v2538_v9 = vld [vmem:[#allocation7 + $0x110] sm:$0xf0]  ;;  %v2413_v19 = vor.u32 %v3524_v4, %v2410_v5 }
  0x49   :  { %1388 = vmatpush.bf16.msrb.mxu2 %v2477_v26  ;;  %v3686_v3 = vld [vmem:[#allocation7 + $0x50c] sm:$0xf0]  ;;  %v3616_v10 = vld [vmem:[#allocation7 + $0x2e4] sm:$0xf]  ;;  %v2778_v11 = vld [vmem:[#allocation7 + $0x2f0] sm:$0xf0]  ;;  %v2921_v14 = vor.u32 %v3654_v63, %v2920_v62  ;;  %v2541_v25 = vor.u32 %v3556_v8, %v2538_v9 }
  0x4a   :  { %1402 = vmatpush.bf16.msrb.mxu3 %v2605_v30  ;;  %v3648_v12 = vld [vmem:[#allocation7 + $0x3e4] sm:$0xf]  ;;  %v2906_v13 = vld [vmem:[#allocation7 + $0x3f0] sm:$0xf0]  ;;  %v3049_v18 = vor.u32 %v3686_v3, %v3048_v0  ;;  %v2400_v21 = vld [vmem:[#allocation4 + $0x10] sm:$0xf]  ;;  %v2781_v26 = vor.u32 %v3616_v10, %v2778_v11 }
  0x4b   :  { %v3680_v15 = vld [vmem:[#allocation7 + $0x4e4] sm:$0xf]  ;;  %v3034_v16 = vld [vmem:[#allocation7 + $0x4f0] sm:$0xf0]  ;;  %v3523_v24 = vld [vmem:[#allocation4 + $0x24] sm:$0xf0]  ;;  %v2909_v29 = vor.u32 %v3648_v12, %v2906_v13 }
  0x4c   :  { %1361 = vmatpush.bf16.msrb.mxu0 %v2969_v36  ;;  %1375 = vmatpush.bf16.msrb.mxu1 %v3097_v37  ;;  %v3712_v17 = vld [vmem:[#allocation7 + $0x5e4] sm:$0xf]  ;;  %v3162_v20 = vld [vmem:[#allocation7 + $0x5f0] sm:$0xf0]  ;;  %v2402_v28 = vld [vmem:[#allocation4 + $0x28] sm:$0xf0]  ;;  %v3037_v30 = vor.u32 %v3680_v15, %v3034_v16  ;;  %v4053_v35 = vor.u32 %v3523_v24, %v2400_v21 }
  0x4d   :  { %1389 = vmatpush.bf16.msrb.mxu2 %v2461_v38  ;;  %v3520_v27 = vld [vmem:[#allocation4 + $0x14] sm:$0xf]  ;;  %v2762_v32 = vld [vmem:[#allocation7 + $0x2d0] sm:$0xf0]  ;;  %v3165_v34 = vor.u32 %v3712_v17, %v3162_v20 }
  0x4e   :  { %1403 = vmatpush.bf16.msrb.mxu3 %v2589_v42  ;;  %v3612_v31 = vld [vmem:[#allocation7 + $0x2c4] sm:$0xf]  ;;  %v2890_v36 = vld [vmem:[#allocation7 + $0x3d0] sm:$0xf0]  ;;  %v4055_v39 = vor.u32 %v3520_v27, %v2402_v28 }
  0x4f   :  { %v3644_v33 = vld [vmem:[#allocation7 + $0x3c4] sm:$0xf]  ;;  %v3018_v38 = vld [vmem:[#allocation7 + $0x4d0] sm:$0xf0]  ;;  %v2765_v42 = vor.u32 %v3612_v31, %v2762_v32 }
  0x50   :  { %1362 = vmatpush.bf16.msrb.mxu0 %v2953_v48  ;;  %1376 = vmatpush.bf16.msrb.mxu1 %v3081_v49  ;;  %v3676_v37 = vld [vmem:[#allocation7 + $0x4c4] sm:$0xf]  ;;  %v3146_v41 = vld [vmem:[#allocation7 + $0x5d0] sm:$0xf0]  ;;  %v2893_v43 = vor.u32 %v3644_v33, %v2890_v36 }
  0x51   :  { %1390 = vmatpush.bf16.msrb.mxu2 %v2445_v50  ;;  %v3708_v40 = vld [vmem:[#allocation7 + $0x5c4] sm:$0xf]  ;;  %v3021_v44 = vor.u32 %v3676_v37, %v3018_v38  ;;  %v2746_v46 = vld [vmem:[#allocation7 + $0x2b0] sm:$0xf0] }
  0x52   :  { %1404 = vmatpush.bf16.msrb.mxu3 %v2573_v54  ;;  %v3608_v45 = vld [vmem:[#allocation7 + $0x2a4] sm:$0xf]  ;;  %v3149_v48 = vor.u32 %v3708_v40, %v3146_v41  ;;  %v2874_v49 = vld [vmem:[#allocation7 + $0x3b0] sm:$0xf0] }
  0x53   :  { %v3640_v47 = vld [vmem:[#allocation7 + $0x3a4] sm:$0xf]  ;;  %v3002_v51 = vld [vmem:[#allocation7 + $0x4b0] sm:$0xf0]  ;;  %v2749_v54 = vor.u32 %v3608_v45, %v2746_v46 }
  0x54   :  { %1363 = vmatpush.bf16.msrb.mxu0 %v2937_v61  ;;  %1377 = vmatpush.bf16.msrb.mxu1 %v3065_v1  ;;  %v3672_v50 = vld [vmem:[#allocation7 + $0x4a4] sm:$0xf]  ;;  %v3130_v53 = vld [vmem:[#allocation7 + $0x5b0] sm:$0xf0]  ;;  %v2877_v55 = vor.u32 %v3640_v47, %v2874_v49 }
  0x55   :  { %1391 = vmatpush.bf16.msrb.mxu2 %v2429_v2  ;;  %v3704_v52 = vld [vmem:[#allocation7 + $0x5a4] sm:$0xf]  ;;  %v3005_v56 = vor.u32 %v3672_v50, %v3002_v51  ;;  %v2730_v59 = vld [vmem:[#allocation7 + $0x290] sm:$0xf0] }
  0x56   :  { %1405 = vmatpush.bf16.msrb.mxu3 %v2557_v7  ;;  %v3604_v58 = vld [vmem:[#allocation7 + $0x284] sm:$0xf]  ;;  %v3133_v61 = vor.u32 %v3704_v52, %v3130_v53  ;;  %v2858_v62 = vld [vmem:[#allocation7 + $0x390] sm:$0xf0] }
  0x57   :  { %v3636_v60 = vld [vmem:[#allocation7 + $0x384] sm:$0xf]  ;;  %v2986_v0 = vld [vmem:[#allocation7 + $0x490] sm:$0xf0]  ;;  %v2733_v3 = vor.u32 %v3604_v58, %v2730_v59  ;;  %v3555_v58 = vld [vmem:[#allocation7 + $0xf4] sm:$0xf0] }
  0x58   :  { %1364 = vmatpush.bf16.msrb.mxu0 %v2921_v14  ;;  %1378 = vmatpush.bf16.msrb.mxu1 %v3049_v18  ;;  %v3668_v63 = vld [vmem:[#allocation7 + $0x484] sm:$0xf]  ;;  %v3114_v2 = vld [vmem:[#allocation7 + $0x590] sm:$0xf0]  ;;  %v2861_v4 = vor.u32 %v3636_v60, %v2858_v62  ;;  %v2656_v59 = vld [vmem:[#allocation7 + $0x1e8] sm:$0xf] }
  0x59   :  { %1392 = vmatpush.bf16.msrb.mxu2 %v2413_v19  ;;  %v3700_v1 = vld [vmem:[#allocation7 + $0x584] sm:$0xf]  ;;  %v2989_v5 = vor.u32 %v3668_v63, %v2986_v0  ;;  %v2714_v8 = vld [vmem:[#allocation7 + $0x270] sm:$0xf0]  ;;  %v2784_v62 = vld [vmem:[#allocation7 + $0x2e8] sm:$0xf] }
  0x5a   :  { %1406 = vmatpush.bf16.msrb.mxu3 %v2541_v25  ;;  %v3600_v7 = vld [vmem:[#allocation7 + $0x264] sm:$0xf]  ;;  %v3117_v10 = vor.u32 %v3700_v1, %v3114_v2  ;;  %v2842_v11 = vld [vmem:[#allocation7 + $0x370] sm:$0xf0]  ;;  %v3619_v63 = vld [vmem:[#allocation7 + $0x2f4] sm:$0xf0] }
  0x5b   :  { %1365 = vmatmul.bf16.vlgmr.msrb.gmra.mxu0 %v4053_v35  ;;  %1379 = vmatmul.bf16.vlgmr.msrb.gmra.mxu1 %v4055_v39  ;;  %v3632_v9 = vld [vmem:[#allocation7 + $0x364] sm:$0xf]  ;;  %v2970_v13 = vld [vmem:[#allocation7 + $0x470] sm:$0xf0]  ;;  %v2717_v16 = vor.u32 %v3600_v7, %v2714_v8  ;;  %v2912_v2 = vld [vmem:[#allocation7 + $0x3e8] sm:$0xf]  ;;  %v2785_v8 = vor.u32 %v3619_v63, %v2784_v62 }
  0x5c   :  { %1413 = vmatpush.bf16.msra.mxu0 %v2781_v26  ;;  %1427 = vmatpush.bf16.msra.mxu1 %v2909_v29  ;;  %v3664_v12 = vld [vmem:[#allocation7 + $0x464] sm:$0xf]  ;;  %v3098_v15 = vld [vmem:[#allocation7 + $0x570] sm:$0xf0]  ;;  %v2845_v17 = vor.u32 %v3632_v9, %v2842_v11  ;;  %v2512_v9 = vld [vmem:[#allocation7 + $0xc8] sm:$0xf] }
  0x5d   :  { %1441 = vmatpush.bf16.msra.mxu2 %v3037_v30  ;;  %1407 = vmatmul.bf16.vlgmr.msrb.gmra.mxu3 %v4044_v6  ;;  %v3696_v14 = vld [vmem:[#allocation7 + $0x564] sm:$0xf]  ;;  %v2973_v18 = vor.u32 %v3664_v12, %v2970_v13  ;;  %v2698_v20 = vld [vmem:[#allocation7 + $0x250] sm:$0xf0]  ;;  %v2640_v11 = vld [vmem:[#allocation7 + $0x1c8] sm:$0xf] }
  0x5e   :  { %1455 = vmatpush.bf16.msra.mxu3 %v3165_v34  ;;  %1393 = vmatmul.bf16.vlgmr.msrb.gmra.mxu2 %v4041_v57  ;;  %v3596_v19 = vld [vmem:[#allocation7 + $0x244] sm:$0xf]  ;;  %v3101_v24 = vor.u32 %v3696_v14, %v3098_v15  ;;  %v2826_v25 = vld [vmem:[#allocation7 + $0x350] sm:$0xf0]  ;;  %v3583_v13 = vld [vmem:[#allocation7 + $0x1d4] sm:$0xf0] }
  0x5f   :  { %v3628_v21 = vld [vmem:[#allocation7 + $0x344] sm:$0xf]  ;;  %v2954_v27 = vld [vmem:[#allocation7 + $0x450] sm:$0xf0]  ;;  %v2701_v30 = vor.u32 %v3596_v19, %v2698_v20  ;;  %v2768_v14 = vld [vmem:[#allocation7 + $0x2c8] sm:$0xf]  ;;  %v2641_v19 = vor.u32 %v3583_v13, %v2640_v11 }
  0x60   :  { %1414 = vmatpush.bf16.msra.mxu0 %v2765_v42  ;;  %1428 = vmatpush.bf16.msra.mxu1 %v2893_v43  ;;  %v3660_v26 = vld [vmem:[#allocation7 + $0x444] sm:$0xf]  ;;  %v3082_v29 = vld [vmem:[#allocation7 + $0x550] sm:$0xf0]  ;;  %v2829_v31 = vor.u32 %v3628_v21, %v2826_v25  ;;  %v3615_v15 = vld [vmem:[#allocation7 + $0x2d4] sm:$0xf0] }
  0x61   :  { %1442 = vmatpush.bf16.msra.mxu2 %v3021_v44  ;;  %v3692_v28 = vld [vmem:[#allocation7 + $0x544] sm:$0xf]  ;;  %v2957_v32 = vor.u32 %v3660_v26, %v2954_v27  ;;  %v2682_v34 = vld [vmem:[#allocation7 + $0x230] sm:$0xf0]  ;;  %v2769_v20 = vor.u32 %v3615_v15, %v2768_v14  ;;  %v2496_v21 = vld [vmem:[#allocation7 + $0xa8] sm:$0xf] }
  0x62   :  { %1456 = vmatpush.bf16.msra.mxu3 %v3149_v48  ;;  %v3592_v33 = vld [vmem:[#allocation7 + $0x224] sm:$0xf]  ;;  %v3085_v37 = vor.u32 %v3692_v28, %v3082_v29  ;;  %v2810_v38 = vld [vmem:[#allocation7 + $0x330] sm:$0xf0]  ;;  %v2624_v25 = vld [vmem:[#allocation7 + $0x1a8] sm:$0xf] }
  0x63   :  { %v3624_v36 = vld [vmem:[#allocation7 + $0x324] sm:$0xf]  ;;  %v2938_v41 = vld [vmem:[#allocation7 + $0x430] sm:$0xf0]  ;;  %v2685_v44 = vor.u32 %v3592_v33, %v2682_v34  ;;  %v3579_v27 = vld [vmem:[#allocation7 + $0x1b4] sm:$0xf0] }
  0x64   :  { %1415 = vmatpush.bf16.msra.mxu0 %v2749_v54  ;;  %1429 = vmatpush.bf16.msra.mxu1 %v2877_v55  ;;  %v3656_v40 = vld [vmem:[#allocation7 + $0x424] sm:$0xf]  ;;  %v3066_v43 = vld [vmem:[#allocation7 + $0x530] sm:$0xf0]  ;;  %v2813_v48 = vor.u32 %v3624_v36, %v2810_v38  ;;  %v2752_v28 = vld [vmem:[#allocation7 + $0x2a8] sm:$0xf]  ;;  %v2625_v33 = vor.u32 %v3579_v27, %v2624_v25 }
  0x65   :  { %1443 = vmatpush.bf16.msra.mxu2 %v3005_v56  ;;  %v3688_v42 = vld [vmem:[#allocation7 + $0x524] sm:$0xf]  ;;  %v2666_v46 = vld [vmem:[#allocation7 + $0x210] sm:$0xf0]  ;;  %v2941_v49 = vor.u32 %v3656_v40, %v2938_v41  ;;  %v2528_v56 = vld [vmem:[#allocation7 + $0xe8] sm:$0xf] }
  0x66   :  { %1457 = vmatpush.bf16.msra.mxu3 %v3133_v61  ;;  %v3588_v45 = vld [vmem:[#allocation7 + $0x204] sm:$0xf]  ;;  %v2794_v50 = vld [vmem:[#allocation7 + $0x310] sm:$0xf0]  ;;  %v3069_v53 = vor.u32 %v3688_v42, %v3066_v43  ;;  %v3587_v61 = vld [vmem:[#allocation7 + $0x1f4] sm:$0xf0] }
  0x67   :  { %v3620_v47 = vld [vmem:[#allocation7 + $0x304] sm:$0xf]  ;;  %v2922_v52 = vld [vmem:[#allocation7 + $0x410] sm:$0xf0]  ;;  %v2669_v60 = vor.u32 %v3588_v45, %v2666_v46  ;;  %v2657_v7 = vor.u32 %v3587_v61, %v2656_v59  ;;  %v3611_v29 = vld [vmem:[#allocation7 + $0x2b4] sm:$0xf0] }
  0x68   :  { %1416 = vmatpush.bf16.msra.mxu0 %v2733_v3  ;;  %1430 = vmatpush.bf16.msra.mxu1 %v2861_v4  ;;  %v3652_v51 = vld [vmem:[#allocation7 + $0x404] sm:$0xf]  ;;  %v3050_v55 = vld [vmem:[#allocation7 + $0x510] sm:$0xf0]  ;;  %v2797_v0 = vor.u32 %v3620_v47, %v2794_v50  ;;  %v3651_v3 = vld [vmem:[#allocation7 + $0x3f4] sm:$0xf0]  ;;  %v2753_v34 = vor.u32 %v3611_v29, %v2752_v28 }
  0x69   :  { %1444 = vmatpush.bf16.msra.mxu2 %v2989_v5  ;;  %v3684_v54 = vld [vmem:[#allocation7 + $0x504] sm:$0xf]  ;;  %v2925_v1 = vor.u32 %v3652_v51, %v2922_v52  ;;  %v2529_v5 = vor.u32 %v3555_v58, %v2528_v56  ;;  %v2913_v12 = vor.u32 %v3651_v3, %v2912_v2  ;;  %v2480_v36 = vld [vmem:[#allocation7 + $0x88] sm:$0xf]  ;;  %v3575_v41 = vld [vmem:[#allocation7 + $0x194] sm:$0xf0] }
  0x6a   :  { %1458 = vmatpush.bf16.msra.mxu3 %v3117_v10  ;;  %v3053_v4 = vor.u32 %v3684_v54, %v3050_v55  ;;  %v3551_v10 = vld [vmem:[#allocation7 + $0xd4] sm:$0xf0]  ;;  %v2608_v38 = vld [vmem:[#allocation7 + $0x188] sm:$0xf] }
  0x6b   :  { %v2736_v42 = vld [vmem:[#allocation7 + $0x288] sm:$0xf]  ;;  %v3607_v43 = vld [vmem:[#allocation7 + $0x294] sm:$0xf0]  ;;  %v2609_v47 = vor.u32 %v3575_v41, %v2608_v38  ;;  %v3553_v41 = vld [vmem:[#allocation7 + $0xec] sm:$0xf] }
  0x6c   :  { %1417 = vmatpush.bf16.msra.mxu0 %v2717_v16  ;;  %1431 = vmatpush.bf16.msra.mxu1 %v2845_v17  ;;  %v2896_v16 = vld [vmem:[#allocation7 + $0x3c8] sm:$0xf]  ;;  %v3647_v17 = vld [vmem:[#allocation7 + $0x3d4] sm:$0xf0] }
  0x6d   :  { %1445 = vmatpush.bf16.msra.mxu2 %v2973_v18  ;;  %v2513_v18 = vor.u32 %v3551_v10, %v2512_v9  ;;  %v2897_v26 = vor.u32 %v3647_v17, %v2896_v16  ;;  %v3639_v45 = vld [vmem:[#allocation7 + $0x394] sm:$0xf0]  ;;  %v2592_v51 = vld [vmem:[#allocation7 + $0x168] sm:$0xf] }
  0x6e   :  { %1459 = vmatpush.bf16.msra.mxu3 %v3101_v24  ;;  %v3547_v24 = vld [vmem:[#allocation7 + $0xb4] sm:$0xf0]  ;;  %v2720_v54 = vld [vmem:[#allocation7 + $0x268] sm:$0xf] }
  0x6f   :  { %v3539_v50 = vld [vmem:[#allocation7 + $0x74] sm:$0xf0]  ;;  %v2848_v56 = vld [vmem:[#allocation7 + $0x368] sm:$0xf] }
  0x70   :  { %1418 = vmatpush.bf16.msra.mxu0 %v2701_v30  ;;  %1432 = vmatpush.bf16.msra.mxu1 %v2829_v31  ;;  %v2880_v30 = vld [vmem:[#allocation7 + $0x3a8] sm:$0xf]  ;;  %v3643_v31 = vld [vmem:[#allocation7 + $0x3b4] sm:$0xf0] }
  0x71   :  { %1446 = vmatpush.bf16.msra.mxu2 %v2957_v32  ;;  %v2497_v32 = vor.u32 %v3547_v24, %v2496_v21  ;;  %v2881_v40 = vor.u32 %v3643_v31, %v2880_v30  ;;  %v3603_v55 = vld [vmem:[#allocation7 + $0x274] sm:$0xf0]  ;;  %v2448_v62 = vld [vmem:[#allocation7 + $0x48] sm:$0xf] }
  0x72   :  { %1460 = vmatpush.bf16.msra.mxu3 %v3085_v37  ;;  %v3543_v37 = vld [vmem:[#allocation7 + $0x94] sm:$0xf0]  ;;  %v2721_v61 = vor.u32 %v3603_v55, %v2720_v54  ;;  %v2704_v3 = vld [vmem:[#allocation7 + $0x248] sm:$0xf] }
  0x73   :  { %v2481_v46 = vor.u32 %v3543_v37, %v2480_v36  ;;  %v3635_v58 = vld [vmem:[#allocation7 + $0x374] sm:$0xf0]  ;;  %v2432_v11 = vld [vmem:[#allocation7 + $0x28] sm:$0xf] }
  0x74   :  { %1419 = vmatpush.bf16.msra.mxu0 %v2685_v44  ;;  %1433 = vmatpush.bf16.msra.mxu1 %v2813_v48  ;;  %v2864_v44 = vld [vmem:[#allocation7 + $0x388] sm:$0xf]  ;;  %v2737_v48 = vor.u32 %v3607_v43, %v2736_v42  ;;  %v3535_v63 = vld [vmem:[#allocation7 + $0x54] sm:$0xf0]  ;;  %v2530_v42 = vld [vmem:[#allocation7 + $0xf8] sm:$0xf0] }
  0x75   :  { %1447 = vmatpush.bf16.msra.mxu2 %v2941_v49  ;;  %v2464_v49 = vld [vmem:[#allocation7 + $0x68] sm:$0xf]  ;;  %v2865_v52 = vor.u32 %v3639_v45, %v2864_v44  ;;  %v3567_v2 = vld [vmem:[#allocation7 + $0x154] sm:$0xf0]  ;;  %v3585_v45 = vld [vmem:[#allocation7 + $0x1ec] sm:$0xf] }
  0x76   :  { %1461 = vmatpush.bf16.msra.mxu3 %v3069_v53  ;;  %v3571_v53 = vld [vmem:[#allocation7 + $0x174] sm:$0xf0]  ;;  %v2465_v59 = vor.u32 %v3539_v50, %v2464_v49  ;;  %v2560_v13 = vld [vmem:[#allocation7 + $0x128] sm:$0xf]  ;;  %v2533_v50 = vor.u32 %v3553_v41, %v2530_v42 }
  0x77   :  { %v3563_v15 = vld [vmem:[#allocation7 + $0x134] sm:$0xf0]  ;;  %v2688_v16 = vld [vmem:[#allocation7 + $0x228] sm:$0xf] }
  0x78   :  { %1420 = vmatpush.bf16.msra.mxu0 %v2669_v60  ;;  %1434 = vmatpush.bf16.msra.mxu1 %v2797_v0  ;;  %v2593_v60 = vor.u32 %v3571_v53, %v2592_v51  ;;  %v2576_v0 = vld [vmem:[#allocation7 + $0x148] sm:$0xf]  ;;  %v3595_v17 = vld [vmem:[#allocation7 + $0x234] sm:$0xf0]  ;;  %v2561_v25 = vor.u32 %v3563_v15, %v2560_v13 }
  0x79   :  { %1448 = vmatpush.bf16.msra.mxu2 %v2925_v1  ;;  %v2849_v1 = vor.u32 %v3635_v58, %v2848_v56  ;;  %v2577_v9 = vor.u32 %v3567_v2, %v2576_v0  ;;  %v2416_v21 = vld [vmem:[#allocation7 + $0x8] sm:$0xf]  ;;  %v3527_v24 = vld [vmem:[#allocation7 + $0x14] sm:$0xf0]  ;;  %v3549_v56 = vld [vmem:[#allocation7 + $0xcc] sm:$0xf] }
  0x7a   :  { %1462 = vmatpush.bf16.msra.mxu3 %v3053_v4  ;;  %v3599_v4 = vld [vmem:[#allocation7 + $0x254] sm:$0xf0]  ;;  %v2544_v27 = vld [vmem:[#allocation7 + $0x108] sm:$0xf]  ;;  %v2417_v38 = vor.u32 %v3527_v24, %v2416_v21  ;;  %v2514_v58 = vld [vmem:[#allocation7 + $0xd8] sm:$0xf0] }
  0x7b   :  { %1421 = vmatmul.bf16.vlgmr.msra.gmra.mxu0 %v4047_v22  ;;  %1435 = vmatmul.bf16.vlgmr.msra.gmra.mxu1 %v4049_v23  ;;  %v2705_v10 = vor.u32 %v3599_v4, %v2704_v3  ;;  %v3559_v28 = vld [vmem:[#allocation7 + $0x114] sm:$0xf0]  ;;  %v2672_v29 = vld [vmem:[#allocation7 + $0x208] sm:$0xf]  ;;  %v2610_v21 = vld [vmem:[#allocation7 + $0x198] sm:$0xf0] }
  0x7c   :  { %1469 = vmatpush.bf16.msrb.mxu0 %v2529_v5  ;;  %1483 = vmatpush.bf16.msrb.mxu1 %v2657_v7  ;;  %v2832_v5 = vld [vmem:[#allocation7 + $0x348] sm:$0xf]  ;;  %v3631_v7 = vld [vmem:[#allocation7 + $0x354] sm:$0xf0]  ;;  %v2545_v43 = vor.u32 %v3559_v28, %v2544_v27 }
  0x7d   :  { %1497 = vmatpush.bf16.msrb.mxu2 %v2785_v8  ;;  %1463 = vmatmul.bf16.vlgmr.msra.gmra.mxu3 %v4055_v39  ;;  %v2449_v8 = vor.u32 %v3535_v63, %v2448_v62  ;;  %v2833_v14 = vor.u32 %v3631_v7, %v2832_v5  ;;  %v3591_v31 = vld [vmem:[#allocation7 + $0x214] sm:$0xf0]  ;;  %v3168_v37 = vld [vmem:[#allocation7 + $0x5e8] sm:$0xf]  ;;  %v2517_v63 = vor.u32 %v3549_v56, %v2514_v58  ;;  %v3545_v5 = vld [vmem:[#allocation7 + $0xac] sm:$0xf] }
  0x7e   :  { %1511 = vmatpush.bf16.msrb.mxu3 %v2913_v12  ;;  %1449 = vmatmul.bf16.vlgmr.msra.gmra.mxu2 %v4053_v35  ;;  %v3531_v12 = vld [vmem:[#allocation7 + $0x34] sm:$0xf0]  ;;  %v2673_v44 = vor.u32 %v3591_v31, %v2672_v29  ;;  %v3024_v51 = vld [vmem:[#allocation7 + $0x4c8] sm:$0xf]  ;;  %v2498_v7 = vld [vmem:[#allocation7 + $0xb8] sm:$0xf0] }
  0x7f   :  { %v3683_v36 = vld [vmem:[#allocation7 + $0x4f4] sm:$0xf0]  ;;  %v3152_v53 = vld [vmem:[#allocation7 + $0x5c8] sm:$0xf] }
  0x80   :  { %1470 = vmatpush.bf16.msrb.mxu0 %v2513_v18  ;;  %1484 = vmatpush.bf16.msrb.mxu1 %v2641_v19  ;;  %v2816_v18 = vld [vmem:[#allocation7 + $0x328] sm:$0xf]  ;;  %v3627_v19 = vld [vmem:[#allocation7 + $0x334] sm:$0xf0] }
  0x81   :  { %1498 = vmatpush.bf16.msrb.mxu2 %v2769_v20  ;;  %v2433_v20 = vor.u32 %v3531_v12, %v2432_v11  ;;  %v2817_v30 = vor.u32 %v3627_v19, %v2816_v18  ;;  %v3711_v55 = vld [vmem:[#allocation7 + $0x5d4] sm:$0xf0]  ;;  %v3008_v0 = vld [vmem:[#allocation7 + $0x4a8] sm:$0xf]  ;;  %v2501_v12 = vor.u32 %v3545_v5, %v2498_v7  ;;  %v3541_v18 = vld [vmem:[#allocation7 + $0x8c] sm:$0xf] }
  0x82   :  { %1512 = vmatpush.bf16.msrb.mxu3 %v2897_v26  ;;  %v2689_v26 = vor.u32 %v3595_v17, %v2688_v16  ;;  %v3153_v62 = vor.u32 %v3711_v55, %v3152_v53  ;;  %v3136_v2 = vld [vmem:[#allocation7 + $0x5a8] sm:$0xf]  ;;  %v3707_v4 = vld [vmem:[#allocation7 + $0x5b4] sm:$0xf0]  ;;  %v2482_v19 = vld [vmem:[#allocation7 + $0x98] sm:$0xf0] }
  0x83   :  { %v3137_v11 = vor.u32 %v3707_v4, %v3136_v2  ;;  %v2992_v13 = vld [vmem:[#allocation7 + $0x488] sm:$0xf]  ;;  %v3703_v17 = vld [vmem:[#allocation7 + $0x594] sm:$0xf0]  ;;  %v3525_v7 = vld [vmem:[#allocation7 + $0xc] sm:$0xf] }
  0x84   :  { %1471 = vmatpush.bf16.msrb.mxu0 %v2497_v32  ;;  %1485 = vmatpush.bf16.msrb.mxu1 %v2625_v33  ;;  %v2800_v32 = vld [vmem:[#allocation7 + $0x308] sm:$0xf]  ;;  %v3623_v33 = vld [vmem:[#allocation7 + $0x314] sm:$0xf0] }
  0x85   :  { %1499 = vmatpush.bf16.msrb.mxu2 %v2753_v34  ;;  %v3040_v34 = vld [vmem:[#allocation7 + $0x4e8] sm:$0xf]  ;;  %v3667_v28 = vld [vmem:[#allocation7 + $0x474] sm:$0xf0] }
  0x86   :  { %1513 = vmatpush.bf16.msrb.mxu3 %v2881_v40  ;;  %v3715_v40 = vld [vmem:[#allocation7 + $0x5f4] sm:$0xf0]  ;;  %v3120_v15 = vld [vmem:[#allocation7 + $0x588] sm:$0xf] }
  0x87   :  { %v3169_v49 = vor.u32 %v3715_v40, %v3168_v37  ;;  %v2976_v27 = vld [vmem:[#allocation7 + $0x468] sm:$0xf]  ;;  %v3699_v31 = vld [vmem:[#allocation7 + $0x574] sm:$0xf0] }
  0x88   :  { %1472 = vmatpush.bf16.msrb.mxu0 %v2481_v46  ;;  %1486 = vmatpush.bf16.msrb.mxu1 %v2609_v47  ;;  %v2658_v46 = vld [vmem:[#allocation7 + $0x1f8] sm:$0xf0]  ;;  %v2801_v47 = vor.u32 %v3623_v33, %v2800_v32  ;;  %v3104_v29 = vld [vmem:[#allocation7 + $0x568] sm:$0xf]  ;;  %v3537_v32 = vld [vmem:[#allocation7 + $0x6c] sm:$0xf]  ;;  %v2977_v37 = vor.u32 %v3667_v28, %v2976_v27 }
  0x89   :  { %1500 = vmatpush.bf16.msrb.mxu2 %v2737_v48  ;;  %v3041_v48 = vor.u32 %v3683_v36, %v3040_v34  ;;  %v2661_v54 = vor.u32 %v3585_v45, %v2658_v46  ;;  %v2466_v33 = vld [vmem:[#allocation7 + $0x78] sm:$0xf0]  ;;  %v3569_v34 = vld [vmem:[#allocation7 + $0x16c] sm:$0xf]  ;;  %v2960_v41 = vld [vmem:[#allocation7 + $0x448] sm:$0xf] }
  0x8a   :  { %1514 = vmatpush.bf16.msrb.mxu3 %v2865_v52  ;;  %v3679_v52 = vld [vmem:[#allocation7 + $0x4d4] sm:$0xf0]  ;;  %v2594_v36 = vld [vmem:[#allocation7 + $0x178] sm:$0xf0]  ;;  %v2469_v40 = vor.u32 %v3537_v32, %v2466_v33  ;;  %v3533_v46 = vld [vmem:[#allocation7 + $0x4c] sm:$0xf] }
  0x8b   :  { %v3663_v42 = vld [vmem:[#allocation7 + $0x454] sm:$0xf0]  ;;  %v2944_v53 = vld [vmem:[#allocation7 + $0x428] sm:$0xf]  ;;  %v2898_v33 = vld [vmem:[#allocation7 + $0x3d8] sm:$0xf0] }
  0x8c   :  { %1473 = vmatpush.bf16.msrb.mxu0 %v2465_v59  ;;  %1487 = vmatpush.bf16.msrb.mxu1 %v2593_v60  ;;  %v3581_v59 = vld [vmem:[#allocation7 + $0x1cc] sm:$0xf]  ;;  %v2642_v60 = vld [vmem:[#allocation7 + $0x1d8] sm:$0xf0]  ;;  %v3695_v45 = vld [vmem:[#allocation7 + $0x554] sm:$0xf0] }
  0x8d   :  { %1501 = vmatpush.bf16.msrb.mxu2 %v2721_v61  ;;  %v3025_v61 = vor.u32 %v3679_v52, %v3024_v51  ;;  %v2645_v3 = vor.u32 %v3581_v59, %v2642_v60  ;;  %v3072_v55 = vld [vmem:[#allocation7 + $0x528] sm:$0xf]  ;;  %v3691_v58 = vld [vmem:[#allocation7 + $0x534] sm:$0xf0]  ;;  %v3529_v59 = vld [vmem:[#allocation7 + $0x2c] sm:$0xf] }
  0x8e   :  { %1515 = vmatpush.bf16.msrb.mxu3 %v2849_v1  ;;  %v3675_v1 = vld [vmem:[#allocation7 + $0x4b4] sm:$0xf0]  ;;  %v2434_v60 = vld [vmem:[#allocation7 + $0x38] sm:$0xf0]  ;;  %v3073_v2 = vor.u32 %v3691_v58, %v3072_v55  ;;  %v3056_v4 = vld [vmem:[#allocation7 + $0x508] sm:$0xf] }
  0x8f   :  { %v3687_v5 = vld [vmem:[#allocation7 + $0x514] sm:$0xf0]  ;;  %v3605_v55 = vld [vmem:[#allocation7 + $0x28c] sm:$0xf] }
  0x90   :  { %1474 = vmatpush.bf16.msrb.mxu0 %v2449_v8  ;;  %1488 = vmatpush.bf16.msrb.mxu1 %v2577_v9  ;;  %v3577_v8 = vld [vmem:[#allocation7 + $0x1ac] sm:$0xf]  ;;  %v2626_v9 = vld [vmem:[#allocation7 + $0x1b8] sm:$0xf0] }
  0x91   :  { %1502 = vmatpush.bf16.msrb.mxu2 %v2705_v10  ;;  %v3009_v10 = vor.u32 %v3675_v1, %v3008_v0  ;;  %v2629_v16 = vor.u32 %v3577_v8, %v2626_v9  ;;  %v2928_v0 = vld [vmem:[#allocation7 + $0x408] sm:$0xf]  ;;  %v3655_v1 = vld [vmem:[#allocation7 + $0x414] sm:$0xf0]  ;;  %v2418_v9 = vld [vmem:[#allocation7 + $0x18] sm:$0xf0] }
  0x92   :  { %1516 = vmatpush.bf16.msrb.mxu3 %v2833_v14  ;;  %v3671_v14 = vld [vmem:[#allocation7 + $0x494] sm:$0xf0]  ;;  %v3637_v58 = vld [vmem:[#allocation7 + $0x38c] sm:$0xf] }
  0x93   :  { %v2993_v24 = vor.u32 %v3671_v14, %v2992_v13  ;;  %v2786_v13 = vld [vmem:[#allocation7 + $0x2f8] sm:$0xf0]  ;;  %v3649_v14 = vld [vmem:[#allocation7 + $0x3ec] sm:$0xf] }
  0x94   :  { %1475 = vmatpush.bf16.msrb.mxu0 %v2433_v20  ;;  %1489 = vmatpush.bf16.msrb.mxu1 %v2561_v25  ;;  %v3573_v20 = vld [vmem:[#allocation7 + $0x18c] sm:$0xf]  ;;  %v3121_v25 = vor.u32 %v3703_v17, %v3120_v15  ;;  %v2929_v15 = vor.u32 %v3655_v1, %v2928_v0 }
  0x95   :  { %1503 = vmatpush.bf16.msrb.mxu2 %v2689_v26  ;;  %v2485_v26 = vor.u32 %v3541_v18, %v2482_v19  ;;  %v3681_v17 = vld [vmem:[#allocation7 + $0x4ec] sm:$0xf]  ;;  %v3042_v18 = vld [vmem:[#allocation7 + $0x4f8] sm:$0xf0]  ;;  %v3057_v19 = vor.u32 %v3687_v5, %v3056_v4 }
  0x96   :  { %1517 = vmatpush.bf16.msrb.mxu3 %v2817_v30  ;;  %v2613_v30 = vor.u32 %v3573_v20, %v2610_v21  ;;  %v2421_v20 = vor.u32 %v3525_v7, %v2418_v9  ;;  %v3713_v21 = vld [vmem:[#allocation7 + $0x5ec] sm:$0xf]  ;;  %v3045_v28 = vor.u32 %v3681_v17, %v3042_v18  ;;  %v2850_v7 = vld [vmem:[#allocation7 + $0x378] sm:$0xf0] }
  0x97   :  { %v3633_v4 = vld [vmem:[#allocation7 + $0x36c] sm:$0xf]  ;;  %v2978_v9 = vld [vmem:[#allocation7 + $0x478] sm:$0xf0] }
  0x98   :  { %1476 = vmatpush.bf16.msrb.mxu0 %v2417_v38  ;;  %1490 = vmatpush.bf16.msrb.mxu1 %v2545_v43  ;;  %v3105_v38 = vor.u32 %v3699_v31, %v3104_v29  ;;  %v3088_v43 = vld [vmem:[#allocation7 + $0x548] sm:$0xf]  ;;  %v3613_v29 = vld [vmem:[#allocation7 + $0x2cc] sm:$0xf] }
  0x99   :  { %1504 = vmatpush.bf16.msrb.mxu2 %v2673_v44  ;;  %v2597_v44 = vor.u32 %v3569_v34, %v2594_v36  ;;  %v3089_v51 = vor.u32 %v3695_v45, %v3088_v43  ;;  %v3645_v31 = vld [vmem:[#allocation7 + $0x3cc] sm:$0xf]  ;;  %v3026_v36 = vld [vmem:[#allocation7 + $0x4d8] sm:$0xf0] }
  0x9a   :  { %1518 = vmatpush.bf16.msrb.mxu3 %v2801_v47  ;;  %v2450_v47 = vld [vmem:[#allocation7 + $0x58] sm:$0xf0]  ;;  %v3677_v34 = vld [vmem:[#allocation7 + $0x4cc] sm:$0xf] }
  0x9b   :  { %1477 = vmatmul.bf16.vlgmr.msrb.gmra.mxu0 %v4041_v57  ;;  %1491 = vmatmul.bf16.vlgmr.msrb.gmra.mxu1 %v4044_v6  ;;  %v2453_v52 = vor.u32 %v3533_v46, %v2450_v47  ;;  %v3609_v43 = vld [vmem:[#allocation7 + $0x2ac] sm:$0xf]  ;;  %v2882_v47 = vld [vmem:[#allocation7 + $0x3b8] sm:$0xf0] }
  0x9c   :  { %1525 = vmatpush.bf16.msra.mxu0 %v3041_v48  ;;  %1539 = vmatpush.bf16.msra.mxu1 %v3169_v49  ;;  %v3565_v48 = vld [vmem:[#allocation7 + $0x14c] sm:$0xf]  ;;  %v2578_v49 = vld [vmem:[#allocation7 + $0x158] sm:$0xf0] }
  0x9d   :  { %1553 = vmatpush.bf16.msra.mxu2 %v2533_v50  ;;  %1519 = vmatmul.bf16.vlgmr.msrb.gmra.mxu3 %v4049_v23  ;;  %v2961_v50 = vor.u32 %v3663_v42, %v2960_v41  ;;  %v2581_v56 = vor.u32 %v3565_v48, %v2578_v49  ;;  %v2901_v41 = vor.u32 %v3645_v31, %v2898_v33  ;;  %v3641_v45 = vld [vmem:[#allocation7 + $0x3ac] sm:$0xf]  ;;  %v3010_v49 = vld [vmem:[#allocation7 + $0x4b8] sm:$0xf0] }
  0x9e   :  { %1567 = vmatpush.bf16.msra.mxu3 %v2661_v54  ;;  %1505 = vmatmul.bf16.vlgmr.msrb.gmra.mxu2 %v4047_v22  ;;  %v3659_v54 = vld [vmem:[#allocation7 + $0x434] sm:$0xf0]  ;;  %v3029_v42 = vor.u32 %v3677_v34, %v3026_v36  ;;  %v3673_v48 = vld [vmem:[#allocation7 + $0x4ac] sm:$0xf]  ;;  %v2818_v33 = vld [vmem:[#allocation7 + $0x338] sm:$0xf0] }
  0x9f   :  { %v3629_v17 = vld [vmem:[#allocation7 + $0x34c] sm:$0xf]  ;;  %v2946_v36 = vld [vmem:[#allocation7 + $0x438] sm:$0xf0] }
  0xa0   :  { %1526 = vmatpush.bf16.msra.mxu0 %v3025_v61  ;;  %1540 = vmatpush.bf16.msra.mxu1 %v3153_v62  ;;  %v3561_v61 = vld [vmem:[#allocation7 + $0x12c] sm:$0xf]  ;;  %v2562_v62 = vld [vmem:[#allocation7 + $0x138] sm:$0xf0] }
  0xa1   :  { %1554 = vmatpush.bf16.msra.mxu2 %v2517_v63  ;;  %v2945_v63 = vor.u32 %v3659_v54, %v2944_v53  ;;  %v2565_v8 = vor.u32 %v3561_v61, %v2562_v62  ;;  %v2885_v53 = vor.u32 %v3641_v45, %v2882_v47  ;;  %v3013_v54 = vor.u32 %v3673_v48, %v3010_v49  ;;  %v3669_v61 = vld [vmem:[#allocation7 + $0x48c] sm:$0xf]  ;;  %v2994_v62 = vld [vmem:[#allocation7 + $0x498] sm:$0xf0] }
  0xa2   :  { %1568 = vmatpush.bf16.msra.mxu3 %v2645_v3  ;;  %v2437_v3 = vor.u32 %v3529_v59, %v2434_v60  ;;  %v2866_v60 = vld [vmem:[#allocation7 + $0x398] sm:$0xf0]  ;;  %v3625_v31 = vld [vmem:[#allocation7 + $0x32c] sm:$0xf] }
  0xa3   :  { %v2869_v1 = vor.u32 %v3637_v58, %v2866_v60  ;;  %v3657_v34 = vld [vmem:[#allocation7 + $0x42c] sm:$0xf]  ;;  %v2930_v49 = vld [vmem:[#allocation7 + $0x418] sm:$0xf0] }
  0xa4   :  { %1527 = vmatpush.bf16.msra.mxu0 %v3009_v10  ;;  %1541 = vmatpush.bf16.msra.mxu1 %v3137_v11  ;;  %v3557_v10 = vld [vmem:[#allocation7 + $0x10c] sm:$0xf]  ;;  %v2546_v11 = vld [vmem:[#allocation7 + $0x118] sm:$0xf0] }
  0xa5   :  { %1555 = vmatpush.bf16.msra.mxu2 %v2501_v12  ;;  %v3617_v12 = vld [vmem:[#allocation7 + $0x2ec] sm:$0xf] }
  0xa6   :  { %1569 = vmatpush.bf16.msra.mxu3 %v2629_v16  ;;  %v2914_v16 = vld [vmem:[#allocation7 + $0x3f8] sm:$0xf0]  ;;  %v3621_v45 = vld [vmem:[#allocation7 + $0x30c] sm:$0xf] }
  0xa7   :  { %v2917_v27 = vor.u32 %v3649_v14, %v2914_v16  ;;  %v2706_v16 = vld [vmem:[#allocation7 + $0x258] sm:$0xf0]  ;;  %v3653_v48 = vld [vmem:[#allocation7 + $0x40c] sm:$0xf] }
  0xa8   :  { %1528 = vmatpush.bf16.msra.mxu0 %v2993_v24  ;;  %1542 = vmatpush.bf16.msra.mxu1 %v3121_v25  ;;  %v3170_v24 = vld [vmem:[#allocation7 + $0x5f8] sm:$0xf0]  ;;  %v2549_v25 = vor.u32 %v3557_v10, %v2546_v11  ;;  %v3697_v10 = vld [vmem:[#allocation7 + $0x56c] sm:$0xf] }
  0xa9   :  { %1556 = vmatpush.bf16.msra.mxu2 %v2485_v26  ;;  %v2789_v26 = vor.u32 %v3617_v12, %v2786_v13  ;;  %v3173_v32 = vor.u32 %v3713_v21, %v3170_v24  ;;  %v3106_v11 = vld [vmem:[#allocation7 + $0x578] sm:$0xf0]  ;;  %v2853_v13 = vor.u32 %v3633_v4, %v2850_v7  ;;  %v3693_v24 = vld [vmem:[#allocation7 + $0x54c] sm:$0xf] }
  0xaa   :  { %1570 = vmatpush.bf16.msra.mxu3 %v2613_v30  ;;  %v2770_v30 = vld [vmem:[#allocation7 + $0x2d8] sm:$0xf0]  ;;  %v3109_v18 = vor.u32 %v3697_v10, %v3106_v11 }
  0xab   :  { %v2962_v21 = vld [vmem:[#allocation7 + $0x458] sm:$0xf0] }
  0xac   :  { %1529 = vmatpush.bf16.msra.mxu0 %v2977_v37  ;;  %1543 = vmatpush.bf16.msra.mxu1 %v3105_v38  ;;  %v3709_v37 = vld [vmem:[#allocation7 + $0x5cc] sm:$0xf]  ;;  %v3154_v38 = vld [vmem:[#allocation7 + $0x5d8] sm:$0xf0] }
  0xad   :  { %1557 = vmatpush.bf16.msra.mxu2 %v2469_v40  ;;  %v2773_v40 = vor.u32 %v3613_v29, %v2770_v30  ;;  %v3157_v46 = vor.u32 %v3709_v37, %v3154_v38  ;;  %v3593_v29 = vld [vmem:[#allocation7 + $0x22c] sm:$0xf]  ;;  %v2690_v30 = vld [vmem:[#allocation7 + $0x238] sm:$0xf0] }
  0xae   :  { %1571 = vmatpush.bf16.msra.mxu3 %v2597_v44  ;;  %v2754_v44 = vld [vmem:[#allocation7 + $0x2b8] sm:$0xf0]  ;;  %v3689_v37 = vld [vmem:[#allocation7 + $0x52c] sm:$0xf] }
  0xaf   :  { %v3074_v38 = vld [vmem:[#allocation7 + $0x538] sm:$0xf0] }
  0xb0   :  { %1530 = vmatpush.bf16.msra.mxu0 %v2961_v50  ;;  %1544 = vmatpush.bf16.msra.mxu1 %v3089_v51  ;;  %v3705_v50 = vld [vmem:[#allocation7 + $0x5ac] sm:$0xf]  ;;  %v3138_v51 = vld [vmem:[#allocation7 + $0x5b8] sm:$0xf0]  ;;  %v3077_v47 = vor.u32 %v3689_v37, %v3074_v38  ;;  %v3200_v37 = vld [vmem:[#allocation10 + $0x10] sm:$0xf] }
  0xb1   :  { %1558 = vmatpush.bf16.msra.mxu2 %v2453_v52  ;;  %v2757_v52 = vor.u32 %v3609_v43, %v2754_v44  ;;  %v3141_v59 = vor.u32 %v3705_v50, %v3138_v51  ;;  %v2949_v43 = vor.u32 %v3657_v34, %v2946_v36  ;;  %v2674_v44 = vld [vmem:[#allocation7 + $0x218] sm:$0xf0]  ;;  %v3685_v50 = vld [vmem:[#allocation7 + $0x50c] sm:$0xf]  ;;  %v4093_v34 = vld [vmem:[#allocation9] sm:$0xf] }
  0xb2   :  { %1572 = vmatpush.bf16.msra.mxu3 %v2581_v56  ;;  %v2738_v56 = vld [vmem:[#allocation7 + $0x298] sm:$0xf0] }
  0xb3   :  { %v2741_v0 = vor.u32 %v3605_v55, %v2738_v56  ;;  %v3058_v51 = vld [vmem:[#allocation7 + $0x518] sm:$0xf0]  ;;  %v3312_v55 = vld [vmem:[#allocation10 + $0xf0] sm:$0xf] }
  0xb4   :  { %1531 = vmatpush.bf16.msra.mxu0 %v2945_v63  ;;  %1545 = vmatpush.bf16.msra.mxu1 %v3073_v2  ;;  %v3701_v63 = vld [vmem:[#allocation7 + $0x58c] sm:$0xf]  ;;  %v3751_v56 = vld [vmem:[#allocation10 + $0xf4] sm:$0xf0]  ;;  %v3061_v60 = vor.u32 %v3685_v50, %v3058_v51 }
  0xb5   :  { %1559 = vmatpush.bf16.msra.mxu2 %v2437_v3  ;;  %v3601_v2 = vld [vmem:[#allocation7 + $0x26c] sm:$0xf]  ;;  %v2722_v3 = vld [vmem:[#allocation7 + $0x278] sm:$0xf0] }
  0xb6   :  { %1573 = vmatpush.bf16.msra.mxu3 %v2565_v8  ;;  %v3665_v8 = vld [vmem:[#allocation7 + $0x46c] sm:$0xf]  ;;  %v2725_v12 = vor.u32 %v3601_v2, %v2722_v3  ;;  %v3731_v7 = vld [vmem:[#allocation10 + $0x54] sm:$0xf0] }
  0xb7   :  { %v2981_v14 = vor.u32 %v3665_v8, %v2978_v9  ;;  %v3296_v8 = vld [vmem:[#allocation10 + $0xd0] sm:$0xf]  ;;  %v3747_v9 = vld [vmem:[#allocation10 + $0xd4] sm:$0xf0]  ;;  %v3737_v51 = vld [vmem:[#allocation10 + $0x84] sm:$0xf0] }
  0xb8   :  { %1532 = vmatpush.bf16.msra.mxu0 %v2929_v15  ;;  %1546 = vmatpush.bf16.msra.mxu1 %v3057_v19  ;;  %v3597_v15 = vld [vmem:[#allocation7 + $0x24c] sm:$0xf]  ;;  %v2834_v19 = vld [vmem:[#allocation7 + $0x358] sm:$0xf0]  ;;  %v4075_v2 = vpop.f32.mrf.mxu1  ;;  %v3297_v11 = vor.u32 %v3747_v9, %v3296_v8  ;;  %v3730_v9 = vld [vmem:[#allocation10 + $0x54] sm:$0xf] }
  0xb9   :  { %1560 = vmatpush.bf16.msra.mxu2 %v2421_v20  ;;  %v3661_v20 = vld [vmem:[#allocation7 + $0x44c] sm:$0xf]  ;;  %v3723_v38 = vld [vmem:[#allocation10 + $0x14] sm:$0xf0] }
  0xba   :  { %1574 = vmatpush.bf16.msra.mxu3 %v2549_v25  ;;  %v3090_v25 = vld [vmem:[#allocation7 + $0x558] sm:$0xf0] }
  0xbb   :  { %1533 = vmatmul.bf16.vlgmr.msra.gmra.mxu0 %v4053_v35  ;;  %1547 = vmatmul.bf16.vlgmr.msra.gmra.mxu1 %v4055_v39 }
  0xbc   :  { %1581 = vmatpush.bf16.msrb.mxu0 %v2789_v26  ;;  %1595 = vmatpush.bf16.msrb.mxu1 %v2917_v27  ;;  %v2709_v26 = vor.u32 %v3597_v15, %v2706_v16  ;;  %v2837_v27 = vor.u32 %v3629_v17, %v2834_v19  ;;  %v3745_v16 = vld [vmem:[#allocation10 + $0xc4] sm:$0xf0] }
  0xbd   :  { %1609 = vmatpush.bf16.msrb.mxu2 %v3045_v28  ;;  %1575 = vmatmul.bf16.vlgmr.msra.gmra.mxu3 %v4044_v6  ;;  %v2997_v6 = vor.u32 %v3669_v61, %v2994_v62  ;;  %v2965_v28 = vor.u32 %v3661_v20, %v2962_v21  ;;  %v3313_v62 = vor.u32 %v3751_v56, %v3312_v55  ;;  %v3280_v20 = vld [vmem:[#allocation10 + $0xb0] sm:$0xf]  ;;  %v3743_v21 = vld [vmem:[#allocation10 + $0xb4] sm:$0xf0] }
  0xbe   :  { %1623 = vmatpush.bf16.msrb.mxu3 %v3173_v32  ;;  %1561 = vmatmul.bf16.vlgmr.msra.gmra.mxu2 %v4041_v57  ;;  %v3122_v57 = vld [vmem:[#allocation7 + $0x598] sm:$0xf0]  ;;  %v3093_v32 = vor.u32 %v3693_v24, %v3090_v25  ;;  %v3281_v25 = vor.u32 %v3743_v21, %v3280_v20  ;;  %v3744_v21 = vld [vmem:[#allocation10 + $0xc4] sm:$0xf] }
  0xbf   :  { %v3125_v5 = vor.u32 %v3701_v63, %v3122_v57  ;;  %v3240_v63 = vld [vmem:[#allocation10 + $0x60] sm:$0xf]  ;;  %v3733_v57 = vld [vmem:[#allocation10 + $0x64] sm:$0xf0] }
  0xc0   :  { %1582 = vmatpush.bf16.msrb.mxu0 %v2773_v40  ;;  %1596 = vmatpush.bf16.msrb.mxu1 %v2901_v41  ;;  %v2693_v40 = vor.u32 %v3593_v29, %v2690_v30  ;;  %v3589_v41 = vld [vmem:[#allocation7 + $0x20c] sm:$0xf]  ;;  %v3241_v3 = vor.u32 %v3733_v57, %v3240_v63  ;;  %v4083_v15 = vpop.f32.mrf.mxu3  ;;  %v4087_v19 = vpop.f32.mrf.mxu1  ;;  %v3732_v63 = vld [vmem:[#allocation10 + $0x64] sm:$0xf]  ;;  %v3242_v57 = vld [vmem:[#allocation10 + $0x68] sm:$0xf0] }
  0xc1   :  { %1610 = vmatpush.bf16.msrb.mxu2 %v3029_v42  ;;  %v2821_v42 = vor.u32 %v3625_v31, %v2818_v33  ;;  %v3741_v31 = vld [vmem:[#allocation10 + $0xa4] sm:$0xf0] }
  0xc2   :  { %1624 = vmatpush.bf16.msrb.mxu3 %v3157_v46  ;;  %v2802_v46 = vld [vmem:[#allocation7 + $0x318] sm:$0xf0] }
  0xc3   :  { %v2805_v58 = vor.u32 %v3621_v45, %v2802_v46  ;;  %v3192_v46 = vld [vmem:[#allocation10] sm:$0xf] }
  0xc4   :  { %1583 = vmatpush.bf16.msrb.mxu0 %v2757_v52  ;;  %1597 = vmatpush.bf16.msrb.mxu1 %v2885_v53  ;;  %v3248_v52 = vld [vmem:[#allocation10 + $0x70] sm:$0xf]  ;;  %v3735_v53 = vld [vmem:[#allocation10 + $0x74] sm:$0xf0] }
  0xc5   :  { %1611 = vmatpush.bf16.msrb.mxu2 %v3013_v54  ;;  %v2677_v54 = vor.u32 %v3589_v41, %v2674_v44  ;;  %v3249_v61 = vor.u32 %v3735_v53, %v3248_v52  ;;  %v303_v44 = vperm.slane %v4093_v34, 0  ;;  %v3734_v52 = vld [vmem:[#allocation10 + $0x74] sm:$0xf]  ;;  %v3250_v53 = vld [vmem:[#allocation10 + $0x78] sm:$0xf0] }
  0xc6   :  { %1625 = vmatpush.bf16.msrb.mxu3 %v3141_v59  ;;  %v2933_v59 = vor.u32 %v3653_v48, %v2930_v49  ;;  %v3256_v48 = vld [vmem:[#allocation10 + $0x80] sm:$0xf] }
  0xc7   :  { %v3257_v56 = vor.u32 %v3737_v51, %v3256_v48  ;;  %v3740_v48 = vld [vmem:[#allocation10 + $0xa4] sm:$0xf] }
  0xc8   :  { %1584 = vmatpush.bf16.msrb.mxu0 %v2741_v0  ;;  %1598 = vmatpush.bf16.msrb.mxu1 %v2869_v1  ;;  %v3304_v0 = vld [vmem:[#allocation10 + $0xe0] sm:$0xf]  ;;  %v3749_v1 = vld [vmem:[#allocation10 + $0xe4] sm:$0xf0] }
  0xc9   :  { %1612 = vmatpush.bf16.msrb.mxu2 %v2997_v6  ;;  %v4073_v6 = vpop.f32.mrf.mxu0  ;;  %v3305_v4 = vor.u32 %v3749_v1, %v3304_v0  ;;  %v3748_v0 = vld [vmem:[#allocation10 + $0xe4] sm:$0xf] }
  0xca   :  { %1626 = vmatpush.bf16.msrb.mxu3 %v3125_v5  ;;  %v3232_v5 = vld [vmem:[#allocation10 + $0x50] sm:$0xf] }
  0xcb   :  { %v3233_v10 = vor.u32 %v3731_v7, %v3232_v5 }
  0xcc   :  { %1585 = vmatpush.bf16.msrb.mxu0 %v2725_v12  ;;  %1599 = vmatpush.bf16.msrb.mxu1 %v2853_v13  ;;  %v4081_v12 = vpop.f32.mrf.mxu2  ;;  %v3224_v13 = vld [vmem:[#allocation10 + $0x40] sm:$0xf] }
  0xcd   :  { %1613 = vmatpush.bf16.msrb.mxu2 %v2981_v14  ;;  %v3288_v14 = vld [vmem:[#allocation10 + $0xc0] sm:$0xf] }
  0xce   :  { %1627 = vmatpush.bf16.msrb.mxu3 %v3109_v18  ;;  %v3216_v18 = vld [vmem:[#allocation10 + $0x30] sm:$0xf] }
  0xd0   :  { %1586 = vmatpush.bf16.msrb.mxu0 %v2709_v26  ;;  %1600 = vmatpush.bf16.msrb.mxu1 %v2837_v27  ;;  %v3208_v26 = vld [vmem:[#allocation10 + $0x20] sm:$0xf]  ;;  %v3725_v27 = vld [vmem:[#allocation10 + $0x24] sm:$0xf0] }
  0xd1   :  { %1614 = vmatpush.bf16.msrb.mxu2 %v2965_v28  ;;  %v4085_v17 = vpop.f32.mrf.mxu0  ;;  %v3272_v28 = vld [vmem:[#allocation10 + $0xa0] sm:$0xf]  ;;  %v3209_v30 = vor.u32 %v3725_v27, %v3208_v26 }
  0xd2   :  { %1628 = vmatpush.bf16.msrb.mxu3 %v3093_v32  ;;  %v4091_v32 = vpop.f32.mrf.mxu3  ;;  %v3273_v33 = vor.u32 %v3741_v31, %v3272_v28 }
  0xd4   :  { %1587 = vmatpush.bf16.msrb.mxu0 %v2693_v40  ;;  %1601 = vmatpush.bf16.msrb.mxu1 %v2821_v42  ;;  %v4089_v29 = vpop.f32.mrf.mxu2  ;;  %v3264_v40 = vld [vmem:[#allocation10 + $0x90] sm:$0xf]  ;;  %v3201_v42 = vor.u32 %v3723_v38, %v3200_v37  ;;  %v3218_v37 = vld [vmem:[#allocation10 + $0x38] sm:$0xf0]  ;;  %v3742_v38 = vld [vmem:[#allocation10 + $0xb4] sm:$0xf] }
  0xd5   :  { %1615 = vmatpush.bf16.msrb.mxu2 %v2949_v43  ;;  %v3739_v43 = vld [vmem:[#allocation10 + $0x94] sm:$0xf0] }
  0xd6   :  { %1629 = vmatpush.bf16.msrb.mxu3 %v3077_v47  ;;  %v3265_v45 = vor.u32 %v3739_v43, %v3264_v40  ;;  %v3721_v47 = vld [vmem:[#allocation10 + $0x4] sm:$0xf0]  ;;  %v3282_v40 = vld [vmem:[#allocation10 + $0xb8] sm:$0xf0] }
  0xd7   :  { %v3193_v50 = vor.u32 %v3721_v47, %v3192_v46  ;;  %v3210_v46 = vld [vmem:[#allocation10 + $0x28] sm:$0xf0] }
  0xd8   :  { %1588 = vmatpush.bf16.msrb.mxu0 %v2677_v54  ;;  %1602 = vmatpush.bf16.msrb.mxu1 %v2805_v58  ;;  %v4097_v41 = vpop.f32.mrf.mxu1  ;;  %v1311_v54 = vadd.f32 %v4073_v6, %v303_v44  ;;  %v3253_v58 = vor.u32 %v3734_v52, %v3250_v53  ;;  %v3245_v6 = vor.u32 %v3732_v63, %v3242_v57 }
  0xd9   :  { %1616 = vmatpush.bf16.msrb.mxu2 %v2933_v59  ;;  %v4095_v36 = vpop.f32.mrf.mxu0  ;;  %v3750_v59 = vld [vmem:[#allocation10 + $0xf4] sm:$0xf] }
  0xda   :  { %1630 = vmatpush.bf16.msrb.mxu3 %v3061_v60  ;;  %v3314_v60 = vld [vmem:[#allocation10 + $0xf8] sm:$0xf0]  ;;  %v1325_v1 = vadd.f32 %v4075_v2, %v1311_v54 }
  0xdb   :  { %1589 = vmatmul.bf16.vlgmr.msrb.gmra.mxu0 %v4047_v22  ;;  %1603 = vmatmul.bf16.vlgmr.msrb.gmra.mxu1 %v4049_v23  ;;  %v3729_v22 = vld [vmem:[#allocation10 + $0x44] sm:$0xf0] }
  0xdc   :  { %2067 = vmatpush.bf16.msra.mxu0 %v3249_v61  ;;  %2081 = vmatpush.bf16.msra.mxu1 %v3313_v62  ;;  %v3225_v23 = vor.u32 %v3729_v22, %v3224_v13  ;;  %v304_v61 = vperm.slane %v4093_v34, 1  ;;  %v3317_v62 = vor.u32 %v3750_v59, %v3314_v60  ;;  %v3298_v13 = vld [vmem:[#allocation10 + $0xd8] sm:$0xf0]  ;;  %v1313_v22 = vadd.f32 %v4085_v17, %v303_v44 }
  0xdd   :  { %1617 = vmatmul.bf16.vlgmr.msrb.gmra.mxu2 %v4053_v35  ;;  %1631 = vmatmul.bf16.vlgmr.msrb.gmra.mxu3 %v4055_v39  ;;  %v3289_v35 = vor.u32 %v3745_v16, %v3288_v14  ;;  %v3727_v39 = vld [vmem:[#allocation10 + $0x34] sm:$0xf0]  ;;  %v1339_v14 = vadd.f32 %v4081_v12, %v1325_v1 }
  0xde   :  { %v3217_v24 = vor.u32 %v3727_v39, %v3216_v18  ;;  %v3728_v18 = vld [vmem:[#allocation10 + $0x44] sm:$0xf]  ;;  %v3226_v39 = vld [vmem:[#allocation10 + $0x48] sm:$0xf0] }
  0xdf   :  { %v1353_v26 = vadd.f32 %v4083_v15, %v1339_v14  ;;  %v3229_v17 = vor.u32 %v3728_v18, %v3226_v39  ;;  %v3285_v15 = vor.u32 %v3742_v38, %v3282_v40  ;;  %v3781_v40 = vld [vmem:[#allocation10 + $0x1e4] sm:$0xf0] }
  0xe0   :  { %2068 = vmatpush.bf16.msra.mxu0 %v3241_v3  ;;  %2082 = vmatpush.bf16.msra.mxu1 %v3305_v4  ;;  %v1408_v55 = vpop.f32.mrf.mxu3  ;;  %v3306_v4 = vld [vmem:[#allocation10 + $0xe8] sm:$0xf0]  ;;  %v4105_v5 = vpop.f32.mrf.mxu1 }
  0xe1   :  { %v1394_v49 = vpop.f32.mrf.mxu2  ;;  %v4103_v3 = vpop.f32.mrf.mxu0  ;;  %v3309_v8 = vor.u32 %v3748_v0, %v3306_v4  ;;  %v3194_v4 = vld [vmem:[#allocation10 + $0x8] sm:$0xf0] }
  0xe2   :  { %v1395_v7 = vadd.f32 %v1394_v49, %v304_v61  ;;  %v3274_v49 = vld [vmem:[#allocation10 + $0xa8] sm:$0xf0] }
  0xe4   :  { %2069 = vmatpush.bf16.msra.mxu0 %v3233_v10  ;;  %2083 = vmatpush.bf16.msra.mxu1 %v3297_v11  ;;  %v3234_v10 = vld [vmem:[#allocation10 + $0x58] sm:$0xf0]  ;;  %v3746_v11 = vld [vmem:[#allocation10 + $0xd4] sm:$0xf]  ;;  %v1409_v16 = vadd.f32 %v1408_v55, %v1395_v7  ;;  %v3277_v55 = vor.u32 %v3740_v48, %v3274_v49  ;;  %v3352_v49 = vld [vmem:[#allocation10 + $0x140] sm:$0xf] }
  0xe5   :  { %v3237_v2 = vor.u32 %v3730_v9, %v3234_v10  ;;  %v3736_v9 = vld [vmem:[#allocation10 + $0x84] sm:$0xf]  ;;  %v3258_v10 = vld [vmem:[#allocation10 + $0x88] sm:$0xf0] }
  0xe8   :  { %2070 = vmatpush.bf16.msra.mxu0 %v3225_v23  ;;  %2084 = vmatpush.bf16.msra.mxu1 %v3289_v35  ;;  %v3301_v35 = vor.u32 %v3746_v11, %v3298_v13  ;;  %v1410_v20 = vpop.f32.mrf.mxu3 }
  0xe9   :  { %v1396_v23 = vpop.f32.mrf.mxu2 }
  0xea   :  { %v1397_v31 = vadd.f32 %v1396_v23, %v304_v61  ;;  %v3738_v61 = vld [vmem:[#allocation10 + $0x94] sm:$0xf] }
  0xec   :  { %2071 = vmatpush.bf16.msra.mxu0 %v3217_v24  ;;  %2085 = vmatpush.bf16.msra.mxu1 %v3281_v25  ;;  %v3290_v24 = vld [vmem:[#allocation10 + $0xc8] sm:$0xf0]  ;;  %v1327_v25 = vadd.f32 %v4087_v19, %v1313_v22  ;;  %v1411_v47 = vadd.f32 %v1410_v20, %v1397_v31  ;;  %v3368_v31 = vld [vmem:[#allocation10 + $0x160] sm:$0xf] }
  0xee   :  { %v1341_v43 = vadd.f32 %v4089_v29, %v1327_v25 }
  0xf0   :  { %2072 = vmatpush.bf16.msra.mxu0 %v3209_v30  ;;  %2086 = vmatpush.bf16.msra.mxu1 %v3273_v33  ;;  %v3293_v30 = vor.u32 %v3744_v21, %v3290_v24  ;;  %v3726_v33 = vld [vmem:[#allocation10 + $0x34] sm:$0xf]  ;;  %v1355_v52 = vadd.f32 %v4091_v32, %v1341_v43  ;;  %v3763_v43 = vld [vmem:[#allocation10 + $0x154] sm:$0xf0] }
  0xf1   :  { %v3221_v19 = vor.u32 %v3726_v33, %v3218_v37  ;;  %v3765_v33 = vld [vmem:[#allocation10 + $0x164] sm:$0xf0]  ;;  %v3432_v37 = vld [vmem:[#allocation10 + $0x1e0] sm:$0xf] }
  0xf2   :  { %v1369_v0 = vadd.f32 %v4103_v3, %v1355_v52  ;;  %v3261_v3 = vor.u32 %v3736_v9, %v3258_v10  ;;  %v3369_v38 = vor.u32 %v3765_v33, %v3368_v31  ;;  %v3755_v9 = vld [vmem:[#allocation10 + $0x114] sm:$0xf0]  ;;  %v3392_v10 = vld [vmem:[#allocation10 + $0x190] sm:$0xf]  ;;  %v3780_v31 = vld [vmem:[#allocation10 + $0x1e4] sm:$0xf] }
  0xf4   :  { %2073 = vmatpush.bf16.msra.mxu0 %v3201_v42  ;;  %2087 = vmatpush.bf16.msra.mxu1 %v3265_v45  ;;  %v1367_v42 = vadd.f32 %v4095_v36, %v1353_v26  ;;  %v3724_v45 = vld [vmem:[#allocation10 + $0x24] sm:$0xf]  ;;  %v1383_v13 = vadd.f32 %v4105_v5, %v1369_v0  ;;  %v3376_v26 = vld [vmem:[#allocation10 + $0x170] sm:$0xf]  ;;  %v3757_v0 = vld [vmem:[#allocation10 + $0x124] sm:$0xf0] }
  0xf5   :  { %v3213_v29 = vor.u32 %v3724_v45, %v3210_v46 }
  0xf6   :  { %v1381_v51 = vadd.f32 %v4097_v41, %v1367_v42  ;;  %v1641_v23 = vmax.f32 %v1383_v13, 0.0  ;;  %v3360_v42 = vld [vmem:[#allocation10 + $0x150] sm:$0xf]  ;;  %v3771_v13 = vld [vmem:[#allocation10 + $0x194] sm:$0xf0] }
  0xf7   :  { %v3361_v45 = vor.u32 %v3763_v43, %v3360_v42 }
  0xf8   :  { %2074 = vmatpush.bf16.msra.mxu0 %v3193_v50  ;;  %2088 = vmatpush.bf16.msra.mxu1 %v3257_v56  ;;  %v1422_v27 = vpop.f32.mrf.mxu0  ;;  %v1436_v12 = vpop.f32.mrf.mxu1  ;;  %v3722_v56 = vld [vmem:[#allocation10 + $0x14] sm:$0xf]  ;;  %v1637_v57 = vmax.f32 %v1381_v51, 0.0  ;;  %v3416_v51 = vld [vmem:[#allocation10 + $0x1c0] sm:$0xf] }
  0xf9   :  { %v1423_v28 = vadd.f32 %v1422_v27, %v1409_v16  ;;  %v3767_v27 = vld [vmem:[#allocation10 + $0x174] sm:$0xf0] }
  0xfb   :  { %v1437_v44 = vadd.f32 %v1436_v12, %v1423_v28  ;;  %v3440_v28 = vld [vmem:[#allocation10 + $0x1f0] sm:$0xf]  ;;  %v3783_v12 = vld [vmem:[#allocation10 + $0x1f4] sm:$0xf0] }
  0xfc   :  { %2123 = vmatpush.bf16.msrb.mxu0 %v3253_v58  ;;  %2137 = vmatpush.bf16.msrb.mxu1 %v3317_v62  ;;  %v3202_v58 = vld [vmem:[#allocation10 + $0x18] sm:$0xf0] }
  0xfd   :  { %v3266_v62 = vld [vmem:[#allocation10 + $0x98] sm:$0xf0]  ;;  %v3205_v32 = vor.u32 %v3722_v56, %v3202_v58  ;;  %v3759_v56 = vld [vmem:[#allocation10 + $0x134] sm:$0xf0]  ;;  %v3408_v58 = vld [vmem:[#allocation10 + $0x1b0] sm:$0xf] }
  0xfe   :  { %v3269_v1 = vor.u32 %v3738_v61, %v3266_v62  ;;  %v3775_v61 = vld [vmem:[#allocation10 + $0x1b4] sm:$0xf0] }
  0xff   :  { %v3409_v62 = vor.u32 %v3775_v61, %v3408_v58 }
 0x100   :  { %2124 = vmatpush.bf16.msrb.mxu0 %v3245_v6  ;;  %2138 = vmatpush.bf16.msrb.mxu1 %v3309_v8  ;;  %v1424_v54 = vpop.f32.mrf.mxu0  ;;  %v1464_v36 = vpop.f32.mrf.mxu3  ;;  %v3720_v6 = vld [vmem:[#allocation10 + $0x4] sm:$0xf] }
 0x101   :  { %v1450_v50 = vpop.f32.mrf.mxu2  ;;  %v1425_v59 = vadd.f32 %v1424_v54, %v1411_v47  ;;  %v1438_v63 = vpop.f32.mrf.mxu1  ;;  %v3777_v54 = vld [vmem:[#allocation10 + $0x1c4] sm:$0xf0] }
 0x102   :  { %v1451_v53 = vadd.f32 %v1450_v50, %v1437_v44  ;;  %v3433_v44 = vor.u32 %v3781_v40, %v3432_v37  ;;  %v3761_v50 = vld [vmem:[#allocation10 + $0x144] sm:$0xf0]  ;;  %v306_v40 = vperm.slane %v4093_v34, 3 }
 0x103   :  { %v1439_v8 = vadd.f32 %v1438_v63, %v1425_v59 }
 0x104   :  { %2125 = vmatpush.bf16.msrb.mxu0 %v3237_v2  ;;  %2139 = vmatpush.bf16.msrb.mxu1 %v3301_v35  ;;  %v1465_v60 = vadd.f32 %v1464_v36, %v1451_v53  ;;  %v3197_v2 = vor.u32 %v3720_v6, %v3194_v4  ;;  %v3353_v53 = vor.u32 %v3761_v50, %v3352_v49  ;;  %v3760_v49 = vld [vmem:[#allocation10 + $0x144] sm:$0xf] }
 0x106   :  { %v1638_v41 = vmax.f32 %v1465_v60, 0.0 }
 0x108   :  { %2126 = vmatpush.bf16.msrb.mxu0 %v3229_v17  ;;  %2140 = vmatpush.bf16.msrb.mxu1 %v3293_v30  ;;  %v1645_v7 = vpack.c.bf16 %v1638_v41, %v1637_v57  ;;  %v1466_v14 = vpop.f32.mrf.mxu3  ;;  %v3377_v17 = vor.u32 %v3767_v27, %v3376_v26  ;;  %v3441_v30 = vor.u32 %v3783_v12, %v3440_v28  ;;  %v3336_v57 = vld [vmem:[#allocation10 + $0x120] sm:$0xf]  ;;  %v3764_v12 = vld [vmem:[#allocation10 + $0x164] sm:$0xf] }
 0x109   :  { %v1452_v11 = vpop.f32.mrf.mxu2  ;;  %v3337_v41 = vor.u32 %v3757_v0, %v3336_v57 }
 0x10a   :  { %1649 = vst [vmem:[#allocation2] sm:$0xff] %v1645_v7  ;;  %v1453_v22 = vadd.f32 %v1452_v11, %v1439_v8  ;;  %2095 = vmatpush.bf16.msra.mxu2 %v3377_v17  ;;  %2109 = vmatpush.bf16.msra.mxu3 %v3441_v30  ;;  %v3328_v8 = vld [vmem:[#allocation10 + $0x110] sm:$0xf]  ;;  %v3370_v30 = vld [vmem:[#allocation10 + $0x168] sm:$0xf0] }
 0x10b   :  { %v3329_v11 = vor.u32 %v3755_v9, %v3328_v8  ;;  %v3373_v37 = vor.u32 %v3764_v12, %v3370_v30  ;;  %v3410_v8 = vld [vmem:[#allocation10 + $0x1b8] sm:$0xf0]  ;;  %v3756_v9 = vld [vmem:[#allocation10 + $0x124] sm:$0xf] }
 0x10c   :  { %2127 = vmatpush.bf16.msrb.mxu0 %v3221_v19  ;;  %2141 = vmatpush.bf16.msrb.mxu1 %v3285_v15  ;;  %v1467_v16 = vadd.f32 %v1466_v14, %v1453_v22  ;;  %v3424_v19 = vld [vmem:[#allocation10 + $0x1d0] sm:$0xf]  ;;  %v3779_v15 = vld [vmem:[#allocation10 + $0x1d4] sm:$0xf0]  ;;  %v3393_v14 = vor.u32 %v3771_v13, %v3392_v10  ;;  %v3338_v10 = vld [vmem:[#allocation10 + $0x128] sm:$0xf0] }
 0x10d   :  { %v3425_v47 = vor.u32 %v3779_v15, %v3424_v19  ;;  %v3762_v19 = vld [vmem:[#allocation10 + $0x154] sm:$0xf]  ;;  %v3362_v15 = vld [vmem:[#allocation10 + $0x158] sm:$0xf0]  ;;  %v3752_v30 = vld [vmem:[#allocation10 + $0x104] sm:$0xf] }
 0x10e   :  { %v1642_v35 = vmax.f32 %v1467_v16, 0.0  ;;  %2096 = vmatpush.bf16.msra.mxu2 %v3369_v38  ;;  %2110 = vmatpush.bf16.msra.mxu3 %v3433_v44  ;;  %v3753_v16 = vld [vmem:[#allocation10 + $0x104] sm:$0xf0]  ;;  %v3434_v38 = vld [vmem:[#allocation10 + $0x1e8] sm:$0xf0] }
 0x10f   :  { %v3437_v42 = vor.u32 %v3780_v31, %v3434_v38  ;;  %v3768_v38 = vld [vmem:[#allocation10 + $0x184] sm:$0xf] }
 0x110   :  { %2128 = vmatpush.bf16.msrb.mxu0 %v3213_v29  ;;  %2142 = vmatpush.bf16.msrb.mxu1 %v3277_v55  ;;  %v1647_v18 = vpack.c.bf16 %v1642_v35, %v1641_v23  ;;  %v3417_v29 = vor.u32 %v3777_v54, %v3416_v51  ;;  %v3344_v55 = vld [vmem:[#allocation10 + $0x130] sm:$0xf]  ;;  %v3354_v51 = vld [vmem:[#allocation10 + $0x148] sm:$0xf0] }
 0x111   :  { %v3176_v39 = vld [vmem:[#allocation2] sm:$0xf]  ;;  %v3716_v21 = vld [vmem:[#allocation2 + $0x4] sm:$0xf]  ;;  %v3345_v60 = vor.u32 %v3759_v56, %v3344_v55  ;;  %v3418_v54 = vld [vmem:[#allocation10 + $0x1c8] sm:$0xf0]  ;;  %v3357_v56 = vor.u32 %v3760_v49, %v3354_v51 }
 0x112   :  { %1651 = vst [vmem:[#allocation2 + $0x10] sm:$0xff] %v1647_v18  ;;  %2097 = vmatpush.bf16.msra.mxu2 %v3361_v45  ;;  %2111 = vmatpush.bf16.msra.mxu3 %v3425_v47  ;;  %v3384_v18 = vld [vmem:[#allocation10 + $0x180] sm:$0xf]  ;;  %v3778_v45 = vld [vmem:[#allocation10 + $0x1d4] sm:$0xf] }
 0x113   :  { %v3426_v47 = vld [vmem:[#allocation10 + $0x1d8] sm:$0xf0] }
 0x114   :  { %2129 = vmatpush.bf16.msrb.mxu0 %v3205_v32  ;;  %2143 = vmatpush.bf16.msrb.mxu1 %v3269_v1  ;;  %v3400_v32 = vld [vmem:[#allocation10 + $0x1a0] sm:$0xf]  ;;  %v3773_v1 = vld [vmem:[#allocation10 + $0x1a4] sm:$0xf0]  ;;  %v3429_v50 = vor.u32 %v3778_v45, %v3426_v47 }
 0x115   :  { %v3401_v6 = vor.u32 %v3773_v1, %v3400_v32  ;;  %v3758_v32 = vld [vmem:[#allocation10 + $0x134] sm:$0xf]  ;;  %v3346_v1 = vld [vmem:[#allocation10 + $0x138] sm:$0xf0] }
 0x116   :  { %2098 = vmatpush.bf16.msra.mxu2 %v3353_v53  ;;  %2112 = vmatpush.bf16.msra.mxu3 %v3417_v29  ;;  %v3776_v53 = vld [vmem:[#allocation10 + $0x1c4] sm:$0xf] }
 0x117   :  { %v3421_v58 = vor.u32 %v3776_v53, %v3418_v54 }
 0x118   :  { %2130 = vmatpush.bf16.msrb.mxu0 %v3197_v2  ;;  %2144 = vmatpush.bf16.msrb.mxu1 %v3261_v3  ;;  %v1478_v46 = vpop.f32.mrf.mxu0  ;;  %v4117_v48 = vpop.f32.mrf.mxu1  ;;  %v305_v2 = vperm.slane %v4093_v34, 2  ;;  %v3320_v3 = vld [vmem:[#allocation10 + $0x100] sm:$0xf] }
 0x119   :  { %v3718_v20 = vld [vmem:[#allocation2 + $0xc] sm:$0xf0]  ;;  %v3178_v24 = vld [vmem:[#allocation2 + $0x10] sm:$0xf0]  ;;  %v3321_v35 = vor.u32 %v3753_v16, %v3320_v3  ;;  %v3341_v16 = vor.u32 %v3756_v9, %v3338_v10  ;;  %v3789_v9 = vld [vmem:[#allocation12 + $0x18] sm:$0xff] }
 0x11a   :  { %v3177_v25 = vor.u32 %v3718_v20, %v3176_v39  ;;  %v3181_v5 = vor.u32 %v3716_v21, %v3178_v24  ;;  %2099 = vmatpush.bf16.msra.mxu2 %v3345_v60  ;;  %2113 = vmatpush.bf16.msra.mxu3 %v3409_v62  ;;  %v3769_v39 = vld [vmem:[#allocation10 + $0x184] sm:$0xf0]  ;;  %v3766_v20 = vld [vmem:[#allocation10 + $0x174] sm:$0xf]  ;;  %v3378_v24 = vld [vmem:[#allocation10 + $0x178] sm:$0xf0]  ;;  %v1479_v17 = vadd.f32 %v1478_v46, %v305_v2 }
 0x11b   :  { %v3385_v21 = vor.u32 %v3769_v39, %v3384_v18  ;;  %v3381_v26 = vor.u32 %v3766_v20, %v3378_v24  ;;  %v3365_v46 = vor.u32 %v3762_v19, %v3362_v15  ;;  %v3754_v18 = vld [vmem:[#allocation10 + $0x114] sm:$0xf]  ;;  %v3330_v20 = vld [vmem:[#allocation10 + $0x118] sm:$0xf0] }
 0x11c   :  { %2075 = vmatmul.bf16.vlgmr.msra.gmra.mxu0 %v3177_v25  ;;  %2089 = vmatmul.bf16.vlgmr.msra.gmra.mxu1 %v3181_v5  ;;  %v1493_v43 = vadd.f32 %v4117_v48, %v1479_v17  ;;  %v3394_v24 = vld [vmem:[#allocation10 + $0x198] sm:$0xf0] }
 0x11d   :  { %v3797_v10 = vld [vmem:[#allocation12 + $0x58] sm:$0xff] }
 0x11e   :  { %2100 = vmatpush.bf16.msra.mxu2 %v3337_v41  ;;  %2114 = vmatpush.bf16.msra.mxu3 %v3401_v6 }
 0x120   :  { %v4121_v36 = vpop.f32.mrf.mxu3  ;;  %v4123_v59 = vpop.f32.mrf.mxu0 }
 0x121   :  { %v4119_v52 = vpop.f32.mrf.mxu2  ;;  %v4125_v63 = vpop.f32.mrf.mxu1  ;;  %v1481_v34 = vadd.f32 %v4123_v59, %v305_v2  ;;  %v3774_v59 = vld [vmem:[#allocation10 + $0x1b4] sm:$0xf]  ;;  %v3402_v2 = vld [vmem:[#allocation10 + $0x1a8] sm:$0xf0] }
 0x122   :  { %2101 = vmatpush.bf16.msra.mxu2 %v3329_v11  ;;  %2115 = vmatpush.bf16.msra.mxu3 %v3393_v14  ;;  %v1507_v48 = vadd.f32 %v4119_v52, %v1493_v43  ;;  %v3349_v52 = vor.u32 %v3758_v32, %v3346_v1  ;;  %v3413_v13 = vor.u32 %v3774_v59, %v3410_v8  ;;  %v3772_v14 = vld [vmem:[#allocation10 + $0x1a4] sm:$0xf]  ;;  %v3791_v32 = vld [vmem:[#allocation12 + $0x28] sm:$0xff] }
 0x123   :  { %v1495_v61 = vadd.f32 %v4125_v63, %v1481_v34  ;;  %v3799_v1 = vld [vmem:[#allocation12 + $0x68] sm:$0xff]  ;;  %v3790_v59 = vld [vmem:[#allocation12 + $0x20] sm:$0xff] }
 0x124   :  { %v1521_v62 = vadd.f32 %v4121_v36, %v1507_v48 }
 0x126   :  { %2102 = vmatpush.bf16.msra.mxu2 %v3321_v35  ;;  %2116 = vmatpush.bf16.msra.mxu3 %v3385_v21  ;;  %v3405_v35 = vor.u32 %v3772_v14, %v3402_v2  ;;  %v3770_v21 = vld [vmem:[#allocation10 + $0x194] sm:$0xf]  ;;  %v1721_v14 = vld [vmem:[%s4168_s4] sm:$0x3] }
 0x127   :  { %v3397_v12 = vor.u32 %v3770_v21, %v3394_v24  ;;  %v1724_v24 = vperm.slane %v1721_v14, 1 }
 0x128   :  { %v4129_v7 = vpop.f32.mrf.mxu3 }
 0x129   :  { %v4127_v4 = vpop.f32.mrf.mxu2 }
 0x12a   :  { %2151 = vmatpush.bf16.msrb.mxu2 %v3381_v26  ;;  %v1509_v36 = vadd.f32 %v4127_v4, %v1495_v61  ;;  %v3333_v4 = vor.u32 %v3754_v18, %v3330_v20  ;;  %v3794_v20 = vld [vmem:[#allocation12 + $0x40] sm:$0xff] }
 0x12c   :  { %2131 = vmatmul.bf16.vlgmr.msrb.gmra.mxu0 %v3177_v25  ;;  %2145 = vmatmul.bf16.vlgmr.msrb.gmra.mxu1 %v3181_v5  ;;  %v3782_v25 = vld [vmem:[#allocation10 + $0x1f4] sm:$0xf]  ;;  %v3442_v5 = vld [vmem:[#allocation10 + $0x1f8] sm:$0xf0]  ;;  %v1523_v26 = vadd.f32 %v4129_v7, %v1509_v36  ;;  %v3787_v36 = vld [vmem:[#allocation12 + $0x8] sm:$0xff] }
 0x12d   :  { %v3445_v27 = vor.u32 %v3782_v25, %v3442_v5 }
 0x12e   :  { %2152 = vmatpush.bf16.msrb.mxu2 %v3373_v37  ;;  %v3322_v37 = vld [vmem:[#allocation10 + $0x108] sm:$0xf0] }
 0x12f   :  { %2165 = vmatpush.bf16.msrb.mxu3 %v3445_v27  ;;  %v3325_v7 = vor.u32 %v3752_v30, %v3322_v37 }
 0x132   :  { %2153 = vmatpush.bf16.msrb.mxu2 %v3365_v46 }
 0x133   :  { %2166 = vmatpush.bf16.msrb.mxu3 %v3437_v42 }
 0x136   :  { %2154 = vmatpush.bf16.msrb.mxu2 %v3357_v56 }
 0x137   :  { %2167 = vmatpush.bf16.msrb.mxu3 %v3429_v50 }
 0x138   :  { %v4131_v22 = vpop.f32.mrf.mxu0  ;;  %v4134_v23 = vpop.f32.mrf.mxu1 }
 0x139   :  { %v1535_v63 = vadd.f32 %v4131_v22, %v1521_v62  ;;  %v3801_v62 = vld [vmem:[#allocation12 + $0x78] sm:$0xff] }
 0x13a   :  { %2155 = vmatpush.bf16.msrb.mxu2 %v3349_v52  ;;  %2345 = vmatpush.bf16.msra.mxu1 %v3801_v62 }
 0x13b   :  { %2168 = vmatpush.bf16.msrb.mxu3 %v3421_v58  ;;  %v1549_v5 = vadd.f32 %v4134_v23, %v1535_v63 }
 0x13d   :  { %v1639_v42 = vmax.f32 %v1549_v5, 0.0 }
 0x13e   :  { %2156 = vmatpush.bf16.msrb.mxu2 %v3341_v16 }
 0x13f   :  { %2169 = vmatpush.bf16.msrb.mxu3 %v3413_v13  ;;  %v3796_v13 = vld [vmem:[#allocation12 + $0x50] sm:$0xff] }
 0x140   :  { %v1576_v33 = vpop.f32.mrf.mxu3  ;;  %v4138_v44 = vpop.f32.mrf.mxu0 }
 0x141   :  { %v1562_v28 = vpop.f32.mrf.mxu2  ;;  %v4140_v29 = vpop.f32.mrf.mxu1  ;;  %v1537_v43 = vadd.f32 %v4138_v44, %v1523_v26 }
 0x142   :  { %v1563_v55 = vadd.f32 %v1562_v28, %v306_v40  ;;  %2157 = vmatpush.bf16.msrb.mxu2 %v3333_v4 }
 0x143   :  { %2170 = vmatpush.bf16.msrb.mxu3 %v3405_v35  ;;  %v1551_v49 = vadd.f32 %v4140_v29, %v1537_v43  ;;  %v3793_v29 = vld [vmem:[#allocation12 + $0x38] sm:$0xff]  ;;  %v1723_v35 = vperm.slane %v1721_v14, 0 }
 0x144   :  { %v1577_v57 = vadd.f32 %v1576_v33, %v1563_v55  ;;  %2331 = vmatpush.bf16.msra.mxu0 %v3793_v29 }
 0x145   :  { %v1643_v54 = vmax.f32 %v1551_v49, 0.0 }
 0x146   :  { %2158 = vmatpush.bf16.msrb.mxu2 %v3325_v7 }
 0x147   :  { %2171 = vmatpush.bf16.msrb.mxu3 %v3397_v12 }
 0x148   :  { %v1578_v0 = vpop.f32.mrf.mxu3 }
 0x149   :  { %v1564_v60 = vpop.f32.mrf.mxu2 }
 0x14a   :  { %v1565_v3 = vadd.f32 %v1564_v60, %v306_v40  ;;  %v3386_v40 = vld [vmem:[#allocation10 + $0x188] sm:$0xf0] }
 0x14b   :  { %v3389_v15 = vor.u32 %v3768_v38, %v3386_v40 }
 0x14c   :  { %v1579_v27 = vadd.f32 %v1578_v0, %v1565_v3  ;;  %v3800_v0 = vld [vmem:[#allocation12 + $0x70] sm:$0xff]  ;;  %v3795_v3 = vld [vmem:[#allocation12 + $0x48] sm:$0xff] }
 0x14d   :  { %2172 = vmatpush.bf16.msrb.mxu3 %v3389_v15  ;;  %2346 = vmatpush.bf16.msra.mxu1 %v3800_v0 }
 0x151   :  { %2347 = vmatpush.bf16.msra.mxu1 %v3799_v1 }
 0x158   :  { %v1590_v41 = vpop.f32.mrf.mxu0  ;;  %v1604_v11 = vpop.f32.mrf.mxu1 }
 0x159   :  { %v1591_v6 = vadd.f32 %v1590_v41, %v1577_v57  ;;  %v3792_v57 = vld [vmem:[#allocation12 + $0x30] sm:$0xff] }
 0x15a   :  { %2332 = vmatpush.bf16.msra.mxu0 %v3792_v57 }
 0x15b   :  { %v1605_v39 = vadd.f32 %v1604_v11, %v1591_v6  ;;  %v3798_v6 = vld [vmem:[#allocation12 + $0x60] sm:$0xff]  ;;  %v3788_v11 = vld [vmem:[#allocation12 + $0x10] sm:$0xff] }
 0x15c   :  { %2348 = vmatpush.bf16.msra.mxu1 %v3798_v6 }
 0x15e   :  { %2333 = vmatpush.bf16.msra.mxu0 %v3791_v32 }
 0x160   :  { %v1618_v25 = vpop.f32.mrf.mxu2  ;;  %v1632_v22 = vpop.f32.mrf.mxu3  ;;  %2349 = vmatpush.bf16.msra.mxu1 %v3797_v10 }
 0x161   :  { %v1619_v17 = vadd.f32 %v1618_v25, %v1605_v39  ;;  %v1592_v28 = vpop.f32.mrf.mxu0  ;;  %v1606_v19 = vpop.f32.mrf.mxu1  ;;  %v3786_v39 = vld [vmem:[#allocation12] sm:$0xff] }
 0x162   :  { %v1593_v33 = vadd.f32 %v1592_v28, %v1579_v27  ;;  %2334 = vmatpush.bf16.msra.mxu0 %v3790_v59 }
 0x163   :  { %v1633_v31 = vadd.f32 %v1632_v22, %v1619_v17 }
 0x164   :  { %v1607_v46 = vadd.f32 %v1606_v19, %v1593_v33  ;;  %2350 = vmatpush.bf16.msra.mxu1 %v3796_v13 }
 0x165   :  { %v1640_v23 = vmax.f32 %v1633_v31, 0.0 }
 0x166   :  { %2335 = vmatpush.bf16.msra.mxu0 %v3789_v9 }
 0x167   :  { %v1646_v45 = vpack.c.bf16 %v1640_v23, %v1639_v42 }
 0x168   :  { %v1620_v47 = vpop.f32.mrf.mxu2  ;;  %v1634_v51 = vpop.f32.mrf.mxu3  ;;  %2351 = vmatpush.bf16.msra.mxu1 %v3795_v3 }
 0x169   :  { %1650 = vst [vmem:[#allocation2 + $0x8] sm:$0xff] %v1646_v45  ;;  %v1621_v50 = vadd.f32 %v1620_v47, %v1607_v46 }
 0x16a   :  { %2336 = vmatpush.bf16.msra.mxu0 %v3788_v11 }
 0x16b   :  { %v1635_v53 = vadd.f32 %v1634_v51, %v1621_v50 }
 0x16c   :  { %2352 = vmatpush.bf16.msra.mxu1 %v3794_v20 }
 0x16d   :  { %v1644_v34 = vmax.f32 %v1635_v53, 0.0 }
 0x16e   :  { %2337 = vmatpush.bf16.msra.mxu0 %v3787_v36 }
 0x16f   :  { %v1648_v44 = vpack.c.bf16 %v1644_v34, %v1643_v54 }
 0x170   :  { %v3184_v48 = vld [vmem:[#allocation2 + $0x8] sm:$0xf]  ;;  %v3717_v56 = vld [vmem:[#allocation2 + $0xc] sm:$0xf] }
 0x171   :  { %1652 = vst [vmem:[#allocation2 + $0x18] sm:$0xff] %v1648_v44 }
 0x172   :  { %2338 = vmatpush.bf16.msra.mxu0 %v3786_v39 }
 0x178   :  { %v3719_v55 = vld [vmem:[#allocation2 + $0x14] sm:$0xf0]  ;;  %v3186_v58 = vld [vmem:[#allocation2 + $0x18] sm:$0xf0] }
 0x179   :  { %v3185_v60 = vor.u32 %v3719_v55, %v3184_v48  ;;  %v3189_v61 = vor.u32 %v3717_v56, %v3186_v58 }
 0x17b   :  { %2103 = vmatmul.bf16.vlgmr.msra.gmra.mxu2 %v3185_v60  ;;  %2117 = vmatmul.bf16.vlgmr.msra.gmra.mxu3 %v3189_v61 }
 0x18b   :  { %2159 = vmatmul.bf16.vlgmr.msrb.gmra.mxu2 %v3185_v60  ;;  %2173 = vmatmul.bf16.vlgmr.msrb.gmra.mxu3 %v3189_v61  ;;  %v3816_v61 = vld [vmem:[%s4170_s6] ss:$0 sm:$0xff] }
 0x199   :  { %v2076_v41 = vpop.f32.mrf.mxu0  ;;  %v2090_v52 = vpop.f32.mrf.mxu1 }
 0x19a   :  { %v2077_v21 = vadd.f32 %v2076_v41, %v1723_v35 }
 0x19c   :  { %v2091_v26 = vadd.f32 %v2090_v52, %v2077_v21 }
 0x1a1   :  { %v2078_v8 = vpop.f32.mrf.mxu0  ;;  %v2092_v16 = vpop.f32.mrf.mxu1 }
 0x1a2   :  { %v2079_v28 = vadd.f32 %v2078_v8, %v1723_v35 }
 0x1a4   :  { %v2093_v38 = vadd.f32 %v2092_v16, %v2079_v28 }
 0x1a9   :  { %v2132_v18 = vpop.f32.mrf.mxu0  ;;  %v2146_v17 = vpop.f32.mrf.mxu1 }
 0x1aa   :  { %v2133_v27 = vadd.f32 %v2132_v18, %v1724_v24 }
 0x1ac   :  { %v2147_v4 = vadd.f32 %v2146_v17, %v2133_v27 }
 0x1b1   :  { %v2134_v12 = vpop.f32.mrf.mxu0  ;;  %v2148_v7 = vpop.f32.mrf.mxu1 }
 0x1b2   :  { %v2135_v40 = vadd.f32 %v2134_v12, %v1724_v24 }
 0x1b4   :  { %v2149_v15 = vadd.f32 %v2148_v7, %v2135_v40 }
 0x1fe   :  { %v2104_v2 = vpop.f32.mrf.mxu2  ;;  %v2118_v63 = vpop.f32.mrf.mxu3 }
 0x1ff   :  { %v2105_v22 = vadd.f32 %v2104_v2, %v2091_v26 }
 0x201   :  { %v2119_v33 = vadd.f32 %v2118_v63, %v2105_v22 }
 0x203   :  { %v2179_v43 = vmax.f32 %v2119_v33, 0.0 }
 0x206   :  { %v2106_v25 = vpop.f32.mrf.mxu2  ;;  %v2120_v5 = vpop.f32.mrf.mxu3 }
 0x207   :  { %v2107_v23 = vadd.f32 %v2106_v25, %v2093_v38 }
 0x209   :  { %v2121_v47 = vadd.f32 %v2120_v5, %v2107_v23 }
 0x20b   :  { %v2181_v53 = vmax.f32 %v2121_v47, 0.0 }
 0x20e   :  { %v2160_v30 = vpop.f32.mrf.mxu2  ;;  %v2174_v31 = vpop.f32.mrf.mxu3 }
 0x20f   :  { %v2161_v37 = vadd.f32 %v2160_v30, %v2147_v4 }
 0x211   :  { %v2175_v42 = vadd.f32 %v2174_v31, %v2161_v37 }
 0x213   :  { %v2180_v19 = vmax.f32 %v2175_v42, 0.0 }
 0x215   :  { %v2183_v45 = vpack.c.bf16 %v2180_v19, %v2179_v43 }
 0x216   :  { %v2162_v46 = vpop.f32.mrf.mxu2  ;;  %v2176_v50 = vpop.f32.mrf.mxu3 }
 0x217   :  { %2185 = vst [vmem:[#allocation3] sm:$0xff] %v2183_v45  ;;  %v2163_v49 = vadd.f32 %v2162_v46, %v2149_v15 }
 0x219   :  { %v2177_v51 = vadd.f32 %v2176_v50, %v2163_v49 }
 0x21b   :  { %v2182_v54 = vmax.f32 %v2177_v51, 0.0 }
 0x21d   :  { %v2184_v34 = vpack.c.bf16 %v2182_v54, %v2181_v53 }
 0x21e   :  { %v3448_v44 = vld [vmem:[#allocation3] sm:$0xf]  ;;  %v3784_v55 = vld [vmem:[#allocation3 + $0x4] sm:$0xf] }
 0x21f   :  { %2186 = vst [vmem:[#allocation3 + $0x8] sm:$0xff] %v2184_v34 }
 0x226   :  { %v3785_v48 = vld [vmem:[#allocation3 + $0x4] sm:$0xf0]  ;;  %v3450_v56 = vld [vmem:[#allocation3 + $0x8] sm:$0xf0] }
 0x227   :  { %v3449_v58 = vor.u32 %v3785_v48, %v3448_v44  ;;  %v3453_v60 = vor.u32 %v3784_v55, %v3450_v56 }
 0x229   :  { %2339 = vmatmul.bf16.vlgmr.msra.gmra.mxu0 %v3449_v58  ;;  %2353 = vmatmul.bf16.vlgmr.msra.gmra.mxu1 %v3453_v60 }
 0x2a6   :  { %v2340_v29 = vpop.f32.mrf.mxu0  ;;  %v2354_v62 = vpop.f32.mrf.mxu1 }
 0x2a7   :  { %v2341_v57 = vadd.f32 %v3816_v61, %v2340_v29 }
 0x2a9   :  { %v2355_v0 = vadd.f32 %v2354_v62, %v2341_v57 }
 0x2ab   :  { %2359 = vst [vmem:[#allocation13] sm:$0xff] %v2355_v0 }
 0x2ae   :  { %v2342_v41 = vpop.f32.mrf.mxu0  ;;  %v2356_v1 = vpop.f32.mrf.mxu1 }
 0x2af   :  { %v2343_v32 = vadd.f32 %v3816_v61, %v2342_v41 }
 0x2b1   :  { %v2357_v59 = vadd.f32 %v2356_v1, %v2343_v32 }
 0x2b3   :  { %2360 = vst [vmem:[#allocation13 + $0x8] sm:$0xff] %v2357_v59 }
 0x2b4   :  { %2373 = dma.vmem_to_hbm [thread:$0]  %s2366_s10, 256, %s2368_s1, [#allocation6], %s3973_s13, %s3973_s13, %s3974_s14  }
 0x2b5   :  { %3967 = dma.done.wait [#allocation6], 256  }
 0x2b6   :  { %3968 = vsyncadd [#allocation6], 4294967040 }
 0x2b7   :  { %2378 = vsyncpa [#allocation5], 1 }
 0x2b8   :  { %2379 = vsyncpa [#allocation8], 1 }
 0x2b9   :  { %2380 = vsyncpa [#allocation11], 1 }
 0x2ba   :  { %2381 = vsyncpa [#allocation6], 1 }

</bundles_post_ra>
